<compile_context>
chip_gen: v7x
topology: tpu7x:2x2x1
jax: 0.10.0
libtpu: 0.0.40
codegen_flags: <defaults>
</compile_context>

<pallas_src>
import functools
import math

import jax
import jax.numpy as jnp
from jax.experimental import pallas as pl
from jax.experimental.pallas import tpu as pltpu


# --------------------------------------------------------------------------- kernel
def _decoder_kernel(x_ref, load_ref, k_ref, v_ref, shk_ref, mask_ref,
                    wq_e_ref, wq_l_ref, wcomb_ref, bcomb_ref,
                    probs_ref,
                    *, head_num, qkv_dim, inv_sqrt_qkv, inv_sqrt_emb,
                    logit_clipping, compute_dtype):
    bblk, p, e = x_ref.shape
    hk = head_num * qkv_dim
    bp = bblk * p
    cdt = compute_dtype
    f32 = jnp.float32
    tiny = 1e-30

    # ---- q_last = Wq_last([encoded_last_node, load]) without materializing the concat.
    # One (BP, E) @ (E, HK) matmul (full sublanes / MXU rows) + rank-1 VPU load term.
    x_flat = x_ref[...].reshape(bp, e)                                    # (BP, E)   cdt
    q_flat = jnp.dot(x_flat, wq_e_ref[...], preferred_element_type=f32)   # (BP, HK)  f32
    q_flat = q_flat + load_ref[...].reshape(bp, 1) * wq_l_ref[...]        # rank-1 load col
    q3 = q_flat.reshape(bblk, p, hk).astype(cdt)                          # (bblk, P, HK)

    mask = mask_ref[...]                                                  # (bblk, P, N) f32

    # ---- per-head attention (static unroll).  K/V sliced from refs per head (never
    # hoisted whole); V lane-dense so PV contracts over the 128-lane Npad axis.
    # Per-head outputs stay in vregs; lane-concat instead of VMEM scratch stores.
    head_outs = []
    for h in range(head_num):
        qh = q3[:, :, h * qkv_dim:(h + 1) * qkv_dim]                      # (bblk, P, D)
        kh = k_ref[:, h, :, :]                                            # (bblk, D, N) cdt
        vh = v_ref[:, h, :, :]                                            # (bblk, D, N) cdt
        s = jnp.einsum('bpd,bdn->bpn', qh, kh, preferred_element_type=f32)
        s = s * inv_sqrt_qkv + mask
        m = jnp.max(s, axis=-1, keepdims=True)
        m = jnp.where(m == -jnp.inf, 0.0, m)        # fully-masked-row guard
        w = jnp.exp(s - m)
        denom = jnp.maximum(jnp.sum(w, axis=-1, keepdims=True), tiny)
        w = w * pl.reciprocal(denom, approx=True)   # EUP slot (internal softmax)
        o = jnp.einsum('bpn,bdn->bpd', w.astype(cdt), vh, preferred_element_type=f32)
        head_outs.append(o)
    out_cat = jnp.concatenate(head_outs, axis=-1)                         # (bblk, P, HK) f32

    # ---- multi_head_combine
    mh = jnp.dot(out_cat.reshape(bp, hk).astype(cdt), wcomb_ref[...],
                 preferred_element_type=f32) + bcomb_ref[...]             # (BP, E) f32
    mh3 = mh.reshape(bblk, p, e).astype(cdt)

    # ---- single-head score -> tanh clipping -> masked softmax (exact division)
    s2 = jnp.einsum('bpe,ben->bpn', mh3, shk_ref[...], preferred_element_type=f32)
    s2 = logit_clipping * jnp.tanh(s2 * inv_sqrt_emb) + mask
    m2 = jnp.max(s2, axis=-1, keepdims=True)
    m2 = jnp.where(m2 == -jnp.inf, 0.0, m2)
    e2 = jnp.exp(s2 - m2)
    denom2 = jnp.maximum(jnp.sum(e2, axis=-1, keepdims=True), tiny)
    probs_ref[...] = e2 / denom2


# ----------------------------------------------------------------- blocking / budgets
def _tpu_vmem_and_cores():
    """One generation-aware VMEM budget + TensorCore count heuristic."""
    phys = 128 << 20
    try:
        phys = int(pltpu.get_tpu_info().vmem_capacity_bytes)
    except Exception:
        pass
    # ~64 MiB/TC parts (v7x-like) have 2 TensorCores; 128 MiB parts (v5e/v6e) have 1.
    num_tc = 2 if phys <= (64 << 20) else 1
    budget = max(16 << 20, min((phys * 3) // 4, 96 << 20))
    return budget, num_tc


def _pick_batch_block(batch, per_batch_bytes, fixed_bytes, vmem_budget, num_tc,
                      max_bblk=64):
    """Largest divisor of `batch` whose double-buffered blocks fit `vmem_budget`.
    On multi-TC parts prefer >=2 grid steps per TensorCore so DMA overlaps compute;
    on single-TC parts simply take the largest fitting block (grid may be 1)."""
    divisors = [d for d in range(1, batch + 1) if batch % d == 0]
    fitting = [d for d in divisors
               if d <= max_bblk and fixed_bytes + 2 * d * per_batch_bytes <= vmem_budget]
    if not fitting:
        fitting = [1]
    if num_tc >= 2:
        for min_steps in (2 * num_tc, num_tc):
            cands = [d for d in fitting if batch // d >= min_steps]
            if cands:
                return max(cands)
    return max(fitting)


# ------------------------------------------------------------------------ set_kv
def set_kv(params, encoded_nodes, head_num, qkv_dim, *,
           compute_dtype=jnp.bfloat16, lane_pad=128):
    """Mirror of CVRP_Decoder.set_kv.  Both K and V are stored lane-dense as
    (B, H, QKV, Npad); single_head_key is (B, E, Npad); N padded to 128 lanes."""
    B, N, E = encoded_nodes.shape
    k = encoded_nodes @ params["wk"]
    v = encoded_nodes @ params["wv"]
    k = k.reshape(B, N, head_num, qkv_dim).transpose(0, 2, 3, 1)    # (B, H, QKV, N)
    v = v.reshape(B, N, head_num, qkv_dim).transpose(0, 2, 3, 1)    # (B, H, QKV, N)
    shk = encoded_nodes.transpose(0, 2, 1)                          # (B, E, N)
    n_pad = lane_pad * -(-N // lane_pad) - N
    if n_pad:
        k = jnp.pad(k, ((0, 0), (0, 0), (0, 0), (0, n_pad)))
        v = jnp.pad(v, ((0, 0), (0, 0), (0, 0), (0, n_pad)))
        shk = jnp.pad(shk, ((0, 0), (0, 0), (0, n_pad)))
    return (k.astype(compute_dtype), v.astype(compute_dtype),
            shk.astype(compute_dtype))


# ----------------------------------------------------------------------- forward
def cvrp_decoder_forward(params, k, v, single_head_key,
                         encoded_last_node, load, ninf_mask,
                         *, head_num, qkv_dim, sqrt_embedding_dim, logit_clipping,
                         compute_dtype=jnp.bfloat16, max_batch_block=64):
    B, P, E = encoded_last_node.shape
    N = ninf_mask.shape[-1]
    Npad = k.shape[-1]
    hk = head_num * qkv_dim
    assert k.shape == (B, head_num, qkv_dim, Npad)
    assert v.shape == (B, head_num, qkv_dim, Npad)
    assert single_head_key.shape == (B, E, Npad)

    # mask: padded columns set to -inf so the lane-dense softmax ignores them
    mask = ninf_mask.astype(jnp.float32)
    if Npad != N:
        mask = jnp.pad(mask, ((0, 0), (0, 0), (0, Npad - N)),
                       constant_values=-jnp.inf)

    # split / cast weights once at trace time
    wq = params["wq_last"]                                # (E+1, HK)
    wq_emb = wq[:E].astype(compute_dtype)                 # (E, HK)
    wq_load = wq[E:E + 1].astype(jnp.float32)             # (1, HK)  rank-1 load term
    wcomb = params["w_combine"].astype(compute_dtype)     # (HK, E)
    bcomb = params["b_combine"].astype(jnp.float32)       # (1, E)

    x = encoded_last_node.astype(compute_dtype)
    load3 = load[:, :, None].astype(jnp.float32)          # (B, P, 1)

    # one consistent VMEM budget for the picker AND the compiler limit
    vmem_budget, num_tc = _tpu_vmem_and_cores()
    item = jnp.dtype(compute_dtype).itemsize
    per_b = (P * E * item                                   # x
             + P * 4                                        # load (f32)
             + 2 * head_num * qkv_dim * Npad * item         # k + v
             + E * Npad * item                              # single_head_key
             + P * Npad * 4                                 # mask (f32)
             + P * Npad * 4)                                # probs out (f32)
    fixed = (E * hk + hk * E) * item + (hk + E) * 4         # resident weights
    bblk = _pick_batch_block(B, per_b, fixed, vmem_budget, num_tc,
                             max_bblk=max_batch_block)
    grid = (B // bblk,)

    kernel = functools.partial(
        _decoder_kernel, head_num=head_num, qkv_dim=qkv_dim,
        inv_sqrt_qkv=1.0 / math.sqrt(float(qkv_dim)),
        inv_sqrt_emb=1.0 / float(sqrt_embedding_dim),
        logit_clipping=float(logit_clipping),
        compute_dtype=compute_dtype)

    probs_pad = pl.pallas_call(
        kernel,
        out_shape=jax.ShapeDtypeStruct((B, P, Npad), jnp.float32),
        grid_spec=pltpu.PrefetchScalarGridSpec(
            num_scalar_prefetch=0,
            grid=grid,
            in_specs=[
                pl.BlockSpec((bblk, P, E), lambda b: (b, 0, 0)),
                pl.BlockSpec((bblk, P, 1), lambda b: (b, 0, 0)),
                pl.BlockSpec((bblk, head_num, qkv_dim, Npad), lambda b: (b, 0, 0, 0)),
                pl.BlockSpec((bblk, head_num, qkv_dim, Npad), lambda b: (b, 0, 0, 0)),
                pl.BlockSpec((bblk, E, Npad), lambda b: (b, 0, 0)),
                pl.BlockSpec((bblk, P, Npad), lambda b: (b, 0, 0)),
                pl.BlockSpec((E, hk), lambda b: (0, 0)),
                pl.BlockSpec((1, hk), lambda b: (0, 0)),
                pl.BlockSpec((hk, E), lambda b: (0, 0)),
                pl.BlockSpec((1, E), lambda b: (0, 0)),
            ],
            out_specs=pl.BlockSpec((bblk, P, Npad), lambda b: (b, 0, 0)),
        ),
        compiler_params=pltpu.CompilerParams(
            dimension_semantics=("parallel",),
            vmem_limit_bytes=int(vmem_budget)),
    )(x, load3, k, v, single_head_key, mask, wq_emb, wq_load, wcomb, bcomb)

    return probs_pad[:, :, :N] if Npad != N else probs_pad


# ---------------------------------------------------------------------- reference
def reference_forward(params, encoded_nodes, encoded_last_node, load, ninf_mask,
                      *, head_num, qkv_dim, sqrt_embedding_dim, logit_clipping):
    """Pure-JAX f32 reference mirroring the PyTorch module exactly."""
    B, P, E = encoded_last_node.shape
    N = encoded_nodes.shape[1]
    k = (encoded_nodes @ params["wk"]).reshape(B, N, head_num, qkv_dim).transpose(0, 2, 1, 3)
    v = (encoded_nodes @ params["wv"]).reshape(B, N, head_num, qkv_dim).transpose(0, 2, 1, 3)
    shk = encoded_nodes.transpose(0, 2, 1)
    input_cat = jnp.concatenate([encoded_last_node, load[:, :, None]], axis=2)
    q = (input_cat @ params["wq_last"]).reshape(B, P, head_num, qkv_dim).transpose(0, 2, 1, 3)
    score = jnp.einsum("bhpd,bhnd->bhpn", q, k) / math.sqrt(float(qkv_dim))
    score = score + ninf_mask[:, None, :, :]
    w = jax.nn.softmax(score, axis=3)
    out = jnp.einsum("bhpn,bhnd->bhpd", w, v)
    out_concat = out.transpose(0, 2, 1, 3).reshape(B, P, head_num * qkv_dim)
    mh = out_concat @ params["w_combine"] + params["b_combine"][0]
    s2 = jnp.einsum("bpe,ben->bpn", mh, shk)
    s2 = logit_clipping * jnp.tanh(s2 / sqrt_embedding_dim)
    s2 = s2 + ninf_mask
    return jax.nn.softmax(s2, axis=2)


if __name__ == "__main__":
    # model hyper-parameters
    embedding_dim = 32
    head_num = 4
    qkv_dim = 8                       # head_num * qkv_dim == embedding_dim
    sqrt_embedding_dim = math.sqrt(embedding_dim)
    logit_clipping = 10.0

    # problem sizes (small, but batch big enough to exercise batch blocking)
    batch = 16
    pomo = 8
    problem = 16

    key = jax.random.PRNGKey(0)
    ks = jax.random.split(key, 9)

    params = {
        "wq_last": 0.1 * jax.random.normal(ks[0], (embedding_dim + 1, head_num * qkv_dim), jnp.float32),
        "wk": 0.1 * jax.random.normal(ks[1], (embedding_dim, head_num * qkv_dim), jnp.float32),
        "wv": 0.1 * jax.random.normal(ks[2], (embedding_dim, head_num * qkv_dim), jnp.float32),
        "w_combine": 0.1 * jax.random.normal(ks[3], (head_num * qkv_dim, embedding_dim), jnp.float32),
        "b_combine": 0.1 * jax.random.normal(ks[4], (1, embedding_dim), jnp.float32),
    }

    encoded_nodes = jax.random.normal(ks[5], (batch, problem, embedding_dim), jnp.float32)
    encoded_last_node = jax.random.normal(ks[6], (batch, pomo, embedding_dim), jnp.float32)
    load = jax.random.uniform(ks[7], (batch, pomo), jnp.float32)

    # ninf mask: mask some nodes per row, never the whole row (column 0 kept open)
    mask_bool = jax.random.bernoulli(ks[8], 0.3, (batch, pomo, problem))
    mask_bool = mask_bool.at[:, :, 0].set(False)
    ninf_mask = jnp.where(mask_bool, -jnp.inf, 0.0).astype(jnp.float32)

    ref = jax.block_until_ready(reference_forward(
        params, encoded_nodes, encoded_last_node, load, ninf_mask,
        head_num=head_num, qkv_dim=qkv_dim,
        sqrt_embedding_dim=sqrt_embedding_dim, logit_clipping=logit_clipping))

    # ---- f32 storage path : tight-ish check (approx reciprocal in attention softmax) ----
    k32, v32, shk32 = set_kv(params, encoded_nodes, head_num, qkv_dim,
                             compute_dtype=jnp.float32)
    probs32 = jax.block_until_ready(cvrp_decoder_forward(
        params, k32, v32, shk32, encoded_last_node, load, ninf_mask,
        head_num=head_num, qkv_dim=qkv_dim,
        sqrt_embedding_dim=sqrt_embedding_dim, logit_clipping=logit_clipping,
        compute_dtype=jnp.float32))

    assert probs32.shape == (batch, pomo, problem)
    assert bool(jnp.all(jnp.isfinite(probs32)))
    assert bool(jnp.allclose(jnp.sum(probs32, axis=-1), 1.0, atol=5e-3))
    assert bool(jnp.allclose(probs32, ref, rtol=1e-2, atol=1e-3))

    # ---- bf16 storage path (default; MXU-native on all generations) ----
    kbf, vbf, shkbf = set_kv(params, encoded_nodes, head_num, qkv_dim,
                             compute_dtype=jnp.bfloat16)
    probsbf = jax.block_until_ready(cvrp_decoder_forward(
        params, kbf, vbf, shkbf, encoded_last_node, load, ninf_mask,
        head_num=head_num, qkv_dim=qkv_dim,
        sqrt_embedding_dim=sqrt_embedding_dim, logit_clipping=logit_clipping,
        compute_dtype=jnp.bfloat16))

    assert probsbf.shape == (batch, pomo, problem)
    assert bool(jnp.all(jnp.isfinite(probsbf)))
    assert bool(jnp.allclose(jnp.sum(probsbf, axis=-1), 1.0, atol=2e-2))
    assert bool(jnp.max(jnp.abs(probsbf - ref)) < 0.1)

    print("KERNEL_OK")
</pallas_src>

<mosaic_0001>
module attributes {stable_mosaic.version = 11 : i64} {
  func.func @_decoder_kernel(%arg0: i32, %arg1: memref<16x8x32xf32, #tpu.memory_space<vmem>>, %arg2: memref<16x8x1xf32, #tpu.memory_space<vmem>>, %arg3: memref<16x4x8x128xf32, #tpu.memory_space<vmem>>, %arg4: memref<16x4x8x128xf32, #tpu.memory_space<vmem>>, %arg5: memref<16x32x128xf32, #tpu.memory_space<vmem>>, %arg6: memref<16x8x128xf32, #tpu.memory_space<vmem>>, %arg7: memref<32x32xf32, #tpu.memory_space<vmem>>, %arg8: memref<1x32xf32, #tpu.memory_space<vmem>>, %arg9: memref<32x32xf32, #tpu.memory_space<vmem>>, %arg10: memref<1x32xf32, #tpu.memory_space<vmem>>, %arg11: memref<16x8x128xf32, #tpu.memory_space<vmem>>) attributes {dimension_semantics = [#tpu.dimension_semantics<parallel>], iteration_bounds = array<i64: 1>, scalar_prefetch = 0 : i64, scratch_operands = 0 : i64, tpu.core_type = #tpu.core_type<tc>, window_params = [{transform_indices = @transform_0, window_bounds = array<i64: 16, 8, 32>}, {transform_indices = @transform_1, window_bounds = array<i64: 16, 8, 1>}, {transform_indices = @transform_2, window_bounds = array<i64: 16, 4, 8, 128>}, {transform_indices = @transform_3, window_bounds = array<i64: 16, 4, 8, 128>}, {transform_indices = @transform_4, window_bounds = array<i64: 16, 32, 128>}, {transform_indices = @transform_5, window_bounds = array<i64: 16, 8, 128>}, {pipeline_mode = #tpu.pipeline_mode<synchronous>, transform_indices = @transform_6, window_bounds = array<i64: 32, 32>}, {pipeline_mode = #tpu.pipeline_mode<synchronous>, transform_indices = @transform_7, window_bounds = array<i64: 1, 32>}, {pipeline_mode = #tpu.pipeline_mode<synchronous>, transform_indices = @transform_8, window_bounds = array<i64: 32, 32>}, {pipeline_mode = #tpu.pipeline_mode<synchronous>, transform_indices = @transform_9, window_bounds = array<i64: 1, 32>}, {transform_indices = @transform_10, window_bounds = array<i64: 16, 8, 128>}]} {
    %c0 = arith.constant 0 : index
    %c0_0 = arith.constant 0 : index
    %c0_1 = arith.constant 0 : index
    %0 = vector.load %arg1[%c0, %c0_0, %c0_1] : memref<16x8x32xf32, #tpu.memory_space<vmem>>, vector<16x8x32xf32>
    %1 = vector.shape_cast %0 : vector<16x8x32xf32> to vector<128x32xf32>
    %c0_2 = arith.constant 0 : index
    %c0_3 = arith.constant 0 : index
    %2 = vector.load %arg7[%c0_2, %c0_3] : memref<32x32xf32, #tpu.memory_space<vmem>>, vector<32x32xf32>
    %cst = arith.constant dense<0.000000e+00> : vector<128x32xf32>
    %3 = tpu.matmul %1, %2, %cst {dimension_numbers = #tpu.dot_dimension_numbers<[1], [0], [0], [1], [0, 0, 1, 1], [], []>} : vector<128x32xf32>, vector<32x32xf32>, vector<128x32xf32> -> vector<128x32xf32>
    %c0_4 = arith.constant 0 : index
    %c0_5 = arith.constant 0 : index
    %c0_6 = arith.constant 0 : index
    %4 = vector.load %arg2[%c0_4, %c0_5, %c0_6] : memref<16x8x1xf32, #tpu.memory_space<vmem>>, vector<16x8x1xf32>
    %5 = vector.shape_cast %4 : vector<16x8x1xf32> to vector<128x1xf32>
    %c0_7 = arith.constant 0 : index
    %c0_8 = arith.constant 0 : index
    %6 = vector.load %arg8[%c0_7, %c0_8] : memref<1x32xf32, #tpu.memory_space<vmem>>, vector<1x32xf32>
    %7 = vector.broadcast %5 : vector<128x1xf32> to vector<128x32xf32>
    %8 = vector.broadcast %6 : vector<1x32xf32> to vector<128x32xf32>
    %9 = arith.mulf %7, %8 : vector<128x32xf32>
    %10 = arith.addf %3, %9 : vector<128x32xf32>
    %11 = vector.shape_cast %10 : vector<128x32xf32> to vector<16x8x32xf32>
    %c0_9 = arith.constant 0 : index
    %c0_10 = arith.constant 0 : index
    %c0_11 = arith.constant 0 : index
    %12 = vector.load %arg6[%c0_9, %c0_10, %c0_11] : memref<16x8x128xf32, #tpu.memory_space<vmem>>, vector<16x8x128xf32>
    %13 = vector.extract_strided_slice %11 {offsets = [0, 0, 0], sizes = [16, 8, 8], strides = [1, 1, 1]} : vector<16x8x32xf32> to vector<16x8x8xf32>
    %c0_12 = arith.constant 0 : index
    %c0_13 = arith.constant 0 : index
    %c0_14 = arith.constant 0 : index
    %c0_15 = arith.constant 0 : index
    %14 = vector.load %arg3[%c0_12, %c0_13, %c0_14, %c0_15] : memref<16x4x8x128xf32, #tpu.memory_space<vmem>>, vector<16x1x8x128xf32>
    %15 = vector.shape_cast %14 : vector<16x1x8x128xf32> to vector<16x8x128xf32>
    %c0_16 = arith.constant 0 : index
    %c0_17 = arith.constant 0 : index
    %c0_18 = arith.constant 0 : index
    %c0_19 = arith.constant 0 : index
    %16 = vector.load %arg4[%c0_16, %c0_17, %c0_18, %c0_19] : memref<16x4x8x128xf32, #tpu.memory_space<vmem>>, vector<16x1x8x128xf32>
    %17 = vector.shape_cast %16 : vector<16x1x8x128xf32> to vector<16x8x128xf32>
    "tpu.trace_start"() <{level = 10 : i32, message = "bpd,bdn->bpn"}> : () -> ()
    %cst_20 = arith.constant dense<0.000000e+00> : vector<16x8x128xf32>
    %18 = tpu.matmul %13, %15, %cst_20 {dimension_numbers = #tpu.dot_dimension_numbers<[2], [1], [1], [2], [0, 0, 0, 1, 1, 2], [0], [0]>} : vector<16x8x8xf32>, vector<16x8x128xf32>, vector<16x8x128xf32> -> vector<16x8x128xf32>
    "tpu.trace_stop"() : () -> ()
    %cst_21 = arith.constant 0.353553385 : f32
    %19 = vector.broadcast %cst_21 : f32 to vector<16x8x128xf32>
    %20 = arith.mulf %18, %19 : vector<16x8x128xf32>
    %21 = arith.addf %20, %12 : vector<16x8x128xf32>
    %cst_22 = arith.constant dense<0xFF800000> : vector<16x8xf32>
    %22 = vector.multi_reduction <maximumf>, %21, %cst_22 [2] : vector<16x8x128xf32> to vector<16x8xf32>
    %23 = vector.shape_cast %22 : vector<16x8xf32> to vector<16x8x1xf32>
    %cst_23 = arith.constant 0xFF800000 : f32
    %24 = vector.broadcast %cst_23 : f32 to vector<16x8x1xf32>
    %25 = arith.cmpf oeq, %23, %24 : vector<16x8x1xf32>
    %cst_24 = arith.constant 0.000000e+00 : f32
    %26 = vector.broadcast %cst_24 : f32 to vector<16x8x1xf32>
    %27 = arith.select %25, %26, %23 : vector<16x8x1xi1>, vector<16x8x1xf32>
    %28 = vector.broadcast %27 : vector<16x8x1xf32> to vector<16x8x128xf32>
    %29 = arith.subf %21, %28 : vector<16x8x128xf32>
    %30 = math.exp %29 : vector<16x8x128xf32>
    %cst_25 = arith.constant dense<0.000000e+00> : vector<16x8xf32>
    %31 = vector.multi_reduction <add>, %30, %cst_25 [2] : vector<16x8x128xf32> to vector<16x8xf32>
    %32 = vector.shape_cast %31 : vector<16x8xf32> to vector<16x8x1xf32>
    %cst_26 = arith.constant 1.000000e-30 : f32
    %33 = vector.broadcast %cst_26 : f32 to vector<16x8x1xf32>
    %34 = arith.maximumf %32, %33 : vector<16x8x1xf32>
    %35 = tpu.reciprocal %34 {approx = true} : vector<16x8x1xf32> -> vector<16x8x1xf32>
    %36 = vector.broadcast %35 : vector<16x8x1xf32> to vector<16x8x128xf32>
    %37 = arith.mulf %30, %36 : vector<16x8x128xf32>
    "tpu.trace_start"() <{level = 10 : i32, message = "bpn,bdn->bpd"}> : () -> ()
    %cst_27 = arith.constant dense<0.000000e+00> : vector<16x8x8xf32>
    %38 = tpu.matmul %37, %17, %cst_27 {dimension_numbers = #tpu.dot_dimension_numbers<[2], [2], [1], [1], [0, 0, 0, 1, 1, 1], [0], [0]>} : vector<16x8x128xf32>, vector<16x8x128xf32>, vector<16x8x8xf32> -> vector<16x8x8xf32>
    "tpu.trace_stop"() : () -> ()
    %39 = vector.extract_strided_slice %11 {offsets = [0, 0, 8], sizes = [16, 8, 8], strides = [1, 1, 1]} : vector<16x8x32xf32> to vector<16x8x8xf32>
    %c0_28 = arith.constant 0 : index
    %c1 = arith.constant 1 : index
    %c0_29 = arith.constant 0 : index
    %c0_30 = arith.constant 0 : index
    %40 = vector.load %arg3[%c0_28, %c1, %c0_29, %c0_30] : memref<16x4x8x128xf32, #tpu.memory_space<vmem>>, vector<16x1x8x128xf32>
    %41 = vector.shape_cast %40 : vector<16x1x8x128xf32> to vector<16x8x128xf32>
    %c0_31 = arith.constant 0 : index
    %c1_32 = arith.constant 1 : index
    %c0_33 = arith.constant 0 : index
    %c0_34 = arith.constant 0 : index
    %42 = vector.load %arg4[%c0_31, %c1_32, %c0_33, %c0_34] : memref<16x4x8x128xf32, #tpu.memory_space<vmem>>, vector<16x1x8x128xf32>
    %43 = vector.shape_cast %42 : vector<16x1x8x128xf32> to vector<16x8x128xf32>
    "tpu.trace_start"() <{level = 10 : i32, message = "bpd,bdn->bpn"}> : () -> ()
    %cst_35 = arith.constant dense<0.000000e+00> : vector<16x8x128xf32>
    %44 = tpu.matmul %39, %41, %cst_35 {dimension_numbers = #tpu.dot_dimension_numbers<[2], [1], [1], [2], [0, 0, 0, 1, 1, 2], [0], [0]>} : vector<16x8x8xf32>, vector<16x8x128xf32>, vector<16x8x128xf32> -> vector<16x8x128xf32>
    "tpu.trace_stop"() : () -> ()
    %cst_36 = arith.constant 0.353553385 : f32
    %45 = vector.broadcast %cst_36 : f32 to vector<16x8x128xf32>
    %46 = arith.mulf %44, %45 : vector<16x8x128xf32>
    %47 = arith.addf %46, %12 : vector<16x8x128xf32>
    %cst_37 = arith.constant dense<0xFF800000> : vector<16x8xf32>
    %48 = vector.multi_reduction <maximumf>, %47, %cst_37 [2] : vector<16x8x128xf32> to vector<16x8xf32>
    %49 = vector.shape_cast %48 : vector<16x8xf32> to vector<16x8x1xf32>
    %cst_38 = arith.constant 0xFF800000 : f32
    %50 = vector.broadcast %cst_38 : f32 to vector<16x8x1xf32>
    %51 = arith.cmpf oeq, %49, %50 : vector<16x8x1xf32>
    %cst_39 = arith.constant 0.000000e+00 : f32
    %52 = vector.broadcast %cst_39 : f32 to vector<16x8x1xf32>
    %53 = arith.select %51, %52, %49 : vector<16x8x1xi1>, vector<16x8x1xf32>
    %54 = vector.broadcast %53 : vector<16x8x1xf32> to vector<16x8x128xf32>
    %55 = arith.subf %47, %54 : vector<16x8x128xf32>
    %56 = math.exp %55 : vector<16x8x128xf32>
    %cst_40 = arith.constant dense<0.000000e+00> : vector<16x8xf32>
    %57 = vector.multi_reduction <add>, %56, %cst_40 [2] : vector<16x8x128xf32> to vector<16x8xf32>
    %58 = vector.shape_cast %57 : vector<16x8xf32> to vector<16x8x1xf32>
    %cst_41 = arith.constant 1.000000e-30 : f32
    %59 = vector.broadcast %cst_41 : f32 to vector<16x8x1xf32>
    %60 = arith.maximumf %58, %59 : vector<16x8x1xf32>
    %61 = tpu.reciprocal %60 {approx = true} : vector<16x8x1xf32> -> vector<16x8x1xf32>
    %62 = vector.broadcast %61 : vector<16x8x1xf32> to vector<16x8x128xf32>
    %63 = arith.mulf %56, %62 : vector<16x8x128xf32>
    "tpu.trace_start"() <{level = 10 : i32, message = "bpn,bdn->bpd"}> : () -> ()
    %cst_42 = arith.constant dense<0.000000e+00> : vector<16x8x8xf32>
    %64 = tpu.matmul %63, %43, %cst_42 {dimension_numbers = #tpu.dot_dimension_numbers<[2], [2], [1], [1], [0, 0, 0, 1, 1, 1], [0], [0]>} : vector<16x8x128xf32>, vector<16x8x128xf32>, vector<16x8x8xf32> -> vector<16x8x8xf32>
    "tpu.trace_stop"() : () -> ()
    %65 = vector.extract_strided_slice %11 {offsets = [0, 0, 16], sizes = [16, 8, 8], strides = [1, 1, 1]} : vector<16x8x32xf32> to vector<16x8x8xf32>
    %c0_43 = arith.constant 0 : index
    %c2 = arith.constant 2 : index
    %c0_44 = arith.constant 0 : index
    %c0_45 = arith.constant 0 : index
    %66 = vector.load %arg3[%c0_43, %c2, %c0_44, %c0_45] : memref<16x4x8x128xf32, #tpu.memory_space<vmem>>, vector<16x1x8x128xf32>
    %67 = vector.shape_cast %66 : vector<16x1x8x128xf32> to vector<16x8x128xf32>
    %c0_46 = arith.constant 0 : index
    %c2_47 = arith.constant 2 : index
    %c0_48 = arith.constant 0 : index
    %c0_49 = arith.constant 0 : index
    %68 = vector.load %arg4[%c0_46, %c2_47, %c0_48, %c0_49] : memref<16x4x8x128xf32, #tpu.memory_space<vmem>>, vector<16x1x8x128xf32>
    %69 = vector.shape_cast %68 : vector<16x1x8x128xf32> to vector<16x8x128xf32>
    "tpu.trace_start"() <{level = 10 : i32, message = "bpd,bdn->bpn"}> : () -> ()
    %cst_50 = arith.constant dense<0.000000e+00> : vector<16x8x128xf32>
    %70 = tpu.matmul %65, %67, %cst_50 {dimension_numbers = #tpu.dot_dimension_numbers<[2], [1], [1], [2], [0, 0, 0, 1, 1, 2], [0], [0]>} : vector<16x8x8xf32>, vector<16x8x128xf32>, vector<16x8x128xf32> -> vector<16x8x128xf32>
    "tpu.trace_stop"() : () -> ()
    %cst_51 = arith.constant 0.353553385 : f32
    %71 = vector.broadcast %cst_51 : f32 to vector<16x8x128xf32>
    %72 = arith.mulf %70, %71 : vector<16x8x128xf32>
    %73 = arith.addf %72, %12 : vector<16x8x128xf32>
    %cst_52 = arith.constant dense<0xFF800000> : vector<16x8xf32>
    %74 = vector.multi_reduction <maximumf>, %73, %cst_52 [2] : vector<16x8x128xf32> to vector<16x8xf32>
    %75 = vector.shape_cast %74 : vector<16x8xf32> to vector<16x8x1xf32>
    %cst_53 = arith.constant 0xFF800000 : f32
    %76 = vector.broadcast %cst_53 : f32 to vector<16x8x1xf32>
    %77 = arith.cmpf oeq, %75, %76 : vector<16x8x1xf32>
    %cst_54 = arith.constant 0.000000e+00 : f32
    %78 = vector.broadcast %cst_54 : f32 to vector<16x8x1xf32>
    %79 = arith.select %77, %78, %75 : vector<16x8x1xi1>, vector<16x8x1xf32>
    %80 = vector.broadcast %79 : vector<16x8x1xf32> to vector<16x8x128xf32>
    %81 = arith.subf %73, %80 : vector<16x8x128xf32>
    %82 = math.exp %81 : vector<16x8x128xf32>
    %cst_55 = arith.constant dense<0.000000e+00> : vector<16x8xf32>
    %83 = vector.multi_reduction <add>, %82, %cst_55 [2] : vector<16x8x128xf32> to vector<16x8xf32>
    %84 = vector.shape_cast %83 : vector<16x8xf32> to vector<16x8x1xf32>
    %cst_56 = arith.constant 1.000000e-30 : f32
    %85 = vector.broadcast %cst_56 : f32 to vector<16x8x1xf32>
    %86 = arith.maximumf %84, %85 : vector<16x8x1xf32>
    %87 = tpu.reciprocal %86 {approx = true} : vector<16x8x1xf32> -> vector<16x8x1xf32>
    %88 = vector.broadcast %87 : vector<16x8x1xf32> to vector<16x8x128xf32>
    %89 = arith.mulf %82, %88 : vector<16x8x128xf32>
    "tpu.trace_start"() <{level = 10 : i32, message = "bpn,bdn->bpd"}> : () -> ()
    %cst_57 = arith.constant dense<0.000000e+00> : vector<16x8x8xf32>
    %90 = tpu.matmul %89, %69, %cst_57 {dimension_numbers = #tpu.dot_dimension_numbers<[2], [2], [1], [1], [0, 0, 0, 1, 1, 1], [0], [0]>} : vector<16x8x128xf32>, vector<16x8x128xf32>, vector<16x8x8xf32> -> vector<16x8x8xf32>
    "tpu.trace_stop"() : () -> ()
    %91 = vector.extract_strided_slice %11 {offsets = [0, 0, 24], sizes = [16, 8, 8], strides = [1, 1, 1]} : vector<16x8x32xf32> to vector<16x8x8xf32>
    %c0_58 = arith.constant 0 : index
    %c3 = arith.constant 3 : index
    %c0_59 = arith.constant 0 : index
    %c0_60 = arith.constant 0 : index
    %92 = vector.load %arg3[%c0_58, %c3, %c0_59, %c0_60] : memref<16x4x8x128xf32, #tpu.memory_space<vmem>>, vector<16x1x8x128xf32>
    %93 = vector.shape_cast %92 : vector<16x1x8x128xf32> to vector<16x8x128xf32>
    %c0_61 = arith.constant 0 : index
    %c3_62 = arith.constant 3 : index
    %c0_63 = arith.constant 0 : index
    %c0_64 = arith.constant 0 : index
    %94 = vector.load %arg4[%c0_61, %c3_62, %c0_63, %c0_64] : memref<16x4x8x128xf32, #tpu.memory_space<vmem>>, vector<16x1x8x128xf32>
    %95 = vector.shape_cast %94 : vector<16x1x8x128xf32> to vector<16x8x128xf32>
    "tpu.trace_start"() <{level = 10 : i32, message = "bpd,bdn->bpn"}> : () -> ()
    %cst_65 = arith.constant dense<0.000000e+00> : vector<16x8x128xf32>
    %96 = tpu.matmul %91, %93, %cst_65 {dimension_numbers = #tpu.dot_dimension_numbers<[2], [1], [1], [2], [0, 0, 0, 1, 1, 2], [0], [0]>} : vector<16x8x8xf32>, vector<16x8x128xf32>, vector<16x8x128xf32> -> vector<16x8x128xf32>
    "tpu.trace_stop"() : () -> ()
    %cst_66 = arith.constant 0.353553385 : f32
    %97 = vector.broadcast %cst_66 : f32 to vector<16x8x128xf32>
    %98 = arith.mulf %96, %97 : vector<16x8x128xf32>
    %99 = arith.addf %98, %12 : vector<16x8x128xf32>
    %cst_67 = arith.constant dense<0xFF800000> : vector<16x8xf32>
    %100 = vector.multi_reduction <maximumf>, %99, %cst_67 [2] : vector<16x8x128xf32> to vector<16x8xf32>
    %101 = vector.shape_cast %100 : vector<16x8xf32> to vector<16x8x1xf32>
    %cst_68 = arith.constant 0xFF800000 : f32
    %102 = vector.broadcast %cst_68 : f32 to vector<16x8x1xf32>
    %103 = arith.cmpf oeq, %101, %102 : vector<16x8x1xf32>
    %cst_69 = arith.constant 0.000000e+00 : f32
    %104 = vector.broadcast %cst_69 : f32 to vector<16x8x1xf32>
    %105 = arith.select %103, %104, %101 : vector<16x8x1xi1>, vector<16x8x1xf32>
    %106 = vector.broadcast %105 : vector<16x8x1xf32> to vector<16x8x128xf32>
    %107 = arith.subf %99, %106 : vector<16x8x128xf32>
    %108 = math.exp %107 : vector<16x8x128xf32>
    %cst_70 = arith.constant dense<0.000000e+00> : vector<16x8xf32>
    %109 = vector.multi_reduction <add>, %108, %cst_70 [2] : vector<16x8x128xf32> to vector<16x8xf32>
    %110 = vector.shape_cast %109 : vector<16x8xf32> to vector<16x8x1xf32>
    %cst_71 = arith.constant 1.000000e-30 : f32
    %111 = vector.broadcast %cst_71 : f32 to vector<16x8x1xf32>
    %112 = arith.maximumf %110, %111 : vector<16x8x1xf32>
    %113 = tpu.reciprocal %112 {approx = true} : vector<16x8x1xf32> -> vector<16x8x1xf32>
    %114 = vector.broadcast %113 : vector<16x8x1xf32> to vector<16x8x128xf32>
    %115 = arith.mulf %108, %114 : vector<16x8x128xf32>
    "tpu.trace_start"() <{level = 10 : i32, message = "bpn,bdn->bpd"}> : () -> ()
    %cst_72 = arith.constant dense<0.000000e+00> : vector<16x8x8xf32>
    %116 = tpu.matmul %115, %95, %cst_72 {dimension_numbers = #tpu.dot_dimension_numbers<[2], [2], [1], [1], [0, 0, 0, 1, 1, 1], [0], [0]>} : vector<16x8x128xf32>, vector<16x8x128xf32>, vector<16x8x8xf32> -> vector<16x8x8xf32>
    "tpu.trace_stop"() : () -> ()
    %117 = tpu.concatenate %38, %64, %90, %116 in 2 : vector<16x8x8xf32>, vector<16x8x8xf32>, vector<16x8x8xf32>, vector<16x8x8xf32> -> vector<16x8x32xf32>
    %118 = vector.shape_cast %117 : vector<16x8x32xf32> to vector<128x32xf32>
    %c0_73 = arith.constant 0 : index
    %c0_74 = arith.constant 0 : index
    %119 = vector.load %arg9[%c0_73, %c0_74] : memref<32x32xf32, #tpu.memory_space<vmem>>, vector<32x32xf32>
    %cst_75 = arith.constant dense<0.000000e+00> : vector<128x32xf32>
    %120 = tpu.matmul %118, %119, %cst_75 {dimension_numbers = #tpu.dot_dimension_numbers<[1], [0], [0], [1], [0, 0, 1, 1], [], []>} : vector<128x32xf32>, vector<32x32xf32>, vector<128x32xf32> -> vector<128x32xf32>
    %c0_76 = arith.constant 0 : index
    %c0_77 = arith.constant 0 : index
    %121 = vector.load %arg10[%c0_76, %c0_77] : memref<1x32xf32, #tpu.memory_space<vmem>>, vector<1x32xf32>
    %122 = vector.broadcast %121 : vector<1x32xf32> to vector<128x32xf32>
    %123 = arith.addf %120, %122 : vector<128x32xf32>
    %124 = vector.shape_cast %123 : vector<128x32xf32> to vector<16x8x32xf32>
    %c0_78 = arith.constant 0 : index
    %c0_79 = arith.constant 0 : index
    %c0_80 = arith.constant 0 : index
    %125 = vector.load %arg5[%c0_78, %c0_79, %c0_80] : memref<16x32x128xf32, #tpu.memory_space<vmem>>, vector<16x32x128xf32>
    "tpu.trace_start"() <{level = 10 : i32, message = "bpe,ben->bpn"}> : () -> ()
    %cst_81 = arith.constant dense<0.000000e+00> : vector<16x8x128xf32>
    %126 = tpu.matmul %124, %125, %cst_81 {dimension_numbers = #tpu.dot_dimension_numbers<[2], [1], [1], [2], [0, 0, 0, 1, 1, 2], [0], [0]>} : vector<16x8x32xf32>, vector<16x32x128xf32>, vector<16x8x128xf32> -> vector<16x8x128xf32>
    "tpu.trace_stop"() : () -> ()
    %cst_82 = arith.constant 0.176776692 : f32
    %127 = vector.broadcast %cst_82 : f32 to vector<16x8x128xf32>
    %128 = arith.mulf %126, %127 : vector<16x8x128xf32>
    %129 = math.tanh %128 : vector<16x8x128xf32>
    %cst_83 = arith.constant 1.000000e+01 : f32
    %130 = vector.broadcast %cst_83 : f32 to vector<16x8x128xf32>
    %131 = arith.mulf %130, %129 : vector<16x8x128xf32>
    %132 = arith.addf %131, %12 : vector<16x8x128xf32>
    %cst_84 = arith.constant dense<0xFF800000> : vector<16x8xf32>
    %133 = vector.multi_reduction <maximumf>, %132, %cst_84 [2] : vector<16x8x128xf32> to vector<16x8xf32>
    %134 = vector.shape_cast %133 : vector<16x8xf32> to vector<16x8x1xf32>
    %cst_85 = arith.constant 0xFF800000 : f32
    %135 = vector.broadcast %cst_85 : f32 to vector<16x8x1xf32>
    %136 = arith.cmpf oeq, %134, %135 : vector<16x8x1xf32>
    %cst_86 = arith.constant 0.000000e+00 : f32
    %137 = vector.broadcast %cst_86 : f32 to vector<16x8x1xf32>
    %138 = arith.select %136, %137, %134 : vector<16x8x1xi1>, vector<16x8x1xf32>
    %139 = vector.broadcast %138 : vector<16x8x1xf32> to vector<16x8x128xf32>
    %140 = arith.subf %132, %139 : vector<16x8x128xf32>
    %141 = math.exp %140 : vector<16x8x128xf32>
    %cst_87 = arith.constant dense<0.000000e+00> : vector<16x8xf32>
    %142 = vector.multi_reduction <add>, %141, %cst_87 [2] : vector<16x8x128xf32> to vector<16x8xf32>
    %143 = vector.shape_cast %142 : vector<16x8xf32> to vector<16x8x1xf32>
    %cst_88 = arith.constant 1.000000e-30 : f32
    %144 = vector.broadcast %cst_88 : f32 to vector<16x8x1xf32>
    %145 = arith.maximumf %143, %144 : vector<16x8x1xf32>
    %146 = vector.broadcast %145 : vector<16x8x1xf32> to vector<16x8x128xf32>
    %147 = arith.divf %141, %146 : vector<16x8x128xf32>
    %c0_89 = arith.constant 0 : index
    %c0_90 = arith.constant 0 : index
    %c0_91 = arith.constant 0 : index
    %148 = vector.load %arg11[%c0_89, %c0_90, %c0_91] : memref<16x8x128xf32, #tpu.memory_space<vmem>>, vector<16x8x128xf32>
    tpu.vector_store %arg11[%c0_89, %c0_90, %c0_91], %147 {strides = array<i32>} : memref<16x8x128xf32, #tpu.memory_space<vmem>>, vector<16x8x128xf32>,
    return
  }
  func.func @transform_0(%arg0: i32) -> (i32, i32, i32) {
    %c0_i32 = arith.constant 0 : i32
    %c0_i32_0 = arith.constant 0 : i32
    %c0_i32_1 = arith.constant 0 : i32
    return %arg0, %c0_i32, %c0_i32_0 : i32, i32, i32
  }
  func.func @transform_1(%arg0: i32) -> (i32, i32, i32) {
    %c0_i32 = arith.constant 0 : i32
    %c0_i32_0 = arith.constant 0 : i32
    %c0_i32_1 = arith.constant 0 : i32
    return %arg0, %c0_i32, %c0_i32_0 : i32, i32, i32
  }
  func.func @transform_2(%arg0: i32) -> (i32, i32, i32, i32) {
    %c0_i32 = arith.constant 0 : i32
    %c0_i32_0 = arith.constant 0 : i32
    %c0_i32_1 = arith.constant 0 : i32
    %c0_i32_2 = arith.constant 0 : i32
    return %arg0, %c0_i32, %c0_i32_0, %c0_i32_1 : i32, i32, i32, i32
  }
  func.func @transform_3(%arg0: i32) -> (i32, i32, i32, i32) {
    %c0_i32 = arith.constant 0 : i32
    %c0_i32_0 = arith.constant 0 : i32
    %c0_i32_1 = arith.constant 0 : i32
    %c0_i32_2 = arith.constant 0 : i32
    return %arg0, %c0_i32, %c0_i32_0, %c0_i32_1 : i32, i32, i32, i32
  }
  func.func @transform_4(%arg0: i32) -> (i32, i32, i32) {
    %c0_i32 = arith.constant 0 : i32
    %c0_i32_0 = arith.constant 0 : i32
    %c0_i32_1 = arith.constant 0 : i32
    return %arg0, %c0_i32, %c0_i32_0 : i32, i32, i32
  }
  func.func @transform_5(%arg0: i32) -> (i32, i32, i32) {
    %c0_i32 = arith.constant 0 : i32
    %c0_i32_0 = arith.constant 0 : i32
    %c0_i32_1 = arith.constant 0 : i32
    return %arg0, %c0_i32, %c0_i32_0 : i32, i32, i32
  }
  func.func @transform_6(%arg0: i32) -> (i32, i32) {
    %c0_i32 = arith.constant 0 : i32
    %c0_i32_0 = arith.constant 0 : i32
    %c0_i32_1 = arith.constant 0 : i32
    return %c0_i32, %c0_i32_0 : i32, i32
  }
  func.func @transform_7(%arg0: i32) -> (i32, i32) {
    %c0_i32 = arith.constant 0 : i32
    %c0_i32_0 = arith.constant 0 : i32
    %c0_i32_1 = arith.constant 0 : i32
    return %c0_i32, %c0_i32_0 : i32, i32
  }
  func.func @transform_8(%arg0: i32) -> (i32, i32) {
    %c0_i32 = arith.constant 0 : i32
    %c0_i32_0 = arith.constant 0 : i32
    %c0_i32_1 = arith.constant 0 : i32
    return %c0_i32, %c0_i32_0 : i32, i32
  }
  func.func @transform_9(%arg0: i32) -> (i32, i32) {
    %c0_i32 = arith.constant 0 : i32
    %c0_i32_0 = arith.constant 0 : i32
    %c0_i32_1 = arith.constant 0 : i32
    return %c0_i32, %c0_i32_0 : i32, i32
  }
  func.func @transform_10(%arg0: i32) -> (i32, i32, i32) {
    %c0_i32 = arith.constant 0 : i32
    %c0_i32_0 = arith.constant 0 : i32
    %c0_i32_1 = arith.constant 0 : i32
    return %arg0, %c0_i32, %c0_i32_0 : i32, i32, i32
  }
}

</mosaic_0001>

<bundles_post_ra>
// kernel: tpu_custom_call.1
= control target key start
LH: loop header
LB: loop body
LE: loop exit
PB: predicated region body
PF: predicated region fallthrough
CT: control target
= control target key end

     0   :  { %15 = vsyncpa [#allocation3], 0  ;;  %s16784_s0 = inlined_call_operand.hbm [shape: f32[16,8,32], index: 0, kind: input, shape index: {}]   ;;  %s16785_s1 = inlined_call_operand.hbm [shape: f32[16,8,1], index: 1, kind: input, shape index: {}]   ;;  %s16786_s2 = inlined_call_operand.hbm [shape: f32[16,4,8,128], index: 2, kind: input, shape index: {}]   ;;  %s16787_s3 = inlined_call_operand.hbm [shape: f32[16,4,8,128], index: 3, kind: input, shape index: {}]   ;;  %s16788_s4 = inlined_call_operand.hbm [shape: f32[16,32,128], index: 4, kind: input, shape index: {}]   ;;  %s16789_s5 = inlined_call_operand.hbm [shape: f32[16,8,128], index: 5, kind: input, shape index: {}]   ;;  %s16790_s6 = inlined_call_operand.hbm [shape: f32[32,32], index: 6, kind: input, shape index: {}]   ;;  %s16791_s7 = inlined_call_operand.hbm [shape: f32[1,32], index: 7, kind: input, shape index: {}]   ;;  %s16792_s8 = inlined_call_operand.hbm [shape: f32[32,32], index: 8, kind: input, shape index: {}]   ;;  %s16793_s9 = inlined_call_operand.hbm [shape: f32[1,32], index: 9, kind: input, shape index: {}]   ;;  %s16794_s10 = inlined_call_operand.hbm [shape: f32[16,8,128], index: 10, kind: output, shape index: {}]  }
   0x1   :  { %16 = vsyncpa [#allocation6], 0 }
   0x2   :  { %17 = vsyncpa [#allocation9], 0 }
   0x3   :  { %18 = vsyncpa [#allocation12], 0 }
   0x4   :  { %19 = vsyncpa [#allocation15], 0 }
   0x5   :  { %20 = vsyncpa [#allocation18], 0 }
   0x6   :  { %21 = vsyncpa [#allocation4], 0  ;;  %s14884_s13 = smov [#allocation5]   ;;  %s14885_s15 = smov [#allocation8]  }
   0x7   :  { %s39_s14 = sshll.u32 %s14884_s13, 4  ;;  %s63_s16 = sshll.u32 %s14885_s15, 4  ;;  %s40_s14 = int_to_ptr.vmem [resolvable:$true] %s39_s14  ;;  %s14961_s16 = int_to_ptr.vmem [resolvable:$true] %s63_s16 }
   0x8   :  { %s14628_s19 = scalar_lea.hbm %s16785_s1, 2048 }
   0x9   :  { %p14629_p0 = scmp.ne.s32.totalorder %s16785_s1, %s14628_s19  ;;  %p14632_p1 = scmp.lt.u32.totalorder %s14628_s19, %s16785_s1 }
   0xb   :  { %p14634_p2 = pnand %p14632_p1, %p14629_p0 }
   0xd   :  { %14637 = shalt.err (!%p14634_p2)
}
   0xe   :  { %s14638_s24 = scalar_lea.vmem %s40_s14, 2048  ;;  %p14643_p4 = scmp.lt.s32.totalorder %s40_s14, %s40_s14 }
   0xf   :  { %p14639_p3 = scmp.ne.s32.totalorder %s40_s14, %s14638_s24  ;;  %p14644_p5 = scmp.lt.s32.totalorder %s14638_s24, %s14638_s24 }
  0x11   :  { %p14645_p6 = por %p14644_p5, %p14643_p4 }
  0x13   :  { %p14646_p7 = pnand %p14645_p6, %p14639_p3 }
  0x15   :  { %14649 = shalt.err (!%p14646_p7)
}
  0x16   :  { %s14886_s25 = smov 128   ;;  %s14887_s26 = smov 8  }
  0x17   :  { %45 = dma.hbm_to_vmem [thread:$0]  %s16785_s1, 2048, %s40_s14, [#allocation6], %s14886_s25, %s14886_s25, %s14887_s26  }
  0x18   :  { %s14650_s11 = scalar_lea.hbm %s16787_s3, 8192 }
  0x19   :  { %p14651_p8 = scmp.ne.s32.totalorder %s16787_s3, %s14650_s11  ;;  %p14654_p9 = scmp.lt.u32.totalorder %s14650_s11, %s16787_s3 }
  0x1b   :  { %p14656_p10 = pnand %p14654_p9, %p14651_p8 }
  0x1d   :  { %14659 = shalt.err (!%p14656_p10)
}
  0x1e   :  { %s14660_s18 = scalar_lea.vmem %s14961_s16, 8192  ;;  %p14665_p12 = scmp.lt.s32.totalorder %s14961_s16, %s14961_s16 }
  0x1f   :  { %p14661_p11 = scmp.ne.s32.totalorder %s14961_s16, %s14660_s18  ;;  %p14666_p13 = scmp.lt.s32.totalorder %s14660_s18, %s14660_s18 }
  0x21   :  { %p14667_p0 = por %p14666_p13, %p14665_p12 }
  0x23   :  { %p14668_p1 = pnand %p14667_p0, %p14661_p11 }
  0x25   :  { %14671 = shalt.err (!%p14668_p1)
}
  0x26   :  { %69 = dma.hbm_to_vmem [thread:$0]  %s16787_s3, 8192, %s14961_s16, [#allocation9], %s14886_s25, %s14886_s25, %s14887_s26  }
  0x27   :  { %s14888_s19 = smov [#allocation11]   ;;  %s14889_s21 = smov [#allocation14]  }
  0x28   :  { %s87_s20 = sshll.u32 %s14888_s19, 4  ;;  %s112_s22 = sshll.u32 %s14889_s21, 4  ;;  %s88_s20 = int_to_ptr.vmem [resolvable:$true] %s87_s20  ;;  %s113_s22 = int_to_ptr.vmem [resolvable:$true] %s112_s22 }
  0x29   :  { %s14672_s27 = scalar_lea.hbm %s16789_s5, 2048 }
  0x2a   :  { %p14673_p2 = scmp.ne.s32.totalorder %s16789_s5, %s14672_s27  ;;  %p14676_p3 = scmp.lt.u32.totalorder %s14672_s27, %s16789_s5 }
  0x2c   :  { %p14678_p4 = pnand %p14676_p3, %p14673_p2 }
  0x2e   :  { %14681 = shalt.err (!%p14678_p4)
}
  0x2f   :  { %s14682_s3 = scalar_lea.vmem %s88_s20, 2048  ;;  %p14687_p6 = scmp.lt.s32.totalorder %s88_s20, %s88_s20 }
  0x30   :  { %p14683_p5 = scmp.ne.s32.totalorder %s88_s20, %s14682_s3  ;;  %p14688_p7 = scmp.lt.s32.totalorder %s14682_s3, %s14682_s3 }
  0x32   :  { %p14689_p8 = por %p14688_p7, %p14687_p6 }
  0x34   :  { %p14690_p9 = pnand %p14689_p8, %p14683_p5 }
  0x36   :  { %14693 = shalt.err (!%p14690_p9)
}
  0x37   :  { %93 = dma.hbm_to_vmem [thread:$0]  %s16789_s5, 2048, %s88_s20, [#allocation12], %s14886_s25, %s14886_s25, %s14887_s26  }
  0x38   :  { %s14694_s17 = scalar_lea.hbm %s16791_s7, 16 }
  0x39   :  { %p14695_p10 = scmp.ne.s32.totalorder %s16791_s7, %s14694_s17  ;;  %p14698_p11 = scmp.lt.u32.totalorder %s14694_s17, %s16791_s7 }
  0x3b   :  { %p14700_p12 = pnand %p14698_p11, %p14695_p10 }
  0x3d   :  { %14703 = shalt.err (!%p14700_p12)
}
  0x3e   :  { %s14704_s21 = scalar_lea.vmem %s113_s22, 16  ;;  %s14708_s23 = scalar_lea.vmem %s113_s22, 32 }
  0x3f   :  { %p14705_p13 = scmp.ne.s32.totalorder %s113_s22, %s14704_s21  ;;  %p14709_p0 = scmp.lt.s32.totalorder %s113_s22, %s113_s22 }
  0x40   :  { %p14710_p1 = scmp.lt.s32.totalorder %s14708_s23, %s14704_s21 }
  0x42   :  { %p14711_p2 = por %p14710_p1, %p14709_p0 }
  0x44   :  { %p14712_p3 = pnand %p14711_p2, %p14705_p13 }
  0x46   :  { %14715 = shalt.err (!%p14712_p3)
}
  0x47   :  { %115 = dma.hbm_to_vmem [thread:$0]  %s16791_s7, 16, %s113_s22, [#allocation15]  }
  0x48   :  { %s14890_s24 = smov [#allocation2]   ;;  %s14891_s28 = smov [#allocation7]  }
  0x49   :  { %s27_s27 = sshll.u32 %s14890_s24, 4  ;;  %s51_s29 = sshll.u32 %s14891_s28, 4  ;;  %s28_s27 = int_to_ptr.vmem [resolvable:$true] %s27_s27  ;;  %s15025_s29 = int_to_ptr.vmem [resolvable:$true] %s51_s29 }
  0x4a   :  { %s14716_s3 = scalar_lea.hbm %s16784_s0, 2048 }
  0x4b   :  { %p14717_p4 = scmp.ne.s32.totalorder %s16784_s0, %s14716_s3  ;;  %p14720_p5 = scmp.lt.u32.totalorder %s14716_s3, %s16784_s0 }
  0x4d   :  { %p14722_p6 = pnand %p14720_p5, %p14717_p4 }
  0x4f   :  { %14725 = shalt.err (!%p14722_p6)
}
  0x50   :  { %s14726_s7 = scalar_lea.vmem %s28_s27, 2048  ;;  %p14731_p8 = scmp.lt.s32.totalorder %s28_s27, %s28_s27 }
  0x51   :  { %p14727_p7 = scmp.ne.s32.totalorder %s28_s27, %s14726_s7  ;;  %p14732_p9 = scmp.lt.s32.totalorder %s14726_s7, %s14726_s7 }
  0x53   :  { %p14733_p10 = por %p14732_p9, %p14731_p8 }
  0x55   :  { %p14734_p11 = pnand %p14733_p10, %p14727_p7 }
  0x57   :  { %14737 = shalt.err (!%p14734_p11)
}
  0x58   :  { %33 = dma.hbm_to_vmem [thread:$0]  %s16784_s0, 2048, %s28_s27, [#allocation3], %s14886_s25, %s14886_s25, %s14887_s26  }
  0x59   :  { %s14738_s14 = scalar_lea.hbm %s16786_s2, 8192 }
  0x5a   :  { %p14739_p12 = scmp.ne.s32.totalorder %s16786_s2, %s14738_s14  ;;  %p14742_p13 = scmp.lt.u32.totalorder %s14738_s14, %s16786_s2 }
  0x5c   :  { %p14744_p0 = pnand %p14742_p13, %p14739_p12 }
  0x5e   :  { %14747 = shalt.err (!%p14744_p0)
}
  0x5f   :  { %s14748_s20 = scalar_lea.vmem %s15025_s29, 8192  ;;  %p14753_p2 = scmp.lt.s32.totalorder %s15025_s29, %s15025_s29 }
  0x60   :  { %p14749_p1 = scmp.ne.s32.totalorder %s15025_s29, %s14748_s20  ;;  %p14754_p3 = scmp.lt.s32.totalorder %s14748_s20, %s14748_s20 }
  0x62   :  { %p14755_p4 = por %p14754_p3, %p14753_p2 }
  0x64   :  { %p14756_p5 = pnand %p14755_p4, %p14749_p1 }
  0x66   :  { %14759 = shalt.err (!%p14756_p5)
}
  0x67   :  { %57 = dma.hbm_to_vmem [thread:$0]  %s16786_s2, 8192, %s15025_s29, [#allocation6], %s14886_s25, %s14886_s25, %s14887_s26  }
  0x68   :  { %s14892_s27 = smov [#allocation10]   ;;  %s14893_s30 = smov [#allocation13]  }
  0x69   :  { %s75_s28 = sshll.u32 %s14892_s27, 4  ;;  %s99_s11 = sshll.u32 %s14893_s30, 4  ;;  %s76_s28 = int_to_ptr.vmem [resolvable:$true] %s75_s28  ;;  %s15062_s11 = int_to_ptr.vmem [resolvable:$true] %s99_s11 }
  0x6a   :  { %s14760_s12 = scalar_lea.hbm %s16788_s4, 8192 }
  0x6b   :  { %p14761_p6 = scmp.ne.s32.totalorder %s16788_s4, %s14760_s12  ;;  %p14764_p7 = scmp.lt.u32.totalorder %s14760_s12, %s16788_s4 }
  0x6d   :  { %p14766_p8 = pnand %p14764_p7, %p14761_p6 }
  0x6f   :  { %14769 = shalt.err (!%p14766_p8)
}
  0x70   :  { %s14770_s2 = scalar_lea.vmem %s76_s28, 8192  ;;  %p14775_p10 = scmp.lt.s32.totalorder %s76_s28, %s76_s28 }
  0x71   :  { %p14771_p9 = scmp.ne.s32.totalorder %s76_s28, %s14770_s2  ;;  %p14776_p11 = scmp.lt.s32.totalorder %s14770_s2, %s14770_s2 }
  0x73   :  { %p14777_p12 = por %p14776_p11, %p14775_p10 }
  0x75   :  { %p14778_p13 = pnand %p14777_p12, %p14771_p9 }
  0x77   :  { %14781 = shalt.err (!%p14778_p13)
}
  0x78   :  { %81 = dma.hbm_to_vmem [thread:$0]  %s16788_s4, 8192, %s76_s28, [#allocation9], %s14886_s25, %s14886_s25, %s14887_s26  }
  0x79   :  { %s14782_s14 = scalar_lea.hbm %s16790_s6, 512 }
  0x7a   :  { %p14783_p0 = scmp.ne.s32.totalorder %s16790_s6, %s14782_s14  ;;  %p14786_p1 = scmp.lt.u32.totalorder %s14782_s14, %s16790_s6 }
  0x7c   :  { %p14788_p2 = pnand %p14786_p1, %p14783_p0 }
  0x7e   :  { %14791 = shalt.err (!%p14788_p2)
}
  0x7f   :  { %s14792_s20 = scalar_lea.vmem %s15062_s11, 512  ;;  %p14797_p4 = scmp.lt.s32.totalorder %s15062_s11, %s15062_s11 }
  0x80   :  { %p14793_p3 = scmp.ne.s32.totalorder %s15062_s11, %s14792_s20  ;;  %p14798_p5 = scmp.lt.s32.totalorder %s14792_s20, %s14792_s20 }
  0x82   :  { %p14799_p6 = por %p14798_p5, %p14797_p4 }
  0x84   :  { %p14800_p7 = pnand %p14799_p6, %p14793_p3 }
  0x86   :  { %14803 = shalt.err (!%p14800_p7)
}
  0x87   :  { %105 = dma.hbm_to_vmem [thread:$0]  %s16790_s6, 512, %s15062_s11, [#allocation12], %s14886_s25, %s14886_s25, %s14887_s26  }
  0x88   :  { %s14894_s24 = smov [#allocation16]   ;;  %s14895_s28 = smov [#allocation17]  }
  0x89   :  { %s121_s27 = sshll.u32 %s14894_s24, 4  ;;  %s134_s30 = sshll.u32 %s14895_s28, 4  ;;  %s122_s27 = int_to_ptr.vmem [resolvable:$true] %s121_s27  ;;  %s135_s30 = int_to_ptr.vmem [resolvable:$true] %s134_s30 }
  0x8a   :  { %s14804_s12 = scalar_lea.hbm %s16792_s8, 512 }
  0x8b   :  { %p14805_p8 = scmp.ne.s32.totalorder %s16792_s8, %s14804_s12  ;;  %p14808_p9 = scmp.lt.u32.totalorder %s14804_s12, %s16792_s8 }
  0x8d   :  { %p14810_p10 = pnand %p14808_p9, %p14805_p8 }
  0x8f   :  { %14813 = shalt.err (!%p14810_p10)
}
  0x90   :  { %s14814_s6 = scalar_lea.vmem %s122_s27, 512  ;;  %p14819_p12 = scmp.lt.s32.totalorder %s122_s27, %s122_s27 }
  0x91   :  { %p14815_p11 = scmp.ne.s32.totalorder %s122_s27, %s14814_s6  ;;  %p14820_p13 = scmp.lt.s32.totalorder %s14814_s6, %s14814_s6 }
  0x93   :  { %p14821_p0 = por %p14820_p13, %p14819_p12 }
  0x95   :  { %p14822_p1 = pnand %p14821_p0, %p14815_p11 }
  0x97   :  { %14825 = shalt.err (!%p14822_p1)
}
  0x98   :  { %127 = dma.hbm_to_vmem [thread:$0]  %s16792_s8, 512, %s122_s27, [#allocation15], %s14886_s25, %s14886_s25, %s14887_s26  }
  0x99   :  { %s14826_s18 = scalar_lea.hbm %s16793_s9, 16 }
  0x9a   :  { %p14827_p2 = scmp.ne.s32.totalorder %s16793_s9, %s14826_s18  ;;  %p14830_p3 = scmp.lt.u32.totalorder %s14826_s18, %s16793_s9 }
  0x9c   :  { %p14832_p4 = pnand %p14830_p3, %p14827_p2 }
  0x9e   :  { %14835 = shalt.err (!%p14832_p4)
}
  0x9f   :  { %s14836_s23 = scalar_lea.vmem %s135_s30, 16  ;;  %s14840_s5 = scalar_lea.vmem %s135_s30, 32 }
  0xa0   :  { %p14837_p5 = scmp.ne.s32.totalorder %s135_s30, %s14836_s23  ;;  %p14841_p6 = scmp.lt.s32.totalorder %s135_s30, %s135_s30 }
  0xa1   :  { %p14842_p7 = scmp.lt.s32.totalorder %s14840_s5, %s14836_s23 }
  0xa3   :  { %p14843_p8 = por %p14842_p7, %p14841_p6 }
  0xa5   :  { %p14844_p9 = pnand %p14843_p8, %p14837_p5 }
  0xa7   :  { %14847 = shalt.err (!%p14844_p9)
}
  0xa8   :  { %137 = dma.hbm_to_vmem [thread:$0]  %s16793_s9, 16, %s135_s30, [#allocation18]  }
  0xa9   :  { %14870 = dma.done.wait [#allocation3], 2048  }
  0xaa   :  { %14871 = vsyncadd [#allocation3], 4294965248 }
  0xab   :  { %14872 = dma.done.wait [#allocation6], 10240  }
  0xac   :  { %14873 = vsyncadd [#allocation6], 4294957056 }
  0xad   :  { %14874 = dma.done.wait [#allocation9], 16384  }
  0xae   :  { %14875 = vsyncadd [#allocation9], 4294950912 }
  0xaf   :  { %14876 = dma.done.wait [#allocation12], 2560  }
  0xb0   :  { %14877 = vsyncadd [#allocation12], 4294964736 }
  0xb1   :  { %14878 = dma.done.wait [#allocation15], 528  }
  0xb2   :  { %14879 = vsyncadd [#allocation15], 4294966768 }
  0xb3   :  { %14880 = dma.done.wait [#allocation18], 16  }
  0xb4   :  { %14881 = vsyncadd [#allocation18], 4294967280  ;;  %v14896_v0 = vmov 0   ;;  %vm307_vm0 = vcmask 261120   ;;  %v184_v1 = vld [vmem:[#allocation13] sm:$0xff]  ;;  %v185_v2 = vld [vmem:[#allocation13 + $0x8] sm:$0xff] }
  0xb5   :  { %14224 = vset.pattern.permute.xlu0 %v14896_v0  ;;  %14225 = vset.pattern.permute.xlu1 %v14896_v0  ;;  %v186_v3 = vld [vmem:[#allocation13 + $0x10] sm:$0xff]  ;;  %v14090_v4 = vpack.c.bf16 %v185_v2, %v184_v1  ;;  %v187_v5 = vld [vmem:[#allocation13 + $0x18] sm:$0xff]  ;;  %v168_v6 = vld [vmem:[#allocation2] sm:$0xff]  ;;  %v16795_v39 = vmov 0.0   ;;  %vm14898_vm1 = vmmov 0   ;;  %vm549_vm2 = vcmask 64512  }
  0xb6   :  { %v14094_v7 = vpack.c.bf16 %v187_v5, %v186_v3  ;;  %13218 = vmatprep.mubr.msk.f32.mxu0 %vm307_vm0, %v168_v6  ;;  %v188_v8 = vld [vmem:[#allocation5] sm:$0xff]  ;;  %v190_v9 = vld [vmem:[#allocation5 + $0x10] sm:$0xff]  ;;  %v169_v10 = vld [vmem:[#allocation2 + $0x8] sm:$0xff]  ;;  %13242 = vmatprep.subr.mxu1 %v16795_v39  ;;  %s14899_s9 = smov 120   ;;  %s14900_s4 = smov 112  }
  0xb7   :  { %14091 = vmatprep.subr.bf16.mxu0 %v14090_v4  ;;  %207 = vperm.xlu0 %14224, %v188_v8   ;;  %v189_v11 = vld [vmem:[#allocation5 + $0x8] sm:$0xff]  ;;  %v170_v12 = vld [vmem:[#allocation2 + $0x10] sm:$0xff]  ;;  %v191_v13 = vld [vmem:[#allocation5 + $0x18] sm:$0xff]  ;;  %s14901_s0 = smov 104   ;;  %s14902_s24 = smov 16  }
  0xb8   :  { %14093 = vmatpush3.bf16.msra.mxu0 %v14090_v4  ;;  %217 = vperm.xlu1 %14225, %v190_v9   ;;  %v171_v14 = vld [vmem:[#allocation2 + $0x18] sm:$0xff]  ;;  %v192_v15 = vld [vmem:[#allocation5 + $0x20] sm:$0xff]  ;;  %v193_v17 = vld [vmem:[#allocation5 + $0x28] sm:$0xff]  ;;  %s14903_s27 = smov 24   ;;  %s14905_s28 = smov [#allocation19]  }
  0xb9   :  { %14095 = vmatprep.subr.bf16.mxu0 %v14094_v7  ;;  %v172_v16 = vld [vmem:[#allocation2 + $0x20] sm:$0xff]  ;;  %v173_v18 = vld [vmem:[#allocation2 + $0x28] sm:$0xff]  ;;  %v194_v19 = vld [vmem:[#allocation5 + $0x30] sm:$0xff]  ;;  %13244 = vmatprep.mubr.msk.f32.mxu1 %vm14898_vm1, %v16795_v39  ;;  %s12703_s30 = sshll.u32 %s14905_s28, 4  ;;  %s12704_s30 = int_to_ptr.vmem [resolvable:$true] %s12703_s30 }
  0xba   :  { %v174_v20 = vld [vmem:[#allocation2 + $0x30] sm:$0xff]  ;;  %v195_v21 = vld [vmem:[#allocation5 + $0x38] sm:$0xff]  ;;  %v196_v23 = vld [vmem:[#allocation5 + $0x40] sm:$0xff]  ;;  %s14848_s3 = scalar_lea.vmem %s12704_s30, 2048  ;;  %p14853_p11 = scmp.lt.s32.totalorder %s12704_s30, %s12704_s30 }
  0xbb   :  { %212 = vperm.xlu0 %14224, %v189_v11   ;;  %v175_v22 = vld [vmem:[#allocation2 + $0x38] sm:$0xff]  ;;  %v176_v24 = vld [vmem:[#allocation2 + $0x40] sm:$0xff]  ;;  %v197_v25 = vld [vmem:[#allocation5 + $0x48] sm:$0xff]  ;;  %p14849_p10 = scmp.ne.s32.totalorder %s12704_s30, %s14848_s3  ;;  %p14854_p12 = scmp.lt.s32.totalorder %s14848_s3, %s14848_s3 }
  0xbc   :  { %14097 = vmatpush3.bf16.msra.mxu0 %v14094_v7  ;;  %222 = vperm.xlu1 %14225, %v191_v13   ;;  %v177_v26 = vld [vmem:[#allocation2 + $0x48] sm:$0xff]  ;;  %v198_v27 = vld [vmem:[#allocation5 + $0x50] sm:$0xff]  ;;  %v199_v29 = vld [vmem:[#allocation5 + $0x58] sm:$0xff] }
  0xbd   :  { %v178_v28 = vld [vmem:[#allocation2 + $0x50] sm:$0xff]  ;;  %v179_v30 = vld [vmem:[#allocation2 + $0x58] sm:$0xff]  ;;  %v200_v31 = vld [vmem:[#allocation5 + $0x60] sm:$0xff]  ;;  %13292 = vmatprep.subr.mxu0 %v16795_v39  ;;  %p14855_p13 = por %p14854_p12, %p14853_p11 }
  0xbe   :  { %v180_v32 = vld [vmem:[#allocation2 + $0x60] sm:$0xff]  ;;  %v201_v33 = vld [vmem:[#allocation5 + $0x68] sm:$0xff]  ;;  %v202_v35 = vld [vmem:[#allocation5 + $0x70] sm:$0xff] }
  0xbf   :  { %13219 = vmatmul.mubr.msk.f32.vlgmr.msra.gmra.mrb[0].mxu0 %vm307_vm0, %v169_v10  ;;  %227 = vperm.xlu0 %14224, %v192_v15   ;;  %v181_v34 = vld [vmem:[#allocation2 + $0x68] sm:$0xff]  ;;  %v182_v36 = vld [vmem:[#allocation2 + $0x70] sm:$0xff]  ;;  %v203_v37 = vld [vmem:[#allocation5 + $0x78] sm:$0xff]  ;;  %p14856_p0 = pnand %p14855_p13, %p14849_p10 }
  0xc0   :  { %13221 = vmatprep.mubr.msk.f32.mxu0 %vm307_vm0, %v170_v12  ;;  %232 = vperm.xlu1 %14225, %v193_v17   ;;  %v183_v38 = vld [vmem:[#allocation2 + $0x78] sm:$0xff]  ;;  %v517_v40 = vld [vmem:[#allocation7] sm:$0xff] }
  0xc1   :  { %13243 = vmatpush3.msra.mxu1 %v517_v40  ;;  %v527_v41 = vld [vmem:[#allocation7 + $0x140] sm:$0xff] }
  0xc2   :  { %13247 = vmatprep.subr.mxu1 %v16795_v39  ;;  %13293 = vmatpush3.msra.mxu0 %v527_v41  ;;  %v15150_v44 = vld [vmem:[#allocation14] ss:$0 sm:$0xff] }
  0xc3   :  { %13222 = vmatmul.mubr.msk.f32.gmra.mrb[2].mxu0 %vm307_vm0, %v171_v14  ;;  %237 = vperm.xlu0 %14224, %v194_v19   ;;  %v518_v52 = vld [vmem:[#allocation7 + $0x20] sm:$0xff] }
  0xc4   :  { %13224 = vmatprep.mubr.msk.f32.mxu0 %vm307_vm0, %v172_v16  ;;  %242 = vperm.xlu1 %14225, %v195_v21   ;;  %v519_v58 = vld [vmem:[#allocation7 + $0x40] sm:$0xff] }
  0xc5   :  { %13302 = vmatprep.subr.mxu0 %v16795_v39  ;;  %v520_v1 = vld [vmem:[#allocation7 + $0x60] sm:$0xff] }
  0xc6   :  { %v521_v6 = vld [vmem:[#allocation7 + $0x80] sm:$0xff] }
  0xc7   :  { %13225 = vmatmul.mubr.msk.f32.gmra.mrb[4].mxu0 %vm307_vm0, %v173_v18  ;;  %247 = vperm.xlu0 %14224, %v196_v23   ;;  %v522_v13 = vld [vmem:[#allocation7 + $0xa0] sm:$0xff] }
  0xc8   :  { %13227 = vmatprep.mubr.msk.f32.mxu0 %vm307_vm0, %v174_v20  ;;  %252 = vperm.xlu1 %14225, %v197_v25   ;;  %v523_v21 = vld [vmem:[#allocation7 + $0xc0] sm:$0xff] }
  0xc9   :  { %v525_v40 = vld [vmem:[#allocation7 + $0x100] sm:$0xff] }
  0xcb   :  { %13228 = vmatmul.mubr.msk.f32.gmra.mrb[6].mxu0 %vm307_vm0, %v175_v22  ;;  %257 = vperm.xlu0 %14224, %v198_v27   ;;  %v529_v22 = vld [vmem:[#allocation7 + $0x180] sm:$0xff] }
  0xcc   :  { %13230 = vmatprep.mubr.msk.f32.mxu0 %vm307_vm0, %v176_v24  ;;  %262 = vperm.xlu1 %14225, %v199_v29  }
  0xcf   :  { %13231 = vmatmul.mubr.msk.f32.gmra.mrb[8].mxu0 %vm307_vm0, %v177_v26  ;;  %267 = vperm.xlu0 %14224, %v200_v31  }
  0xd0   :  { %13233 = vmatprep.mubr.msk.f32.mxu0 %vm307_vm0, %v178_v28  ;;  %272 = vperm.xlu1 %14225, %v201_v33  }
  0xd3   :  { %13234 = vmatmul.mubr.msk.f32.gmra.mrb[10].mxu0 %vm307_vm0, %v179_v30  ;;  %277 = vperm.xlu0 %14224, %v202_v35   ;;  %v524_v30 = vld [vmem:[#allocation7 + $0xe0] sm:$0xff] }
  0xd4   :  { %13236 = vmatprep.mubr.msk.f32.mxu0 %vm307_vm0, %v180_v32  ;;  %282 = vperm.xlu1 %14225, %v203_v37   ;;  %v531_v32 = vld [vmem:[#allocation7 + $0x1c0] sm:$0xff] }
  0xd7   :  { %13237 = vmatmul.mubr.msk.f32.gmra.mrb[12].mxu0 %vm307_vm0, %v181_v34 }
  0xd8   :  { %13239 = vmatprep.mubr.msk.f32.mxu0 %vm307_vm0, %v182_v36 }
  0xdb   :  { %13240 = vmatmul.mubr.msk.f32.gmra.mrb[14].mxu0 %vm307_vm0, %v183_v38 }
  0xdc   :  { %13294 = vmatprep.mubr.msk.f32.mxu0 %vm14898_vm1, %v16795_v39 }
 0x136   :  { %v208_v42 = vpop.permute.xlu0 %207 }
 0x137   :  { %v291_v46 = vmul.f32 %v15150_v44, %v208_v42  ;;  %v218_v53 = vpop.permute.xlu1 %217 }
 0x138   :  { %v293_v54 = vmul.f32 %v15150_v44, %v218_v53  ;;  %v530_v53 = vld [vmem:[#allocation7 + $0x1a0] sm:$0xff] }
 0x13a   :  { %v213_v43 = vpop.permute.xlu0 %212 }
 0x13b   :  { %v292_v50 = vmul.f32 %v15150_v44, %v213_v43  ;;  %v223_v62 = vpop.permute.xlu1 %222 }
 0x13c   :  { %v294_v0 = vmul.f32 %v15150_v44, %v223_v62 }
 0x13e   :  { %v228_v45 = vpop.permute.xlu0 %227 }
 0x13f   :  { %v233_v7 = vpop.permute.xlu1 %232  ;;  %v295_v8 = vmul.f32 %v15150_v44, %v228_v45  ;;  %v526_v45 = vld [vmem:[#allocation7 + $0x120] sm:$0xff] }
 0x140   :  { %v296_v11 = vmul.f32 %v15150_v44, %v233_v7 }
 0x142   :  { %v238_v48 = vpop.permute.xlu0 %237 }
 0x143   :  { %v243_v17 = vpop.permute.xlu1 %242  ;;  %v297_v23 = vmul.f32 %v15150_v44, %v238_v48  ;;  %v528_v48 = vld [vmem:[#allocation7 + $0x160] sm:$0xff] }
 0x144   :  { %v298_v33 = vmul.f32 %v15150_v44, %v243_v17 }
 0x146   :  { %v15164_v59 = vpop.permute.xlu0 %247 }
 0x147   :  { %v253_v31 = vpop.permute.xlu1 %252  ;;  %v299_v41 = vmul.f32 %v15150_v44, %v15164_v59 }
 0x14a   :  { %v258_v3 = vpop.permute.xlu0 %257 }
 0x14b   :  { %v301_v15 = vmul.f32 %v15150_v44, %v258_v3  ;;  %v263_v42 = vpop.permute.xlu1 %262  ;;  %v502_v3 = vld [vmem:[#allocation11 + $0x8] sm:$0xff] }
 0x14e   :  { %v268_v14 = vpop.permute.xlu0 %267 }
 0x14f   :  { %v303_v24 = vmul.f32 %v15150_v44, %v268_v14 }
 0x152   :  { %v278_v26 = vpop.permute.xlu0 %277 }
 0x153   :  { %v305_v34 = vmul.f32 %v15150_v44, %v278_v26 }
 0x192   :  { %v13220_v47 = vpop.f32.mrb[0].mxu0 }
 0x193   :  { %v422_v49 = vpop.f32.mrb[1].mxu0  ;;  %v15161_v57 = vadd.f32 %v13220_v47, %v292_v50  ;;  %v302_v50 = vmul.f32 %v15150_v44, %v263_v42 }
 0x194   :  { %v15154_v51 = vadd.f32 %v422_v49, %v291_v46  ;;  %v300_v46 = vmul.f32 %v15150_v44, %v253_v31  ;;  %v273_v49 = vpop.permute.xlu1 %272 }
 0x196   :  { %13245 = vmatmul.mubr.msk.f32.vlgmr.msra.gmra.mrb[0].mxu1 %vm549_vm2, %v15154_v51  ;;  %v13223_v55 = vpop.f32.mrb[2].mxu0 }
 0x197   :  { %13248 = vmatpush3.msra.mxu1 %v518_v52  ;;  %v432_v56 = vpop.f32.mrb[3].mxu0  ;;  %13249 = vmatprep.mubr.msk.f32.mxu1 %vm14898_vm1, %v16795_v39  ;;  %v15178_v5 = vadd.f32 %v13223_v55, %v294_v0 }
 0x198   :  { %13252 = vmatprep.subr.mxu1 %v16795_v39  ;;  %v15166_v60 = vadd.f32 %v432_v56, %v293_v54  ;;  %v304_v54 = vmul.f32 %v15150_v44, %v273_v49  ;;  %v283_v55 = vpop.permute.xlu1 %282 }
 0x199   :  { %v306_v59 = vmul.f32 %v15150_v44, %v283_v55 }
 0x19a   :  { %v13226_v61 = vpop.f32.mrb[4].mxu0  ;;  %13250 = vmatmul.mubr.msk.f32.vlgmr.msra.gmra.mrb[2].mxu1 %vm549_vm2, %v15161_v57 }
 0x19b   :  { %13253 = vmatpush3.msra.mxu1 %v519_v58  ;;  %v442_v63 = vpop.f32.mrb[5].mxu0  ;;  %13254 = vmatprep.mubr.msk.f32.mxu1 %vm14898_vm1, %v16795_v39  ;;  %v15199_v19 = vadd.f32 %v13226_v61, %v296_v11  ;;  %v532_v58 = vld [vmem:[#allocation7 + $0x1e0] sm:$0xff] }
 0x19c   :  { %13257 = vmatprep.subr.mxu1 %v16795_v39  ;;  %v15189_v12 = vadd.f32 %v442_v63, %v295_v8  ;;  %v501_v63 = vld [vmem:[#allocation11] sm:$0xff] }
 0x19e   :  { %v13229_v2 = vpop.f32.mrb[6].mxu0  ;;  %13255 = vmatmul.mubr.msk.f32.vlgmr.msra.gmra.mrb[4].mxu1 %vm549_vm2, %v15166_v60 }
 0x19f   :  { %13258 = vmatpush3.msra.mxu1 %v520_v1  ;;  %v452_v4 = vpop.f32.mrb[7].mxu0  ;;  %13259 = vmatprep.mubr.msk.f32.mxu1 %vm14898_vm1, %v16795_v39  ;;  %v15228_v37 = vadd.f32 %v13229_v2, %v298_v33 }
 0x1a0   :  { %13262 = vmatprep.subr.mxu1 %v16795_v39  ;;  %v15212_v28 = vadd.f32 %v452_v4, %v297_v23 }
 0x1a2   :  { %v15182_v9 = vpop.f32.mrb[8].mxu0  ;;  %13260 = vmatmul.mubr.msk.f32.vlgmr.msra.gmra.mrb[6].mxu1 %vm549_vm2, %v15178_v5 }
 0x1a3   :  { %13263 = vmatpush3.msra.mxu1 %v521_v6  ;;  %v462_v10 = vpop.f32.mrb[9].mxu0  ;;  %13264 = vmatprep.mubr.msk.f32.mxu1 %vm14898_vm1, %v16795_v39  ;;  %v15255_v47 = vadd.f32 %v15182_v9, %v300_v46  ;;  %v503_v9 = vld [vmem:[#allocation11 + $0x10] sm:$0xff] }
 0x1a4   :  { %13267 = vmatprep.subr.mxu1 %v16795_v39  ;;  %v15244_v43 = vadd.f32 %v462_v10, %v299_v41 }
 0x1a6   :  { %v15193_v16 = vpop.f32.mrb[10].mxu0  ;;  %13265 = vmatmul.mubr.msk.f32.vlgmr.msra.gmra.mrb[8].mxu1 %vm549_vm2, %v15189_v12 }
 0x1a7   :  { %13268 = vmatpush3.msra.mxu1 %v522_v13  ;;  %v472_v18 = vpop.f32.mrb[11].mxu0  ;;  %13269 = vmatprep.mubr.msk.f32.mxu1 %vm14898_vm1, %v16795_v39  ;;  %v15264_v52 = vadd.f32 %v15193_v16, %v302_v50  ;;  %v508_v50 = vld [vmem:[#allocation11 + $0x38] sm:$0xff] }
 0x1a8   :  { %v15201_v20 = vadd.f32 %v472_v18, %v301_v15  ;;  %13272 = vmatprep.subr.mxu1 %v16795_v39  ;;  %v504_v15 = vld [vmem:[#allocation11 + $0x18] sm:$0xff] }
 0x1aa   :  { %v13238_v25 = vpop.f32.mrb[12].mxu0  ;;  %13270 = vmatmul.mubr.msk.f32.vlgmr.msra.gmra.mrb[10].mxu1 %vm549_vm2, %v15199_v19  ;;  %13295 = vmatmul.mubr.msk.f32.vlgmr.msra.gmra.mrb[16].mxu0 %vm549_vm2, %v15201_v20 }
 0x1ab   :  { %13273 = vmatpush3.msra.mxu1 %v523_v21  ;;  %v482_v27 = vpop.f32.mrb[13].mxu0  ;;  %13274 = vmatprep.mubr.msk.f32.mxu1 %vm14898_vm1, %v16795_v39  ;;  %v15272_v56 = vadd.f32 %v13238_v25, %v304_v54 }
 0x1ac   :  { %v15214_v29 = vadd.f32 %v482_v27, %v303_v24  ;;  %13277 = vmatprep.subr.mxu1 %v16795_v39  ;;  %13303 = vmatpush3.msra.mxu0 %v529_v22  ;;  %v505_v22 = vld [vmem:[#allocation11 + $0x20] sm:$0xff] }
 0x1ad   :  { %13304 = vmatprep.mubr.msk.f32.mxu0 %vm14898_vm1, %v16795_v39  ;;  %13312 = vmatprep.subr.mxu0 %v16795_v39 }
 0x1ae   :  { %v13241_v35 = vpop.f32.mrb[14].mxu0  ;;  %13275 = vmatmul.mubr.msk.f32.vlgmr.msra.gmra.mrb[12].mxu1 %vm549_vm2, %v15212_v28  ;;  %13305 = vmatmul.mubr.msk.f32.vlgmr.msra.gmra.mrb[18].mxu0 %vm549_vm2, %v15214_v29 }
 0x1af   :  { %13278 = vmatpush3.msra.mxu1 %v524_v30  ;;  %v492_v36 = vpop.f32.mrb[15].mxu0  ;;  %13279 = vmatprep.mubr.msk.f32.mxu1 %vm14898_vm1, %v16795_v39  ;;  %v15280_v61 = vadd.f32 %v13241_v35, %v306_v59  ;;  %v506_v30 = vld [vmem:[#allocation11 + $0x28] sm:$0xff] }
 0x1b0   :  { %v15230_v38 = vadd.f32 %v492_v36, %v305_v34  ;;  %13282 = vmatprep.subr.mxu1 %v16795_v39  ;;  %13313 = vmatpush3.msra.mxu0 %v531_v32 }
 0x1b1   :  { %13314 = vmatprep.mubr.msk.f32.mxu0 %vm14898_vm1, %v16795_v39  ;;  %13322 = vmatprep.subr.mxu0 %v16795_v39 }
 0x1b2   :  { %13280 = vmatmul.mubr.msk.f32.vlgmr.msra.gmra.mrb[14].mxu1 %vm549_vm2, %v15228_v37  ;;  %13315 = vmatmul.mubr.msk.f32.vlgmr.msra.gmra.mrb[20].mxu0 %vm549_vm2, %v15230_v38 }
 0x1b3   :  { %13283 = vmatpush3.msra.mxu1 %v525_v40  ;;  %13284 = vmatprep.mubr.msk.f32.mxu1 %vm14898_vm1, %v16795_v39  ;;  %v507_v40 = vld [vmem:[#allocation11 + $0x30] sm:$0xff] }
 0x1b4   :  { %13287 = vmatprep.subr.mxu1 %v16795_v39  ;;  %13324 = vmatprep.mubr.msk.f32.mxu0 %vm14898_vm1, %v16795_v39 }
 0x1b6   :  { %13285 = vmatmul.mubr.msk.f32.vlgmr.msra.gmra.mrb[16].mxu1 %vm549_vm2, %v15244_v43 }
 0x1b7   :  { %13288 = vmatpush3.msra.mxu1 %v526_v45  ;;  %13289 = vmatprep.mubr.msk.f32.mxu1 %vm14898_vm1, %v16795_v39 }
 0x1b8   :  { %13297 = vmatprep.subr.mxu1 %v16795_v39 }
 0x1ba   :  { %13290 = vmatmul.mubr.msk.f32.vlgmr.msra.gmra.mrb[18].mxu1 %vm549_vm2, %v15255_v47 }
 0x1bb   :  { %13298 = vmatpush3.msra.mxu1 %v528_v48  ;;  %13299 = vmatprep.mubr.msk.f32.mxu1 %vm14898_vm1, %v16795_v39 }
 0x1bc   :  { %13307 = vmatprep.subr.mxu1 %v16795_v39 }
 0x1be   :  { %13300 = vmatmul.mubr.msk.f32.vlgmr.msra.gmra.mrb[20].mxu1 %vm549_vm2, %v15264_v52 }
 0x1bf   :  { %13308 = vmatpush3.msra.mxu1 %v530_v53  ;;  %13309 = vmatprep.mubr.msk.f32.mxu1 %vm14898_vm1, %v16795_v39 }
 0x1c0   :  { %13317 = vmatprep.subr.mxu1 %v16795_v39 }
 0x1c2   :  { %13310 = vmatmul.mubr.msk.f32.vlgmr.msra.gmra.mrb[22].mxu1 %vm549_vm2, %v15272_v56 }
 0x1c3   :  { %13318 = vmatpush3.msra.mxu1 %v532_v58  ;;  %13319 = vmatprep.mubr.msk.f32.mxu1 %vm14898_vm1, %v16795_v39 }
 0x1c4   :  { %13327 = vmatprep.subr.mxu1 %v16795_v39 }
 0x1c6   :  { %13320 = vmatmul.mubr.msk.f32.vlgmr.msra.gmra.mrb[24].mxu1 %vm549_vm2, %v15280_v61 }
 0x1c7   :  { %13329 = vmatprep.mubr.msk.f32.mxu1 %vm14898_vm1, %v16795_v39 }
 0x269   :  { %v619_v62 = vpop.f32.mrb[0].mxu1 }
 0x26a   :  { %v1718_v44 = vmul.f32 0.35355338, %v619_v62  ;;  %v13246_v0 = vpop.f32.mrb[1].mxu1  ;;  %v509_v62 = vld [vmem:[#allocation11 + $0x40] sm:$0xff] }
 0x26c   :  { %v15287_v1 = vadd.f32 %v1718_v44, %v501_v63 }
 0x26d   :  { %v692_v2 = vpop.f32.mrb[2].mxu1 }
 0x26e   :  { %v1719_v4 = vmul.f32 0.35355338, %v692_v2  ;;  %1750 = vmax.xlane.f32.xlu0 %v15287_v1  ;;  %v13251_v6 = vpop.f32.mrb[3].mxu1 }
 0x26f   :  { %v510_v6 = vld [vmem:[#allocation11 + $0x48] sm:$0xff] }
 0x270   :  { %v15290_v7 = vadd.f32 %v1719_v4, %v502_v3  ;;  %v511_v4 = vld [vmem:[#allocation11 + $0x50] sm:$0xff] }
 0x271   :  { %v765_v8 = vpop.f32.mrb[4].mxu1 }
 0x272   :  { %v1720_v10 = vmul.f32 0.35355338, %v765_v8  ;;  %1752 = vmax.xlane.f32.xlu1 %v15290_v7  ;;  %v13256_v11 = vpop.f32.mrb[5].mxu1 }
 0x274   :  { %v15293_v13 = vadd.f32 %v1720_v10, %v503_v9 }
 0x275   :  { %v838_v14 = vpop.f32.mrb[6].mxu1 }
 0x276   :  { %v1721_v16 = vmul.f32 0.35355338, %v838_v14  ;;  %1754 = vmax.xlane.f32.xlu0 %v15293_v13  ;;  %v13261_v17 = vpop.f32.mrb[7].mxu1 }
 0x277   :  { %v512_v17 = vld [vmem:[#allocation11 + $0x58] sm:$0xff] }
 0x278   :  { %v15296_v18 = vadd.f32 %v1721_v16, %v504_v15  ;;  %v513_v16 = vld [vmem:[#allocation11 + $0x60] sm:$0xff] }
 0x279   :  { %v911_v21 = vpop.f32.mrb[8].mxu1 }
 0x27a   :  { %v1722_v23 = vmul.f32 0.35355338, %v911_v21  ;;  %1756 = vmax.xlane.f32.xlu0 %v15296_v18  ;;  %v13266_v24 = vpop.f32.mrb[9].mxu1 }
 0x27c   :  { %v15299_v25 = vadd.f32 %v1722_v23, %v505_v22 }
 0x27d   :  { %v984_v26 = vpop.f32.mrb[10].mxu1  ;;  %v1349_v27 = vpop.f32.mrb[16].mxu0 }
 0x27e   :  { %v1723_v31 = vmul.f32 0.35355338, %v984_v26  ;;  %v13296_v32 = vpop.f32.mrb[17].mxu0  ;;  %1758 = vmax.xlane.f32.xlu1 %v15299_v25  ;;  %v13271_v33 = vpop.f32.mrb[11].mxu1  ;;  %v1728_v0 = vmul.f32 0.35355338, %v1349_v27 }
 0x280   :  { %v15302_v34 = vadd.f32 %v1723_v31, %v506_v30  ;;  %v15314_v11 = vadd.f32 %v1728_v0, %v511_v4  ;;  %v515_v30 = vld [vmem:[#allocation11 + $0x70] sm:$0xff]  ;;  %v514_v31 = vld [vmem:[#allocation11 + $0x68] sm:$0xff] }
 0x281   :  { %v1057_v35 = vpop.f32.mrb[12].mxu1  ;;  %v1495_v36 = vpop.f32.mrb[18].mxu0 }
 0x282   :  { %v1724_v41 = vmul.f32 0.35355338, %v1057_v35  ;;  %v13306_v42 = vpop.f32.mrb[19].mxu0  ;;  %1760 = vmax.xlane.f32.xlu0 %v15302_v34  ;;  %v13276_v45 = vpop.f32.mrb[13].mxu1  ;;  %v1730_v10 = vmul.f32 0.35355338, %v1495_v36 }
 0x284   :  { %v15305_v46 = vadd.f32 %v1724_v41, %v507_v40  ;;  %v15320_v24 = vadd.f32 %v1730_v10, %v513_v16  ;;  %v516_v41 = vld [vmem:[#allocation11 + $0x78] sm:$0xff] }
 0x285   :  { %v1130_v48 = vpop.f32.mrb[14].mxu1  ;;  %v1641_v49 = vpop.f32.mrb[20].mxu0 }
 0x286   :  { %v1725_v53 = vmul.f32 0.35355338, %v1130_v48  ;;  %v13316_v54 = vpop.f32.mrb[21].mxu0  ;;  %1762 = vmax.xlane.f32.xlu1 %v15305_v46  ;;  %v13281_v55 = vpop.f32.mrb[15].mxu1  ;;  %v1732_v23 = vmul.f32 0.35355338, %v1641_v49 }
 0x288   :  { %v15308_v58 = vadd.f32 %v1725_v53, %v508_v50  ;;  %v15326_v35 = vadd.f32 %v1732_v23, %v515_v30 }
 0x289   :  { %v1203_v59 = vpop.f32.mrb[16].mxu1 }
 0x28a   :  { %v1726_v63 = vmul.f32 0.35355338, %v1203_v59  ;;  %1764 = vmax.xlane.f32.xlu0 %v15308_v58  ;;  %v13286_v44 = vpop.f32.mrb[17].mxu1 }
 0x28c   :  { %v15311_v2 = vadd.f32 %v1726_v63, %v509_v62 }
 0x28d   :  { %v1276_v3 = vpop.f32.mrb[18].mxu1 }
 0x28e   :  { %v1727_v8 = vmul.f32 0.35355338, %v1276_v3  ;;  %1766 = vmax.xlane.f32.xlu1 %v15311_v2  ;;  %v13291_v9 = vpop.f32.mrb[19].mxu1 }
 0x290   :  { %v15316_v14 = vadd.f32 %v1727_v8, %v510_v6 }
 0x291   :  { %v1422_v15 = vpop.f32.mrb[20].mxu1 }
 0x292   :  { %v1729_v21 = vmul.f32 0.35355338, %v1422_v15  ;;  %1770 = vmax.xlane.f32.xlu1 %v15314_v11  ;;  %1768 = vmax.xlane.f32.xlu0 %v15316_v14  ;;  %v13301_v22 = vpop.f32.mrb[21].mxu1 }
 0x294   :  { %v15322_v26 = vadd.f32 %v1729_v21, %v512_v17 }
 0x295   :  { %v1568_v27 = vpop.f32.mrb[22].mxu1 }
 0x296   :  { %v1731_v32 = vmul.f32 0.35355338, %v1568_v27  ;;  %1774 = vmax.xlane.f32.xlu1 %v15320_v24  ;;  %1772 = vmax.xlane.f32.xlu0 %v15322_v26  ;;  %v13311_v33 = vpop.f32.mrb[23].mxu1 }
 0x298   :  { %v15328_v36 = vadd.f32 %v1731_v32, %v514_v31 }
 0x299   :  { %v1714_v40 = vpop.f32.mrb[24].mxu1 }
 0x29a   :  { %v1733_v42 = vmul.f32 0.35355338, %v1714_v40  ;;  %1778 = vmax.xlane.f32.xlu1 %v15326_v35  ;;  %1776 = vmax.xlane.f32.xlu0 %v15328_v36  ;;  %v13321_v45 = vpop.f32.mrb[25].mxu1 }
 0x29c   :  { %v15332_v48 = vadd.f32 %v1733_v42, %v516_v41 }
 0x29e   :  { %1780 = vmax.xlane.f32.xlu0 %v15332_v48 }
 0x2fb   :  { %v1751_v49 = vpop.xlane.xlu0 %1750 }
 0x2fc   :  { %vm1782_vm3 = vcmp.eq.f32.partialorder %v1751_v49, -inf }
 0x2fd   :  { %v1798_v50 = vsel %vm1782_vm3, 0.0, %v1751_v49 }
 0x2fe   :  { %v1814_v53 = vsub.f32 %v15287_v1, %v1798_v50 }
 0x2ff   :  { %v1753_v54 = vpop.xlane.xlu1 %1752 }
 0x300   :  { %v1830_v55 = vmul.f32 1.442695, %v1814_v53  ;;  %vm1783_vm4 = vcmp.eq.f32.partialorder %v1753_v54, -inf }
 0x301   :  { %v1799_v59 = vsel %vm1783_vm4, 0.0, %v1753_v54 }
 0x302   :  { %14226 = vpow2.f32 %v1830_v55  ;;  %v1815_v62 = vsub.f32 %v15290_v7, %v1799_v59 }
 0x303   :  { %v1755_v63 = vpop.xlane.xlu0 %1754 }
 0x304   :  { %v1832_v44 = vmul.f32 1.442695, %v1815_v62  ;;  %vm1784_vm5 = vcmp.eq.f32.partialorder %v1755_v63, -inf }
 0x305   :  { %v1800_v0 = vsel %vm1784_vm5, 0.0, %v1755_v63 }
 0x306   :  { %14228 = vpow2.f32 %v1832_v44  ;;  %v1816_v3 = vsub.f32 %v15293_v13, %v1800_v0 }
 0x307   :  { %v1757_v4 = vpop.xlane.xlu0 %1756 }
 0x308   :  { %v1834_v6 = vmul.f32 1.442695, %v1816_v3  ;;  %vm1785_vm6 = vcmp.eq.f32.partialorder %v1757_v4, -inf }
 0x309   :  { %v1801_v8 = vsel %vm1785_vm6, 0.0, %v1757_v4 }
 0x30a   :  { %14230 = vpow2.f32 %v1834_v6  ;;  %v1817_v1 = vsub.f32 %v15296_v18, %v1801_v8 }
 0x30b   :  { %v1759_v9 = vpop.xlane.xlu1 %1758 }
 0x30c   :  { %v15339_v10 = vpop.eup %14226  ;;  %v1836_v15 = vmul.f32 1.442695, %v1817_v1  ;;  %vm1786_vm7 = vcmp.eq.f32.partialorder %v1759_v9, -inf }
 0x30d   :  { %v1802_v7 = vsel %vm1786_vm7, 0.0, %v1759_v9  ;;  %1862 = vadd.xlane.f32.xlu1 %v15339_v10 }
 0x30e   :  { %14232 = vpow2.f32 %v1836_v15  ;;  %v1818_v16 = vsub.f32 %v15299_v25, %v1802_v7  ;;  %v533_v15 = vld [vmem:[#allocation8] sm:$0xff] }
 0x30f   :  { %v1761_v17 = vpop.xlane.xlu0 %1760  ;;  %13323 = vmatpush3.xpose.msra.mxu0 %v533_v15  ;;  %v536_v15 = vld [vmem:[#allocation8 + $0x60] sm:$0xff] }
 0x310   :  { %v15343_v13 = vpop.eup %14228  ;;  %v1838_v21 = vmul.f32 1.442695, %v1818_v16  ;;  %vm1787_vm8 = vcmp.eq.f32.partialorder %v1761_v17, -inf  ;;  %13332 = vmatprep.subr.mxu0 %v16795_v39 }
 0x311   :  { %v1803_v22 = vsel %vm1787_vm8, 0.0, %v1761_v17  ;;  %1864 = vadd.xlane.f32.xlu0 %v15343_v13 }
 0x312   :  { %14234 = vpow2.f32 %v1838_v21  ;;  %v1819_v18 = vsub.f32 %v15302_v34, %v1803_v22 }
 0x313   :  { %v1763_v30 = vpop.xlane.xlu1 %1762 }
 0x314   :  { %v15347_v23 = vpop.eup %14230  ;;  %v1840_v27 = vmul.f32 1.442695, %v1819_v18  ;;  %vm1788_vm10 = vcmp.eq.f32.partialorder %v1763_v30, -inf  ;;  %v534_v18 = vld [vmem:[#allocation8 + $0x20] sm:$0xff] }
 0x315   :  { %1866 = vadd.xlane.f32.xlu1 %v15347_v23  ;;  %v1804_v42 = vsel %vm1788_vm10, 0.0, %v1763_v30  ;;  %13328 = vmatpush3.xpose.msra.mxu1 %v534_v18 }
 0x316   :  { %14236 = vpow2.f32 %v1840_v27  ;;  %v1820_v53 = vsub.f32 %v15305_v46, %v1804_v42  ;;  %13337 = vmatprep.subr.mxu1 %v16795_v39 }
 0x317   :  { %v1765_v31 = vpop.xlane.xlu0 %1764 }
 0x318   :  { %v15350_v25 = vpop.eup %14232  ;;  %vm1789_vm9 = vcmp.eq.f32.partialorder %v1765_v31, -inf  ;;  %v1842_v4 = vmul.f32 1.442695, %v1820_v53 }
 0x319   :  { %v1805_v32 = vsel %vm1789_vm9, 0.0, %v1765_v31  ;;  %1868 = vadd.xlane.f32.xlu0 %v15350_v25 }
 0x31a   :  { %v1821_v33 = vsub.f32 %v15308_v58, %v1805_v32 }
 0x31b   :  { %v1767_v40 = vpop.xlane.xlu1 %1766 }
 0x31c   :  { %v15354_v41 = vpop.eup %14234  ;;  %v1844_v34 = vmul.f32 1.442695, %v1821_v33  ;;  %vm1790_vm11 = vcmp.eq.f32.partialorder %v1767_v40, -inf }
 0x31d   :  { %1870 = vadd.xlane.f32.xlu1 %v15354_v41  ;;  %v1806_v62 = vsel %vm1790_vm11, 0.0, %v1767_v40 }
 0x31e   :  { %14238 = vpow2.f32 %v1844_v34  ;;  %v1822_v8 = vsub.f32 %v15311_v2, %v1806_v62 }
 0x31f   :  { %v1771_v45 = vpop.xlane.xlu1 %1770  ;;  %v1769_v49 = vpop.xlane.xlu0 %1768 }
 0x320   :  { %v15357_v50 = vpop.eup %14236  ;;  %vm1792_vm12 = vcmp.eq.f32.partialorder %v1771_v45, -inf  ;;  %vm1791_vm13 = vcmp.eq.f32.partialorder %v1769_v49, -inf  ;;  %v1846_v2 = vmul.f32 1.442695, %v1822_v8  ;;  %v535_v8 = vld [vmem:[#allocation8 + $0x40] sm:$0xff] }
 0x321   :  { %v1808_v54 = vsel %vm1792_vm12, 0.0, %v1771_v45  ;;  %v1807_v58 = vsel %vm1791_vm13, 0.0, %v1769_v49  ;;  %1872 = vadd.xlane.f32.xlu0 %v15357_v50 }
 0x322   :  { %v1824_v55 = vsub.f32 %v15314_v11, %v1808_v54  ;;  %v1823_v59 = vsub.f32 %v15316_v14, %v1807_v58 }
 0x323   :  { %v1775_v63 = vpop.xlane.xlu1 %1774  ;;  %v1773_v44 = vpop.xlane.xlu0 %1772 }
 0x324   :  { %v1850_v0 = vmul.f32 1.442695, %v1824_v55  ;;  %v1848_v3 = vmul.f32 1.442695, %v1823_v59  ;;  %vm1794_vm14 = vcmp.eq.f32.partialorder %v1775_v63, -inf  ;;  %vm1793_vm15 = vcmp.eq.f32.partialorder %v1773_v44, -inf }
 0x325   :  { %v1809_v6 = vsel %vm1793_vm15, 0.0, %v1773_v44  ;;  %v1810_v46 = vsel %vm1794_vm14, 0.0, %v1775_v63 }
 0x326   :  { %14240 = vpow2.f32 %v1850_v0  ;;  %v1825_v1 = vsub.f32 %v15322_v26, %v1809_v6  ;;  %v1826_v16 = vsub.f32 %v15320_v24, %v1810_v46 }
 0x327   :  { %14242 = vpow2.f32 %v1848_v3  ;;  %v1779_v9 = vpop.xlane.xlu1 %1778  ;;  %v1777_v11 = vpop.xlane.xlu0 %1776 }
 0x328   :  { %v15365_v14 = vpop.eup %14238  ;;  %v1852_v7 = vmul.f32 1.442695, %v1825_v1  ;;  %vm1796_vm3 = vcmp.eq.f32.partialorder %v1779_v9, -inf  ;;  %vm1795_vm4 = vcmp.eq.f32.partialorder %v1777_v11, -inf  ;;  %14244 = vpow2.f32 %v1842_v4 }
 0x329   :  { %v1811_v17 = vsel %vm1795_vm4, 0.0, %v1777_v11  ;;  %1876 = vadd.xlane.f32.xlu0 %v15365_v14  ;;  %v1812_v21 = vsel %vm1796_vm3, 0.0, %v1779_v9  ;;  %v1854_v30 = vmul.f32 1.442695, %v1826_v16 }
 0x32a   :  { %v1827_v26 = vsub.f32 %v15328_v36, %v1811_v17  ;;  %14246 = vpow2.f32 %v1852_v7  ;;  %v1828_v24 = vsub.f32 %v15326_v35, %v1812_v21  ;;  %v538_v21 = vld [vmem:[#allocation8 + $0xa0] sm:$0xff] }
 0x32b   :  { %v1781_v22 = vpop.xlane.xlu0 %1780  ;;  %14248 = vpow2.f32 %v1846_v2  ;;  %v537_v2 = vld [vmem:[#allocation8 + $0x80] sm:$0xff] }
 0x32c   :  { %v1856_v27 = vmul.f32 1.442695, %v1827_v26  ;;  %vm1797_vm5 = vcmp.eq.f32.partialorder %v1781_v22, -inf  ;;  %v1858_v34 = vmul.f32 1.442695, %v1828_v24  ;;  %v540_v24 = vld [vmem:[#allocation8 + $0xe0] sm:$0xff] }
 0x32d   :  { %v1813_v31 = vsel %vm1797_vm5, 0.0, %v1781_v22 }
 0x32e   :  { %v1829_v32 = vsub.f32 %v15332_v48, %v1813_v31  ;;  %14250 = vpow2.f32 %v1856_v27 }
 0x32f   :  { %14252 = vpow2.f32 %v1854_v30  ;;  %v539_v30 = vld [vmem:[#allocation8 + $0xc0] sm:$0xff] }
 0x330   :  { %v15374_v33 = vpop.eup %14240  ;;  %v1860_v36 = vmul.f32 1.442695, %v1829_v32 }
 0x331   :  { %v15376_v40 = vpop.eup %14242  ;;  %1882 = vadd.xlane.f32.xlu1 %v15374_v33 }
 0x332   :  { %14254 = vpow2.f32 %v1860_v36  ;;  %1880 = vadd.xlane.f32.xlu0 %v15376_v40  ;;  %v15380_v42 = vpop.eup %14244 }
 0x333   :  { %14256 = vpow2.f32 %v1858_v34 }
 0x334   :  { %v15382_v45 = vpop.eup %14246 }
 0x335   :  { %1874 = vadd.xlane.f32.xlu1 %v15380_v42  ;;  %v15386_v35 = vpop.eup %14248 }
 0x336   :  { %1884 = vadd.xlane.f32.xlu0 %v15382_v45 }
 0x338   :  { %v15388_v48 = vpop.eup %14250 }
 0x339   :  { %1878 = vadd.xlane.f32.xlu1 %v15386_v35  ;;  %v15392_v49 = vpop.eup %14252 }
 0x33a   :  { %1888 = vadd.xlane.f32.xlu0 %v15388_v48 }
 0x33c   :  { %v15394_v53 = vpop.eup %14254 }
 0x33d   :  { %1886 = vadd.xlane.f32.xlu1 %v15392_v49  ;;  %v15398_v54 = vpop.eup %14256 }
 0x33e   :  { %1892 = vadd.xlane.f32.xlu0 %v15394_v53 }
 0x341   :  { %1890 = vadd.xlane.f32.xlu1 %v15398_v54 }
 0x352   :  { %3096 = vrot.lane.b32.xlu1 %v15154_v51, %s14899_s9 }
 0x354   :  { %3170 = vrot.lane.b32.xlu0 %v15161_v57, %s14899_s9 }
 0x356   :  { %3244 = vrot.lane.b32.xlu1 %v15166_v60, %s14899_s9 }
 0x358   :  { %3392 = vrot.lane.b32.xlu0 %v15189_v12, %s14899_s9 }
 0x35a   :  { %3318 = vrot.lane.b32.xlu1 %v15178_v5, %s14899_s9 }
 0x35c   :  { %3540 = vrot.lane.b32.xlu0 %v15212_v28, %s14899_s9 }
 0x35e   :  { %3466 = vrot.lane.b32.xlu1 %v15199_v19, %s14899_s9 }
 0x360   :  { %3688 = vrot.lane.b32.xlu0 %v15244_v43, %s14899_s9 }
 0x362   :  { %3614 = vrot.lane.b32.xlu1 %v15228_v37, %s14899_s9 }
 0x364   :  { %3836 = vrot.lane.b32.xlu0 %v15201_v20, %s14899_s9 }
 0x366   :  { %3762 = vrot.lane.b32.xlu1 %v15255_v47, %s14899_s9 }
 0x368   :  { %3984 = vrot.lane.b32.xlu0 %v15214_v29, %s14899_s9 }
 0x36a   :  { %3910 = vrot.lane.b32.xlu1 %v15264_v52, %s14899_s9 }
 0x36c   :  { %4132 = vrot.lane.b32.xlu0 %v15230_v38, %s14899_s9 }
 0x36e   :  { %4058 = vrot.lane.b32.xlu1 %v15272_v56, %s14899_s9 }
 0x372   :  { %4206 = vrot.lane.b32.xlu1 %v15280_v61, %s14899_s9 }
 0x39a   :  { %v1863_v58 = vpop.xlane.xlu1 %1862 }
 0x39b   :  { %v1894_v55 = vmax.f32 %v1863_v58, 1e-30 }
 0x39d   :  { %14258 = vrcp.f32 %v1894_v55 }
 0x39e   :  { %v1865_v59 = vpop.xlane.xlu0 %1864 }
 0x39f   :  { %v1895_v62 = vmax.f32 %v1865_v59, 1e-30 }
 0x3a1   :  { %14260 = vrcp.f32 %v1895_v62 }
 0x3a2   :  { %v1867_v63 = vpop.xlane.xlu1 %1866 }
 0x3a3   :  { %v1896_v44 = vmax.f32 %v1867_v63, 1e-30  ;;  %v542_v63 = vld [vmem:[#allocation8 + $0x120] sm:$0xff] }
 0x3a5   :  { %14262 = vrcp.f32 %v1896_v44 }
 0x3a6   :  { %v1869_v0 = vpop.xlane.xlu0 %1868 }
 0x3a7   :  { %v14259_v3 = vpop.eup %14258  ;;  %v1897_v4 = vmax.f32 %v1869_v0, 1e-30 }
 0x3a8   :  { %v1926_v6 = vmul.f32 %v14259_v3, %v15339_v10 }
 0x3a9   :  { %14264 = vrcp.f32 %v1897_v4 }
 0x3aa   :  { %13325 = vmatmul.mubr.f32.vlgmr.msra.gmra.mrb[22].mxu0 %v1926_v6  ;;  %v1871_v46 = vpop.xlane.xlu1 %1870 }
 0x3ab   :  { %v14261_v1 = vpop.eup %14260  ;;  %v1898_v9 = vmax.f32 %v1871_v46, 1e-30  ;;  %13333 = vmatpush3.xpose.msra.mxu0 %v535_v8  ;;  %13334 = vmatprep.mubr.msk.f32.mxu0 %vm14898_vm1, %v16795_v39 }
 0x3ac   :  { %v1927_v11 = vmul.f32 %v14261_v1, %v15343_v13  ;;  %13342 = vmatprep.subr.mxu0 %v16795_v39 }
 0x3ad   :  { %14266 = vrcp.f32 %v1898_v9 }
 0x3ae   :  { %13330 = vmatmul.mubr.f32.vlgmr.msra.gmra.mrb[26].mxu1 %v1927_v11  ;;  %v1873_v7 = vpop.xlane.xlu0 %1872 }
 0x3af   :  { %v14263_v16 = vpop.eup %14262  ;;  %v1899_v10 = vmax.f32 %v1873_v7, 1e-30  ;;  %13338 = vmatpush3.xpose.msra.mxu1 %v536_v15  ;;  %13339 = vmatprep.mubr.msk.f32.mxu1 %vm14898_vm1, %v16795_v39  ;;  %v544_v15 = vld [vmem:[#allocation8 + $0x160] sm:$0xff] }
 0x3b0   :  { %v1928_v17 = vmul.f32 %v14263_v16, %v15347_v23  ;;  %13347 = vmatprep.subr.mxu1 %v16795_v39 }
 0x3b1   :  { %14268 = vrcp.f32 %v1899_v10 }
 0x3b2   :  { %13335 = vmatmul.mubr.f32.vlgmr.msra.gmra.mrb[24].mxu0 %v1928_v17 }
 0x3b3   :  { %v14265_v13 = vpop.eup %14264  ;;  %13343 = vmatpush3.xpose.msra.mxu0 %v537_v2  ;;  %13344 = vmatprep.mubr.msk.f32.mxu0 %vm14898_vm1, %v16795_v39 }
 0x3b4   :  { %v1929_v26 = vmul.f32 %v14265_v13, %v15350_v25  ;;  %13352 = vmatprep.subr.mxu0 %v16795_v39  ;;  %v541_v13 = vld [vmem:[#allocation8 + $0x100] sm:$0xff] }
 0x3b6   :  { %13340 = vmatmul.mubr.f32.vlgmr.msra.gmra.mrb[28].mxu1 %v1929_v26  ;;  %v1877_v22 = vpop.xlane.xlu0 %1876 }
 0x3b7   :  { %v14267_v18 = vpop.eup %14266  ;;  %v1901_v27 = vmax.f32 %v1877_v22, 1e-30  ;;  %13348 = vmatpush3.xpose.msra.mxu1 %v538_v21  ;;  %13349 = vmatprep.mubr.msk.f32.mxu1 %vm14898_vm1, %v16795_v39 }
 0x3b8   :  { %v1930_v23 = vmul.f32 %v14267_v18, %v15354_v41  ;;  %13357 = vmatprep.subr.mxu1 %v16795_v39 }
 0x3b9   :  { %14270 = vrcp.f32 %v1901_v27  ;;  %v543_v27 = vld [vmem:[#allocation8 + $0x140] sm:$0xff] }
 0x3ba   :  { %13345 = vmatmul.mubr.f32.vlgmr.msra.gmra.mrb[26].mxu0 %v1930_v23 }
 0x3bb   :  { %v14269_v31 = vpop.eup %14268  ;;  %13353 = vmatpush3.xpose.msra.mxu0 %v539_v30  ;;  %13354 = vmatprep.mubr.msk.f32.mxu0 %vm14898_vm1, %v16795_v39  ;;  %v548_v30 = vld [vmem:[#allocation8 + $0x1e0] sm:$0xff] }
 0x3bc   :  { %v1931_v25 = vmul.f32 %v14269_v31, %v15357_v50  ;;  %13362 = vmatprep.subr.mxu0 %v16795_v39 }
 0x3be   :  { %v1883_v32 = vpop.xlane.xlu1 %1882  ;;  %13350 = vmatmul.mubr.f32.vlgmr.msra.gmra.mrb[30].mxu1 %v1931_v25 }
 0x3bf   :  { %v1881_v36 = vpop.xlane.xlu0 %1880  ;;  %13358 = vmatpush3.xpose.msra.mxu1 %v540_v24  ;;  %13359 = vmatprep.mubr.msk.f32.mxu1 %vm14898_vm1, %v16795_v39  ;;  %v1904_v0 = vmax.f32 %v1883_v32, 1e-30  ;;  %v545_v24 = vld [vmem:[#allocation8 + $0x180] sm:$0xff] }
 0x3c0   :  { %v1903_v41 = vmax.f32 %v1881_v36, 1e-30  ;;  %13367 = vmatprep.subr.mxu1 %v16795_v39 }
 0x3c2   :  { %14272 = vrcp.f32 %v1903_v41  ;;  %v1875_v34 = vpop.xlane.xlu1 %1874  ;;  %v3064_v41 = vld [vmem:[#allocation7 + $0x28] sm:$0xff] }
 0x3c3   :  { %v14271_v58 = vpop.eup %14270  ;;  %v1900_v55 = vmax.f32 %v1875_v34, 1e-30  ;;  %v1885_v59 = vpop.xlane.xlu0 %1884  ;;  %v547_v34 = vld [vmem:[#allocation8 + $0x1c0] sm:$0xff] }
 0x3c4   :  { %v1905_v62 = vmax.f32 %v1885_v59, 1e-30  ;;  %v1933_v50 = vmul.f32 %v14271_v58, %v15365_v14  ;;  %v3066_v59 = vld [vmem:[#allocation7 + $0x68] sm:$0xff] }
 0x3c5   :  { %14274 = vrcp.f32 %v1900_v55 }
 0x3c6   :  { %14276 = vrcp.f32 %v1905_v62  ;;  %v1879_v44 = vpop.xlane.xlu1 %1878  ;;  %13360 = vmatmul.mubr.f32.vlgmr.msra.gmra.mrb[32].mxu1 %v1933_v50  ;;  %v3063_v62 = vld [vmem:[#allocation7 + $0x8] sm:$0xff] }
 0x3c7   :  { %v1902_v3 = vmax.f32 %v1879_v44, 1e-30  ;;  %v1889_v4 = vpop.xlane.xlu0 %1888  ;;  %13368 = vmatpush3.xpose.msra.mxu1 %v542_v63  ;;  %13369 = vmatprep.mubr.msk.f32.mxu1 %vm14898_vm1, %v16795_v39  ;;  %v3068_v63 = vld [vmem:[#allocation7 + $0xa8] sm:$0xff] }
 0x3c8   :  { %v1907_v6 = vmax.f32 %v1889_v4, 1e-30  ;;  %13377 = vmatprep.subr.mxu1 %v16795_v39  ;;  %v3067_v4 = vld [vmem:[#allocation7 + $0x88] sm:$0xff] }
 0x3c9   :  { %14278 = vrcp.f32 %v1902_v3 }
 0x3ca   :  { %14280 = vrcp.f32 %v1907_v6  ;;  %v1887_v8 = vpop.xlane.xlu1 %1886 }
 0x3cb   :  { %14282 = vrcp.f32 %v1904_v0  ;;  %v1906_v14 = vmax.f32 %v1887_v8, 1e-30  ;;  %v1893_v46 = vpop.xlane.xlu0 %1892  ;;  %v3070_v0 = vld [vmem:[#allocation7 + $0xe8] sm:$0xff] }
 0x3cc   :  { %v14273_v1 = vpop.eup %14272  ;;  %v1909_v9 = vmax.f32 %v1893_v46, 1e-30  ;;  %v3072_v8 = vld [vmem:[#allocation7 + $0x128] sm:$0xff] }
 0x3cd   :  { %v1935_v11 = vmul.f32 %v14273_v1, %v15376_v40  ;;  %v546_v40 = vld [vmem:[#allocation8 + $0x1a0] sm:$0xff]  ;;  %v3074_v1 = vld [vmem:[#allocation7 + $0x168] sm:$0xff] }
 0x3ce   :  { %14284 = vrcp.f32 %v1909_v9  ;;  %v1891_v7 = vpop.xlane.xlu1 %1890 }
 0x3cf   :  { %v14275_v16 = vpop.eup %14274  ;;  %14286 = vrcp.f32 %v1906_v14  ;;  %v1908_v10 = vmax.f32 %v1891_v7, 1e-30  ;;  %13370 = vmatmul.mubr.f32.vlgmr.msra.gmra.mrb[34].mxu1 %v1935_v11  ;;  %v3171_v55 = vpop.permute.xlu0 %3170  ;;  %v3069_v14 = vld [vmem:[#allocation7 + $0xc8] sm:$0xff] }
 0x3d0   :  { %v14277_v17 = vpop.eup %14276  ;;  %13378 = vmatpush3.xpose.msra.mxu1 %v544_v15  ;;  %13379 = vmatprep.mubr.msk.f32.mxu1 %vm14898_vm1, %v16795_v39  ;;  %v1932_v2 = vmul.f32 %v14275_v16, %v15380_v42  ;;  %v3071_v11 = vld [vmem:[#allocation7 + $0x108] sm:$0xff] }
 0x3d1   :  { %v1937_v26 = vmul.f32 %v14277_v17, %v15382_v45  ;;  %13387 = vmatprep.subr.mxu1 %v16795_v39  ;;  %14288 = vrcp.f32 %v1908_v10  ;;  %v3076_v15 = vld [vmem:[#allocation7 + $0x1a8] sm:$0xff] }
 0x3d2   :  { %13355 = vmatmul.mubr.f32.vlgmr.msra.gmra.mrb[28].mxu0 %v1932_v2  ;;  %v15451_v21 = vpop.permute.xlu1 %3096  ;;  %v3073_v16 = vld [vmem:[#allocation7 + $0x148] sm:$0xff] }
 0x3d3   :  { %v14279_v22 = vpop.eup %14278  ;;  %13363 = vmatpush3.xpose.msra.mxu0 %v541_v13  ;;  %13380 = vmatmul.mubr.f32.vlgmr.msra.gmra.mrb[36].mxu1 %v1937_v26  ;;  %v3393_v44 = vpop.permute.xlu0 %3392  ;;  %v3078_v17 = vld [vmem:[#allocation7 + $0x1e8] sm:$0xff] }
 0x3d4   :  { %v14281_v18 = vpop.eup %14280  ;;  %13388 = vmatpush3.xpose.msra.mxu1 %v546_v40  ;;  %13364 = vmatprep.mubr.msk.f32.mxu0 %vm14898_vm1, %v16795_v39  ;;  %v1934_v42 = vmul.f32 %v14279_v22, %v15386_v35  ;;  %v3075_v2 = vld [vmem:[#allocation7 + $0x188] sm:$0xff] }
 0x3d5   :  { %v14283_v23 = vpop.eup %14282  ;;  %13372 = vmatprep.subr.mxu0 %v16795_v39  ;;  %13389 = vmatprep.mubr.msk.f32.mxu1 %vm14898_vm1, %v16795_v39  ;;  %v1939_v45 = vmul.f32 %v14281_v18, %v15388_v48  ;;  %v3077_v40 = vld [vmem:[#allocation7 + $0x1c8] sm:$0xff] }
 0x3d6   :  { %13365 = vmatmul.mubr.f32.vlgmr.msra.gmra.mrb[30].mxu0 %v1934_v42  ;;  %v15460_v31 = vpop.permute.xlu1 %3244  ;;  %13397 = vmatprep.subr.mxu1 %v16795_v39  ;;  %v1936_v35 = vmul.f32 %v14283_v23, %v15374_v33 }
 0x3d7   :  { %13373 = vmatpush3.xpose.msra.mxu0 %v543_v27  ;;  %13390 = vmatmul.mubr.f32.vlgmr.msra.gmra.mrb[38].mxu1 %v1939_v45  ;;  %v3541_v6 = vpop.permute.xlu0 %3540 }
 0x3d8   :  { %v14285_v25 = vpop.eup %14284  ;;  %13398 = vmatpush3.xpose.msra.mxu1 %v548_v30  ;;  %13374 = vmatprep.mubr.msk.f32.mxu0 %vm14898_vm1, %v16795_v39 }
 0x3d9   :  { %v14287_v32 = vpop.eup %14286  ;;  %13382 = vmatprep.subr.mxu0 %v16795_v39  ;;  %13399 = vmatprep.mubr.msk.f32.mxu1 %vm14898_vm1, %v16795_v39  ;;  %v1941_v48 = vmul.f32 %v14285_v25, %v15394_v53 }
 0x3da   :  { %13375 = vmatmul.mubr.f32.vlgmr.msra.gmra.mrb[32].mxu0 %v1936_v35  ;;  %v3319_v36 = vpop.permute.xlu1 %3318  ;;  %13407 = vmatprep.subr.mxu1 %v16795_v39  ;;  %v1938_v33 = vmul.f32 %v14287_v32, %v15392_v49 }
 0x3db   :  { %13383 = vmatpush3.xpose.msra.mxu0 %v545_v24  ;;  %13400 = vmatmul.mubr.f32.vlgmr.msra.gmra.mrb[40].mxu1 %v1941_v48  ;;  %v14289_v58 = vpop.eup %14288  ;;  %v3689_v9 = vpop.permute.xlu0 %3688 }
 0x3dc   :  { %13384 = vmatprep.mubr.msk.f32.mxu0 %vm14898_vm1, %v16795_v39  ;;  %13392 = vmatprep.subr.mxu0 %v16795_v39  ;;  %v1940_v49 = vmul.f32 %v14289_v58, %v15398_v54  ;;  %v3065_v54 = vld [vmem:[#allocation7 + $0x48] sm:$0xff] }
 0x3dd   :  { %13408 = vmatpush3.msra.mxu1 %v3064_v41  ;;  %13409 = vmatprep.mubr.msk.f32.mxu1 %vm14898_vm1, %v16795_v39 }
 0x3de   :  { %13385 = vmatmul.mubr.f32.vlgmr.msra.gmra.mrb[34].mxu0 %v1938_v33  ;;  %v3467_v53 = vpop.permute.xlu1 %3466  ;;  %13417 = vmatprep.subr.mxu1 %v16795_v39 }
 0x3df   :  { %13393 = vmatpush3.xpose.msra.mxu0 %v547_v34  ;;  %13410 = vmatmul.mubr.msk.f32.vlgmr.msra.gmra.mrb[42].mxu1 %vm549_vm2, %v3171_v55  ;;  %v3837_v10 = vpop.permute.xlu0 %3836 }
 0x3e0   :  { %13394 = vmatprep.mubr.msk.f32.mxu0 %vm14898_vm1, %v16795_v39  ;;  %13402 = vmatprep.subr.mxu0 %v16795_v39 }
 0x3e1   :  { %13418 = vmatpush3.msra.mxu1 %v3066_v59  ;;  %13419 = vmatprep.mubr.msk.f32.mxu1 %vm14898_vm1, %v16795_v39 }
 0x3e2   :  { %13395 = vmatmul.mubr.f32.vlgmr.msra.gmra.mrb[36].mxu0 %v1940_v49  ;;  %v3615_v50 = vpop.permute.xlu1 %3614  ;;  %13427 = vmatprep.subr.mxu1 %v16795_v39 }
 0x3e3   :  { %13403 = vmatpush3.msra.mxu0 %v3063_v62  ;;  %13420 = vmatmul.mubr.msk.f32.vlgmr.msra.gmra.mrb[44].mxu1 %vm549_vm2, %v3319_v36  ;;  %v3985_v26 = vpop.permute.xlu0 %3984 }
 0x3e4   :  { %13404 = vmatprep.mubr.msk.f32.mxu0 %vm14898_vm1, %v16795_v39  ;;  %13412 = vmatprep.subr.mxu0 %v16795_v39 }
 0x3e5   :  { %13428 = vmatpush3.msra.mxu1 %v3068_v63  ;;  %13429 = vmatprep.mubr.msk.f32.mxu1 %vm14898_vm1, %v16795_v39 }
 0x3e6   :  { %13405 = vmatmul.mubr.msk.f32.vlgmr.msra.gmra.mrb[38].mxu0 %vm549_vm2, %v15451_v21  ;;  %13437 = vmatprep.subr.mxu1 %v16795_v39  ;;  %v3763_v3 = vpop.permute.xlu1 %3762 }
 0x3e7   :  { %13413 = vmatpush3.msra.mxu0 %v3065_v54  ;;  %13430 = vmatmul.mubr.msk.f32.vlgmr.msra.gmra.mrb[46].mxu1 %vm549_vm2, %v3467_v53  ;;  %v4133_v21 = vpop.permute.xlu0 %4132 }
 0x3e8   :  { %13414 = vmatprep.mubr.msk.f32.mxu0 %vm14898_vm1, %v16795_v39  ;;  %13422 = vmatprep.subr.mxu0 %v16795_v39 }
 0x3e9   :  { %13438 = vmatpush3.msra.mxu1 %v3070_v0  ;;  %13439 = vmatprep.mubr.msk.f32.mxu1 %vm14898_vm1, %v16795_v39 }
 0x3ea   :  { %13415 = vmatmul.mubr.msk.f32.vlgmr.msra.gmra.mrb[40].mxu0 %vm549_vm2, %v15460_v31  ;;  %13447 = vmatprep.subr.mxu1 %v16795_v39  ;;  %v3911_v46 = vpop.permute.xlu1 %3910 }
 0x3eb   :  { %13423 = vmatpush3.msra.mxu0 %v3067_v4  ;;  %13440 = vmatmul.mubr.msk.f32.vlgmr.msra.gmra.mrb[48].mxu1 %vm549_vm2, %v3615_v50 }
 0x3ec   :  { %13424 = vmatprep.mubr.msk.f32.mxu0 %vm14898_vm1, %v16795_v39  ;;  %13432 = vmatprep.subr.mxu0 %v16795_v39 }
 0x3ed   :  { %13448 = vmatpush3.msra.mxu1 %v3072_v8  ;;  %13449 = vmatprep.mubr.msk.f32.mxu1 %vm14898_vm1, %v16795_v39 }
 0x3ee   :  { %13425 = vmatmul.mubr.msk.f32.vlgmr.msra.gmra.mrb[42].mxu0 %vm549_vm2, %v3393_v44  ;;  %13457 = vmatprep.subr.mxu1 %v16795_v39  ;;  %v4059_v7 = vpop.permute.xlu1 %4058 }
 0x3ef   :  { %13433 = vmatpush3.msra.mxu0 %v3069_v14  ;;  %13450 = vmatmul.mubr.msk.f32.vlgmr.msra.gmra.mrb[50].mxu1 %vm549_vm2, %v3763_v3 }
 0x3f0   :  { %13434 = vmatprep.mubr.msk.f32.mxu0 %vm14898_vm1, %v16795_v39  ;;  %13442 = vmatprep.subr.mxu0 %v16795_v39 }
 0x3f1   :  { %13458 = vmatpush3.msra.mxu1 %v3074_v1  ;;  %13459 = vmatprep.mubr.msk.f32.mxu1 %vm14898_vm1, %v16795_v39  ;;  %v14578_v1 = vld [vmem:[#allocation11 + $0x8] sm:$0xff] }
 0x3f2   :  { %13435 = vmatmul.mubr.msk.f32.vlgmr.msra.gmra.mrb[44].mxu0 %vm549_vm2, %v3541_v6  ;;  %13467 = vmatprep.subr.mxu1 %v16795_v39  ;;  %v4207_v13 = vpop.permute.xlu1 %4206 }
 0x3f3   :  { %13443 = vmatpush3.msra.mxu0 %v3071_v11  ;;  %13460 = vmatmul.mubr.msk.f32.vlgmr.msra.gmra.mrb[52].mxu1 %vm549_vm2, %v3911_v46 }
 0x3f4   :  { %13444 = vmatprep.mubr.msk.f32.mxu0 %vm14898_vm1, %v16795_v39  ;;  %13452 = vmatprep.subr.mxu0 %v16795_v39 }
 0x3f5   :  { %13468 = vmatpush3.msra.mxu1 %v3076_v15  ;;  %13469 = vmatprep.mubr.msk.f32.mxu1 %vm14898_vm1, %v16795_v39 }
 0x3f6   :  { %13445 = vmatmul.mubr.msk.f32.vlgmr.msra.gmra.mrb[46].mxu0 %vm549_vm2, %v3689_v9  ;;  %13477 = vmatprep.subr.mxu1 %v16795_v39 }
 0x3f7   :  { %13453 = vmatpush3.msra.mxu0 %v3073_v16  ;;  %13470 = vmatmul.mubr.msk.f32.vlgmr.msra.gmra.mrb[54].mxu1 %vm549_vm2, %v4059_v7 }
 0x3f8   :  { %13454 = vmatprep.mubr.msk.f32.mxu0 %vm14898_vm1, %v16795_v39  ;;  %13462 = vmatprep.subr.mxu0 %v16795_v39 }
 0x3f9   :  { %13478 = vmatpush3.msra.mxu1 %v3078_v17  ;;  %13479 = vmatprep.mubr.msk.f32.mxu1 %vm14898_vm1, %v16795_v39 }
 0x3fa   :  { %13455 = vmatmul.mubr.msk.f32.vlgmr.msra.gmra.mrb[48].mxu0 %vm549_vm2, %v3837_v10  ;;  %13487 = vmatprep.subr.mxu1 %v16795_v39 }
 0x3fb   :  { %13463 = vmatpush3.msra.mxu0 %v3075_v2  ;;  %13480 = vmatmul.mubr.msk.f32.vlgmr.msra.gmra.mrb[56].mxu1 %vm549_vm2, %v4207_v13 }
 0x3fc   :  { %13464 = vmatprep.mubr.msk.f32.mxu0 %vm14898_vm1, %v16795_v39  ;;  %13472 = vmatprep.subr.mxu0 %v16795_v39 }
 0x3fd   :  { %13489 = vmatprep.mubr.msk.f32.mxu1 %vm14898_vm1, %v16795_v39 }
 0x3fe   :  { %13465 = vmatmul.mubr.msk.f32.vlgmr.msra.gmra.mrb[50].mxu0 %vm549_vm2, %v3985_v26  ;;  %v15584_v26 = vld [vmem:[#allocation11] sm:$0xff] }
 0x3ff   :  { %13473 = vmatpush3.msra.mxu0 %v3077_v40  ;;  %13474 = vmatprep.mubr.msk.f32.mxu0 %vm14898_vm1, %v16795_v39 }
 0x400   :  { %13482 = vmatprep.subr.mxu0 %v16795_v39 }
 0x402   :  { %13475 = vmatmul.mubr.msk.f32.vlgmr.msra.gmra.mrb[52].mxu0 %vm549_vm2, %v4133_v21 }
 0x403   :  { %13484 = vmatprep.mubr.msk.f32.mxu0 %vm14898_vm1, %v16795_v39 }
 0x47d   :  { %v15549_v22 = vpop.f32.mrb[22].mxu0 }
 0x47e   :  { %v13326_v18 = vpop.f32.mrb[23].mxu0 }
 0x481   :  { %v15551_v42 = vpop.f32.mrb[26].mxu1 }
 0x482   :  { %16797 = vst [vmem:[#allocation27_spill] sm:$0xff] %v15551_v42  ;;  %v13331_v27 = vpop.f32.mrb[27].mxu1 }
 0x485   :  { %v15553_v23 = vpop.f32.mrb[24].mxu0 }
 0x486   :  { %16798 = vst [vmem:[#allocation28_spill] sm:$0xff] %v15553_v23  ;;  %v13336_v45 = vpop.f32.mrb[25].mxu0 }
 0x489   :  { %v15555_v30 = vpop.f32.mrb[28].mxu1 }
 0x48a   :  { %16799 = vst [vmem:[#allocation29_spill] sm:$0xff] %v15555_v30  ;;  %v13341_v31 = vpop.f32.mrb[29].mxu1 }
 0x48d   :  { %v15557_v25 = vpop.f32.mrb[26].mxu0 }
 0x48e   :  { %16800 = vst [vmem:[#allocation30_spill] sm:$0xff] %v15557_v25  ;;  %v13346_v35 = vpop.f32.mrb[27].mxu0 }
 0x491   :  { %v15559_v24 = vpop.f32.mrb[30].mxu1 }
 0x492   :  { %16801 = vst [vmem:[#allocation31_spill] sm:$0xff] %v15559_v24  ;;  %v13351_v32 = vpop.f32.mrb[31].mxu1 }
 0x493   :  { %v15590_v32 = vld [vmem:[#allocation11 + $0x10] sm:$0xff] }
 0x499   :  { %v15561_v48 = vpop.f32.mrb[32].mxu1 }
 0x49a   :  { %16802 = vst [vmem:[#allocation32_spill] sm:$0xff] %v15561_v48  ;;  %v13361_v36 = vpop.f32.mrb[33].mxu1 }
 0x4a2   :  { %v15563_v41 = vpop.f32.mrb[34].mxu1 }
 0x4a3   :  { %16803 = vst [vmem:[#allocation33_spill] sm:$0xff] %v15563_v41  ;;  %v13371_v33 = vpop.f32.mrb[35].mxu1 }
 0x4a5   :  { %v15565_v34 = vpop.f32.mrb[28].mxu0 }
 0x4a6   :  { %16804 = vst [vmem:[#allocation34_spill] sm:$0xff] %v15565_v34  ;;  %v15567_v58 = vpop.f32.mrb[36].mxu1  ;;  %v13356_v55 = vpop.f32.mrb[29].mxu0 }
 0x4a7   :  { %16805 = vst [vmem:[#allocation35_spill] sm:$0xff] %v15567_v58  ;;  %v13381_v53 = vpop.f32.mrb[37].mxu1 }
 0x4a9   :  { %v15569_v59 = vpop.f32.mrb[30].mxu0 }
 0x4aa   :  { %16806 = vst [vmem:[#allocation36_spill] sm:$0xff] %v15569_v59  ;;  %v15571_v49 = vpop.f32.mrb[38].mxu1  ;;  %v13366_v62 = vpop.f32.mrb[31].mxu0 }
 0x4ab   :  { %16807 = vst [vmem:[#allocation37_spill] sm:$0xff] %v15571_v49  ;;  %v13391_v50 = vpop.f32.mrb[39].mxu1 }
 0x4ad   :  { %v15573_v63 = vpop.f32.mrb[32].mxu0 }
 0x4ae   :  { %16808 = vst [vmem:[#allocation38_spill] sm:$0xff] %v15573_v63  ;;  %v15575_v44 = vpop.f32.mrb[40].mxu1  ;;  %v13376_v54 = vpop.f32.mrb[33].mxu0 }
 0x4af   :  { %16809 = vst [vmem:[#allocation39_spill] sm:$0xff] %v15575_v44  ;;  %v13401_v0 = vpop.f32.mrb[41].mxu1 }
 0x4b0   :  { %v15596_v0 = vld [vmem:[#allocation11 + $0x20] sm:$0xff] }
 0x4b1   :  { %v15577_v3 = vpop.f32.mrb[34].mxu0 }
 0x4b2   :  { %16810 = vst [vmem:[#allocation40_spill] sm:$0xff] %v15577_v3  ;;  %v3240_v4 = vpop.f32.mrb[42].mxu1  ;;  %v13386_v6 = vpop.f32.mrb[35].mxu0 }
 0x4b3   :  { %v4281_v8 = vmul.f32 0.35355338, %v3240_v4  ;;  %v13411_v14 = vpop.f32.mrb[43].mxu1  ;;  %v15601_v6 = vld [vmem:[#allocation11 + $0x18] sm:$0xff] }
 0x4b5   :  { %v15579_v46 = vpop.f32.mrb[36].mxu0  ;;  %v15581_v9 = vadd.f32 %v14578_v1, %v4281_v8 }
 0x4b6   :  { %16811 = vst [vmem:[#allocation41_spill] sm:$0xff] %v15579_v46  ;;  %v3388_v11 = vpop.f32.mrb[44].mxu1  ;;  %v13396_v15 = vpop.f32.mrb[37].mxu0 }
 0x4b7   :  { %4314 = vmax.xlane.f32.xlu1 %v15581_v9  ;;  %v13421_v7 = vpop.f32.mrb[45].mxu1  ;;  %v4283_v35 = vmul.f32 0.35355338, %v3388_v11 }
 0x4b9   :  { %v3166_v16 = vpop.f32.mrb[38].mxu0  ;;  %v15604_v8 = vadd.f32 %v15601_v6, %v4283_v35 }
 0x4ba   :  { %v4280_v10 = vmul.f32 0.35355338, %v3166_v16  ;;  %v3536_v17 = vpop.f32.mrb[46].mxu1  ;;  %v13406_v2 = vpop.f32.mrb[39].mxu0 }
 0x4bb   :  { %v13431_v13 = vpop.f32.mrb[47].mxu1  ;;  %v4285_v54 = vmul.f32 0.35355338, %v3536_v17  ;;  %v15613_v2 = vld [vmem:[#allocation11 + $0x28] sm:$0xff] }
 0x4bc   :  { %v15587_v40 = vadd.f32 %v15584_v26, %v4280_v10  ;;  %v15608_v10 = vld [vmem:[#allocation11 + $0x30] sm:$0xff] }
 0x4bd   :  { %v3314_v21 = vpop.f32.mrb[40].mxu0  ;;  %v15616_v13 = vadd.f32 %v15613_v2, %v4285_v54 }
 0x4be   :  { %v4282_v18 = vmul.f32 0.35355338, %v3314_v21  ;;  %v3684_v27 = vpop.f32.mrb[48].mxu1  ;;  %v13416_v45 = vpop.f32.mrb[41].mxu0  ;;  %4312 = vmax.xlane.f32.xlu0 %v15587_v40 }
 0x4bf   :  { %v13441_v31 = vpop.f32.mrb[49].mxu1  ;;  %v4287_v16 = vmul.f32 0.35355338, %v3684_v27 }
 0x4c0   :  { %v15593_v36 = vadd.f32 %v15590_v32, %v4282_v18 }
 0x4c1   :  { %v3462_v33 = vpop.f32.mrb[42].mxu0 }
 0x4c2   :  { %v4284_v55 = vmul.f32 0.35355338, %v3462_v33  ;;  %v3832_v53 = vpop.f32.mrb[50].mxu1  ;;  %4316 = vmax.xlane.f32.xlu0 %v15593_v36  ;;  %v13426_v62 = vpop.f32.mrb[43].mxu0  ;;  %v15620_v33 = vld [vmem:[#allocation11 + $0x40] sm:$0xff] }
 0x4c3   :  { %v13451_v50 = vpop.f32.mrb[51].mxu1  ;;  %v4289_v27 = vmul.f32 0.35355338, %v3832_v53  ;;  %v15625_v62 = vld [vmem:[#allocation11 + $0x38] sm:$0xff] }
 0x4c4   :  { %v15599_v4 = vadd.f32 %v15596_v0, %v4284_v55  ;;  %v15628_v50 = vadd.f32 %v15625_v62, %v4287_v16 }
 0x4c5   :  { %v3610_v14 = vpop.f32.mrb[44].mxu0 }
 0x4c6   :  { %v4286_v1 = vmul.f32 0.35355338, %v3610_v14  ;;  %v3980_v11 = vpop.f32.mrb[52].mxu1  ;;  %v13436_v15 = vpop.f32.mrb[45].mxu0  ;;  %4320 = vmax.xlane.f32.xlu1 %v15599_v4  ;;  %4318 = vmax.xlane.f32.xlu0 %v15604_v8 }
 0x4c7   :  { %v13461_v7 = vpop.f32.mrb[53].mxu1  ;;  %v4291_v53 = vmul.f32 0.35355338, %v3980_v11 }
 0x4c8   :  { %v15611_v17 = vadd.f32 %v15608_v10, %v4286_v1 }
 0x4c9   :  { %v3758_v21 = vpop.f32.mrb[46].mxu0 }
 0x4ca   :  { %v4288_v18 = vmul.f32 0.35355338, %v3758_v21  ;;  %v4128_v45 = vpop.f32.mrb[54].mxu1  ;;  %v13446_v31 = vpop.f32.mrb[47].mxu0  ;;  %4324 = vmax.xlane.f32.xlu1 %v15611_v17  ;;  %4322 = vmax.xlane.f32.xlu0 %v15616_v13  ;;  %v15632_v21 = vld [vmem:[#allocation11 + $0x50] sm:$0xff] }
 0x4cb   :  { %v13471_v35 = vpop.f32.mrb[55].mxu1  ;;  %v15637_v31 = vld [vmem:[#allocation11 + $0x48] sm:$0xff] }
 0x4cc   :  { %v15623_v55 = vadd.f32 %v15620_v33, %v4288_v18  ;;  %v15640_v16 = vadd.f32 %v15637_v31, %v4289_v27 }
 0x4cd   :  { %v3906_v54 = vpop.f32.mrb[48].mxu0 }
 0x4ce   :  { %v4290_v14 = vmul.f32 0.35355338, %v3906_v54  ;;  %v4276_v1 = vpop.f32.mrb[56].mxu1  ;;  %v13456_v15 = vpop.f32.mrb[49].mxu0  ;;  %4328 = vmax.xlane.f32.xlu1 %v15623_v55  ;;  %4326 = vmax.xlane.f32.xlu0 %v15628_v50 }
 0x4cf   :  { %v13481_v7 = vpop.f32.mrb[57].mxu1  ;;  %v4293_v15 = vmul.f32 0.35355338, %v4128_v45 }
 0x4d0   :  { %v15635_v18 = vadd.f32 %v15632_v21, %v4290_v14  ;;  %v15644_v7 = vld [vmem:[#allocation11 + $0x60] sm:$0xff]  ;;  %v15649_v14 = vld [vmem:[#allocation11 + $0x58] sm:$0xff] }
 0x4d1   :  { %v4054_v35 = vpop.f32.mrb[50].mxu0  ;;  %v15652_v44 = vadd.f32 %v15649_v14, %v4291_v53 }
 0x4d2   :  { %v4292_v54 = vmul.f32 0.35355338, %v4054_v35  ;;  %v13466_v39 = vpop.f32.mrb[51].mxu0  ;;  %4332 = vmax.xlane.f32.xlu1 %v15635_v18  ;;  %4330 = vmax.xlane.f32.xlu0 %v15640_v16  ;;  %v15656_v35 = vld [vmem:[#allocation11 + $0x70] sm:$0xff] }
 0x4d3   :  { %v4295_v39 = vmul.f32 0.35355338, %v4276_v1 }
 0x4d4   :  { %v15647_v11 = vadd.f32 %v15644_v7, %v4292_v54  ;;  %v15661_v54 = vld [vmem:[#allocation11 + $0x68] sm:$0xff] }
 0x4d5   :  { %v4202_v27 = vpop.f32.mrb[52].mxu0  ;;  %v15664_v3 = vadd.f32 %v15661_v54, %v4293_v15 }
 0x4d6   :  { %v4294_v46 = vmul.f32 0.35355338, %v4202_v27  ;;  %v13476_v49 = vpop.f32.mrb[53].mxu0  ;;  %4336 = vmax.xlane.f32.xlu1 %v15647_v11  ;;  %4334 = vmax.xlane.f32.xlu0 %v15652_v44 }
 0x4d7   :  { %v14593_v49 = vld [vmem:[#allocation11 + $0x78] sm:$0xff] }
 0x4d8   :  { %v15659_v45 = vadd.f32 %v15656_v35, %v4294_v46  ;;  %v15668_v53 = vadd.f32 %v14593_v49, %v4295_v39 }
 0x4da   :  { %4340 = vmax.xlane.f32.xlu1 %v15659_v45  ;;  %4338 = vmax.xlane.f32.xlu0 %v15664_v3 }
 0x4de   :  { %4342 = vmax.xlane.f32.xlu0 %v15668_v53 }
 0x544   :  { %v4315_v1 = vpop.xlane.xlu1 %4314 }
 0x545   :  { %vm4345_vm6 = vcmp.eq.f32.partialorder %v4315_v1, -inf }
 0x546   :  { %v4361_v27 = vsel %vm4345_vm6, 0.0, %v4315_v1 }
 0x547   :  { %v4377_v46 = vsub.f32 %v15581_v9, %v4361_v27 }
 0x549   :  { %v4394_v58 = vmul.f32 1.442695, %v4377_v46 }
 0x54b   :  { %14290 = vpow2.f32 %v4394_v58  ;;  %v4313_v63 = vpop.xlane.xlu0 %4312 }
 0x54c   :  { %vm4344_vm7 = vcmp.eq.f32.partialorder %v4313_v63, -inf }
 0x54d   :  { %v4360_v15 = vsel %vm4344_vm7, 0.0, %v4313_v63 }
 0x54e   :  { %v4376_v41 = vsub.f32 %v15587_v40, %v4360_v15 }
 0x54f   :  { %v4317_v59 = vpop.xlane.xlu0 %4316 }
 0x550   :  { %v4392_v48 = vmul.f32 1.442695, %v4376_v41  ;;  %vm4346_vm8 = vcmp.eq.f32.partialorder %v4317_v59, -inf }
 0x551   :  { %v4362_v34 = vsel %vm4346_vm8, 0.0, %v4317_v59 }
 0x552   :  { %14292 = vpow2.f32 %v4392_v48  ;;  %v4378_v39 = vsub.f32 %v15593_v36, %v4362_v34 }
 0x553   :  { %v4321_v49 = vpop.xlane.xlu1 %4320  ;;  %v4319_v24 = vpop.xlane.xlu0 %4318 }
 0x554   :  { %v4396_v25 = vmul.f32 1.442695, %v4378_v39  ;;  %vm4348_vm9 = vcmp.eq.f32.partialorder %v4321_v49, -inf  ;;  %vm4347_vm10 = vcmp.eq.f32.partialorder %v4319_v24, -inf }
 0x555   :  { %v15674_v9 = vpop.eup %14290  ;;  %v4364_v58 = vsel %vm4348_vm9, 0.0, %v4321_v49  ;;  %v4363_v1 = vsel %vm4347_vm10, 0.0, %v4319_v24 }
 0x556   :  { %14294 = vpow2.f32 %v4396_v25  ;;  %v4380_v63 = vsub.f32 %v15599_v4, %v4364_v58  ;;  %v4379_v40 = vsub.f32 %v15604_v8, %v4363_v1  ;;  %4426 = vadd.xlane.f32.xlu0 %v15674_v9 }
 0x557   :  { %v4325_v41 = vpop.xlane.xlu1 %4324  ;;  %v4323_v48 = vpop.xlane.xlu0 %4322 }
 0x558   :  { %v4400_v59 = vmul.f32 1.442695, %v4380_v63  ;;  %v4398_v34 = vmul.f32 1.442695, %v4379_v40  ;;  %vm4350_vm11 = vcmp.eq.f32.partialorder %v4325_v41, -inf  ;;  %vm4349_vm12 = vcmp.eq.f32.partialorder %v4323_v48, -inf }
 0x559   :  { %v4366_v36 = vsel %vm4350_vm11, 0.0, %v4325_v41  ;;  %v4365_v27 = vsel %vm4349_vm12, 0.0, %v4323_v48 }
 0x55a   :  { %14296 = vpow2.f32 %v4400_v59  ;;  %v4382_v46 = vsub.f32 %v15611_v17, %v4366_v36  ;;  %v4381_v24 = vsub.f32 %v15616_v13, %v4365_v27 }
 0x55b   :  { %14298 = vpow2.f32 %v4398_v34  ;;  %v4329_v25 = vpop.xlane.xlu1 %4328  ;;  %v4327_v4 = vpop.xlane.xlu0 %4326 }
 0x55c   :  { %v15681_v15 = vpop.eup %14292  ;;  %v4404_v8 = vmul.f32 1.442695, %v4382_v46  ;;  %v4402_v39 = vmul.f32 1.442695, %v4381_v24  ;;  %vm4352_vm13 = vcmp.eq.f32.partialorder %v4329_v25, -inf  ;;  %vm4351_vm14 = vcmp.eq.f32.partialorder %v4327_v4, -inf }
 0x55d   :  { %v4368_v49 = vsel %vm4352_vm13, 0.0, %v4329_v25  ;;  %v4367_v58 = vsel %vm4351_vm14, 0.0, %v4327_v4  ;;  %4424 = vadd.xlane.f32.xlu1 %v15681_v15 }
 0x55e   :  { %14300 = vpow2.f32 %v4404_v8  ;;  %v4384_v1 = vsub.f32 %v15623_v55, %v4368_v49  ;;  %v4383_v17 = vsub.f32 %v15628_v50, %v4367_v58 }
 0x55f   :  { %14302 = vpow2.f32 %v4402_v39  ;;  %v4333_v13 = vpop.xlane.xlu1 %4332  ;;  %v4331_v63 = vpop.xlane.xlu0 %4330 }
 0x560   :  { %v15686_v40 = vpop.eup %14294  ;;  %v4408_v41 = vmul.f32 1.442695, %v4384_v1  ;;  %v4406_v48 = vmul.f32 1.442695, %v4383_v17  ;;  %vm4354_vm15 = vcmp.eq.f32.partialorder %v4333_v13, -inf  ;;  %vm4353_vm3 = vcmp.eq.f32.partialorder %v4331_v63, -inf }
 0x561   :  { %v4370_v59 = vsel %vm4354_vm15, 0.0, %v4333_v13  ;;  %v4369_v34 = vsel %vm4353_vm3, 0.0, %v4331_v63  ;;  %4428 = vadd.xlane.f32.xlu1 %v15686_v40 }
 0x562   :  { %14304 = vpow2.f32 %v4408_v41  ;;  %v4386_v36 = vsub.f32 %v15635_v18, %v4370_v59  ;;  %v4385_v55 = vsub.f32 %v15640_v16, %v4369_v34 }
 0x563   :  { %14306 = vpow2.f32 %v4406_v48  ;;  %v4337_v50 = vpop.xlane.xlu1 %4336  ;;  %v4335_v27 = vpop.xlane.xlu0 %4334 }
 0x564   :  { %v15691_v46 = vpop.eup %14296  ;;  %v4412_v24 = vmul.f32 1.442695, %v4386_v36  ;;  %v4410_v25 = vmul.f32 1.442695, %v4385_v55  ;;  %vm4356_vm4 = vcmp.eq.f32.partialorder %v4337_v50, -inf  ;;  %vm4355_vm5 = vcmp.eq.f32.partialorder %v4335_v27, -inf }
 0x565   :  { %v15693_v4 = vpop.eup %14298  ;;  %v4372_v8 = vsel %vm4356_vm4, 0.0, %v4337_v50  ;;  %v4371_v39 = vsel %vm4355_vm5, 0.0, %v4335_v27  ;;  %4432 = vadd.xlane.f32.xlu1 %v15691_v46 }
 0x566   :  { %14308 = vpow2.f32 %v4412_v24  ;;  %v4388_v18 = vsub.f32 %v15647_v11, %v4372_v8  ;;  %v4387_v16 = vsub.f32 %v15652_v44, %v4371_v39  ;;  %4430 = vadd.xlane.f32.xlu0 %v15693_v4  ;;  %v16812_v39 = vmov 0.0  }
 0x567   :  { %14310 = vpow2.f32 %v4410_v25  ;;  %v4341_v49 = vpop.xlane.xlu1 %4340  ;;  %v4339_v58 = vpop.xlane.xlu0 %4338 }
 0x568   :  { %v15699_v1 = vpop.eup %14300  ;;  %v4416_v17 = vmul.f32 1.442695, %v4388_v18  ;;  %v4414_v13 = vmul.f32 1.442695, %v4387_v16  ;;  %vm4358_vm6 = vcmp.eq.f32.partialorder %v4341_v49, -inf  ;;  %vm4357_vm7 = vcmp.eq.f32.partialorder %v4339_v58, -inf }
 0x569   :  { %v15701_v63 = vpop.eup %14302  ;;  %v4374_v41 = vsel %vm4358_vm6, 0.0, %v4341_v49  ;;  %v4373_v48 = vsel %vm4357_vm7, 0.0, %v4339_v58  ;;  %4436 = vadd.xlane.f32.xlu1 %v15699_v1  ;;  %v3080_v16 = vld [vmem:[#allocation8 + $0x8] sm:$0xff] }
 0x56a   :  { %14312 = vpow2.f32 %v4416_v17  ;;  %v4390_v44 = vsub.f32 %v15659_v45, %v4374_v41  ;;  %v4389_v11 = vsub.f32 %v15664_v3, %v4373_v48  ;;  %4434 = vadd.xlane.f32.xlu0 %v15701_v63  ;;  %v3081_v3 = vld [vmem:[#allocation8 + $0x28] sm:$0xff]  ;;  %13483 = vmatpush3.xpose.msra.mxu0 %v3080_v16 }
 0x56b   :  { %14314 = vpow2.f32 %v4414_v13  ;;  %v4343_v59 = vpop.xlane.xlu0 %4342  ;;  %13488 = vmatpush3.xpose.msra.mxu1 %v3081_v3  ;;  %13492 = vmatprep.subr.mxu0 %v16812_v39 }
 0x56c   :  { %v15707_v34 = vpop.eup %14304  ;;  %v4420_v36 = vmul.f32 1.442695, %v4390_v44  ;;  %v4418_v55 = vmul.f32 1.442695, %v4389_v11  ;;  %vm4359_vm8 = vcmp.eq.f32.partialorder %v4343_v59, -inf  ;;  %13497 = vmatprep.subr.mxu1 %v16812_v39 }
 0x56d   :  { %v15709_v50 = vpop.eup %14306  ;;  %v4375_v27 = vsel %vm4359_vm8, 0.0, %v4343_v59  ;;  %4440 = vadd.xlane.f32.xlu1 %v15707_v34 }
 0x56e   :  { %14316 = vpow2.f32 %v4420_v36  ;;  %v4391_v24 = vsub.f32 %v15668_v53, %v4375_v27  ;;  %4438 = vadd.xlane.f32.xlu0 %v15709_v50  ;;  %v3083_v27 = vld [vmem:[#allocation8 + $0x68] sm:$0xff] }
 0x56f   :  { %14318 = vpow2.f32 %v4418_v55 }
 0x570   :  { %v15714_v45 = vpop.eup %14308  ;;  %v4422_v25 = vmul.f32 1.442695, %v4391_v24 }
 0x571   :  { %v15716_v8 = vpop.eup %14310  ;;  %4444 = vadd.xlane.f32.xlu1 %v15714_v45 }
 0x572   :  { %14320 = vpow2.f32 %v4422_v25  ;;  %4442 = vadd.xlane.f32.xlu0 %v15716_v8 }
 0x574   :  { %v15721_v18 = vpop.eup %14312 }
 0x575   :  { %v15723_v53 = vpop.eup %14314  ;;  %4448 = vadd.xlane.f32.xlu1 %v15721_v18 }
 0x576   :  { %4446 = vadd.xlane.f32.xlu0 %v15723_v53 }
 0x578   :  { %v15727_v49 = vpop.eup %14316 }
 0x579   :  { %v15730_v58 = vpop.eup %14318  ;;  %4452 = vadd.xlane.f32.xlu1 %v15727_v49 }
 0x57a   :  { %4450 = vadd.xlane.f32.xlu0 %v15730_v58 }
 0x57c   :  { %v15734_v17 = vpop.eup %14320 }
 0x57e   :  { %4454 = vadd.xlane.f32.xlu0 %v15734_v17 }
 0x58a   :  { %5658 = vrot.lane.b32.xlu1 %v15154_v51, %s14900_s4 }
 0x58e   :  { %5806 = vrot.lane.b32.xlu1 %v15166_v60, %s14900_s4 }
 0x592   :  { %5880 = vrot.lane.b32.xlu1 %v15178_v5, %s14900_s4 }
 0x594   :  { %5732 = vrot.lane.b32.xlu0 %v15161_v57, %s14900_s4 }
 0x596   :  { %6028 = vrot.lane.b32.xlu1 %v15199_v19, %s14900_s4 }
 0x598   :  { %5954 = vrot.lane.b32.xlu0 %v15189_v12, %s14900_s4 }
 0x59a   :  { %6176 = vrot.lane.b32.xlu1 %v15228_v37, %s14900_s4 }
 0x59c   :  { %6102 = vrot.lane.b32.xlu0 %v15212_v28, %s14900_s4 }
 0x59e   :  { %6324 = vrot.lane.b32.xlu1 %v15255_v47, %s14900_s4 }
 0x5a0   :  { %6250 = vrot.lane.b32.xlu0 %v15244_v43, %s14900_s4 }
 0x5a2   :  { %6472 = vrot.lane.b32.xlu1 %v15264_v52, %s14900_s4 }
 0x5a4   :  { %6398 = vrot.lane.b32.xlu0 %v15201_v20, %s14900_s4 }
 0x5a6   :  { %6620 = vrot.lane.b32.xlu1 %v15272_v56, %s14900_s4 }
 0x5a8   :  { %6546 = vrot.lane.b32.xlu0 %v15214_v29, %s14900_s4 }
 0x5aa   :  { %6768 = vrot.lane.b32.xlu1 %v15280_v61, %s14900_s4 }
 0x5ac   :  { %6694 = vrot.lane.b32.xlu0 %v15230_v38, %s14900_s4 }
 0x5e3   :  { %v4427_v13 = vpop.xlane.xlu0 %4426 }
 0x5e4   :  { %v4457_v41 = vmax.f32 %v4427_v13, 1e-30 }
 0x5e6   :  { %14322 = vrcp.f32 %v4457_v41 }
 0x5ea   :  { %v4425_v48 = vpop.xlane.xlu1 %4424 }
 0x5eb   :  { %v4456_v44 = vmax.f32 %v4425_v48, 1e-30 }
 0x5ed   :  { %14324 = vrcp.f32 %v4456_v44 }
 0x5ee   :  { %v4429_v11 = vpop.xlane.xlu1 %4428 }
 0x5ef   :  { %v4458_v59 = vmax.f32 %v4429_v11, 1e-30 }
 0x5f0   :  { %v14323_v36 = vpop.eup %14322 }
 0x5f1   :  { %14326 = vrcp.f32 %v4458_v59  ;;  %v4489_v55 = vmul.f32 %v14323_v36, %v15674_v9  ;;  %v3082_v59 = vld [vmem:[#allocation8 + $0x48] sm:$0xff] }
 0x5f2   :  { %v4433_v24 = vpop.xlane.xlu1 %4432 }
 0x5f3   :  { %v4460_v3 = vmax.f32 %v4433_v24, 1e-30  ;;  %13490 = vmatmul.mubr.f32.vlgmr.msra.gmra.mrb[58].mxu1 %v4489_v55  ;;  %v4431_v25 = vpop.xlane.xlu0 %4430 }
 0x5f4   :  { %v4459_v16 = vmax.f32 %v4431_v25, 1e-30  ;;  %13498 = vmatpush3.xpose.msra.mxu1 %v3083_v27  ;;  %13499 = vmatprep.mubr.msk.f32.mxu1 %vm14898_vm1, %v16812_v39 }
 0x5f5   :  { %14328 = vrcp.f32 %v4460_v3  ;;  %13507 = vmatprep.subr.mxu1 %v16812_v39 }
 0x5f6   :  { %14330 = vrcp.f32 %v4459_v16  ;;  %v4437_v13 = vpop.xlane.xlu1 %4436  ;;  %v3084_v16 = vld [vmem:[#allocation8 + $0x88] sm:$0xff] }
 0x5f7   :  { %v14325_v41 = vpop.eup %14324  ;;  %v4462_v48 = vmax.f32 %v4437_v13, 1e-30  ;;  %v4435_v44 = vpop.xlane.xlu0 %4434 }
 0x5f8   :  { %v4461_v11 = vmax.f32 %v4435_v44, 1e-30  ;;  %v4488_v9 = vmul.f32 %v14325_v41, %v15681_v15 }
 0x5f9   :  { %14332 = vrcp.f32 %v4462_v48 }
 0x5fa   :  { %14334 = vrcp.f32 %v4461_v11  ;;  %13485 = vmatmul.mubr.f32.vlgmr.msra.gmra.mrb[54].mxu0 %v4488_v9  ;;  %v4441_v36 = vpop.xlane.xlu1 %4440 }
 0x5fb   :  { %v14327_v55 = vpop.eup %14326  ;;  %13493 = vmatpush3.xpose.msra.mxu0 %v3082_v59  ;;  %v4464_v27 = vmax.f32 %v4441_v36, 1e-30  ;;  %v4439_v24 = vpop.xlane.xlu0 %4438  ;;  %13494 = vmatprep.mubr.msk.f32.mxu0 %vm14898_vm1, %v16812_v39  ;;  %v3086_v59 = vld [vmem:[#allocation8 + $0xc8] sm:$0xff] }
 0x5fc   :  { %v4463_v3 = vmax.f32 %v4439_v24, 1e-30  ;;  %13502 = vmatprep.subr.mxu0 %v16812_v39  ;;  %v4490_v25 = vmul.f32 %v14327_v55, %v15686_v40  ;;  %v3085_v36 = vld [vmem:[#allocation8 + $0xa8] sm:$0xff] }
 0x5fd   :  { %14336 = vrcp.f32 %v4464_v27 }
 0x5fe   :  { %14338 = vrcp.f32 %v4463_v3  ;;  %13495 = vmatmul.mubr.f32.vlgmr.msra.gmra.mrb[56].mxu0 %v4490_v25  ;;  %v4445_v15 = vpop.xlane.xlu1 %4444 }
 0x5ff   :  { %v14329_v13 = vpop.eup %14328  ;;  %13503 = vmatpush3.xpose.msra.mxu0 %v3084_v16  ;;  %v4466_v41 = vmax.f32 %v4445_v15, 1e-30  ;;  %v4443_v48 = vpop.xlane.xlu0 %4442  ;;  %13504 = vmatprep.mubr.msk.f32.mxu0 %vm14898_vm1, %v16812_v39  ;;  %v3088_v15 = vld [vmem:[#allocation8 + $0x108] sm:$0xff] }
 0x600   :  { %v14331_v44 = vpop.eup %14330  ;;  %v4465_v11 = vmax.f32 %v4443_v48, 1e-30  ;;  %13512 = vmatprep.subr.mxu0 %v16812_v39  ;;  %v4492_v9 = vmul.f32 %v14329_v13, %v15691_v46  ;;  %v3087_v13 = vld [vmem:[#allocation8 + $0xe8] sm:$0xff] }
 0x601   :  { %14340 = vrcp.f32 %v4466_v41  ;;  %v4491_v40 = vmul.f32 %v14331_v44, %v15693_v4 }
 0x602   :  { %14342 = vrcp.f32 %v4465_v11  ;;  %13505 = vmatmul.mubr.f32.vlgmr.msra.gmra.mrb[58].mxu0 %v4492_v9  ;;  %v4449_v55 = vpop.xlane.xlu1 %4448 }
 0x603   :  { %v14333_v27 = vpop.eup %14332  ;;  %13513 = vmatpush3.xpose.msra.mxu0 %v3086_v59  ;;  %v4468_v24 = vmax.f32 %v4449_v55, 1e-30  ;;  %13500 = vmatmul.mubr.f32.vlgmr.msra.gmra.mrb[60].mxu1 %v4491_v40  ;;  %v4447_v3 = vpop.xlane.xlu0 %4446 }
 0x604   :  { %v14335_v25 = vpop.eup %14334  ;;  %13508 = vmatpush3.xpose.msra.mxu1 %v3085_v36  ;;  %v4467_v16 = vmax.f32 %v4447_v3, 1e-30  ;;  %13509 = vmatprep.mubr.msk.f32.mxu1 %vm14898_vm1, %v16812_v39  ;;  %v4494_v46 = vmul.f32 %v14333_v27, %v15699_v1  ;;  %v3089_v36 = vld [vmem:[#allocation8 + $0x128] sm:$0xff] }
 0x605   :  { %14344 = vrcp.f32 %v4468_v24  ;;  %13514 = vmatprep.mubr.msk.f32.mxu0 %vm14898_vm1, %v16812_v39  ;;  %13517 = vmatprep.subr.mxu1 %v16812_v39  ;;  %v4493_v4 = vmul.f32 %v14335_v25, %v15701_v63  ;;  %v3090_v63 = vld [vmem:[#allocation8 + $0x148] sm:$0xff] }
 0x606   :  { %14346 = vrcp.f32 %v4467_v16  ;;  %13522 = vmatprep.subr.mxu0 %v16812_v39  ;;  %13515 = vmatmul.mubr.f32.vlgmr.msra.gmra.mrb[60].mxu0 %v4494_v46  ;;  %v4453_v41 = vpop.xlane.xlu1 %4452  ;;  %v3092_v16 = vld [vmem:[#allocation8 + $0x188] sm:$0xff] }
 0x607   :  { %v14337_v48 = vpop.eup %14336  ;;  %13523 = vmatpush3.xpose.msra.mxu0 %v3088_v15  ;;  %v4470_v44 = vmax.f32 %v4453_v41, 1e-30  ;;  %13510 = vmatmul.mubr.f32.vlgmr.msra.gmra.mrb[62].mxu1 %v4493_v4  ;;  %v4451_v1 = vpop.xlane.xlu0 %4450  ;;  %v3091_v46 = vld [vmem:[#allocation8 + $0x168] sm:$0xff] }
 0x608   :  { %v14339_v11 = vpop.eup %14338  ;;  %13518 = vmatpush3.xpose.msra.mxu1 %v3087_v13  ;;  %v4469_v9 = vmax.f32 %v4451_v1, 1e-30  ;;  %13519 = vmatprep.mubr.msk.f32.mxu1 %vm14898_vm1, %v16812_v39  ;;  %v4496_v59 = vmul.f32 %v14337_v48, %v15707_v34  ;;  %v3094_v41 = vld [vmem:[#allocation8 + $0x1c8] sm:$0xff] }
 0x609   :  { %14348 = vrcp.f32 %v4470_v44  ;;  %13524 = vmatprep.mubr.msk.f32.mxu0 %vm14898_vm1, %v16812_v39  ;;  %13527 = vmatprep.subr.mxu1 %v16812_v39  ;;  %v4495_v40 = vmul.f32 %v14339_v11, %v15709_v50  ;;  %v3093_v44 = vld [vmem:[#allocation8 + $0x1a8] sm:$0xff] }
 0x60a   :  { %14350 = vrcp.f32 %v4469_v9  ;;  %13532 = vmatprep.subr.mxu0 %v16812_v39  ;;  %13525 = vmatmul.mubr.f32.vlgmr.msra.gmra.mrb[62].mxu0 %v4496_v59  ;;  %v5659_v55 = vpop.permute.xlu1 %5658  ;;  %v5625_v9 = vld [vmem:[#allocation7 + $0x10] sm:$0xff]  ;;  %v3095_v59 = vld [vmem:[#allocation8 + $0x1e8] sm:$0xff] }
 0x60b   :  { %v14341_v27 = vpop.eup %14340  ;;  %13533 = vmatpush3.xpose.msra.mxu0 %v3090_v63  ;;  %13520 = vmatmul.mubr.f32.vlgmr.msra.gmra.mrb[64].mxu1 %v4495_v40  ;;  %v4455_v24 = vpop.xlane.xlu0 %4454 }
 0x60c   :  { %v14343_v34 = vpop.eup %14342  ;;  %13528 = vmatpush3.xpose.msra.mxu1 %v3089_v36  ;;  %v4471_v3 = vmax.f32 %v4455_v24, 1e-30  ;;  %13529 = vmatprep.mubr.msk.f32.mxu1 %vm14898_vm1, %v16812_v39  ;;  %v4498_v25 = vmul.f32 %v14341_v27, %v15714_v45  ;;  %v5626_v27 = vld [vmem:[#allocation7 + $0x30] sm:$0xff] }
 0x60d   :  { %13534 = vmatprep.mubr.msk.f32.mxu0 %vm14898_vm1, %v16812_v39  ;;  %13537 = vmatprep.subr.mxu1 %v16812_v39  ;;  %v4497_v50 = vmul.f32 %v14343_v34, %v15716_v8  ;;  %v5629_v34 = vld [vmem:[#allocation7 + $0x90] sm:$0xff] }
 0x60e   :  { %14352 = vrcp.f32 %v4471_v3  ;;  %13542 = vmatprep.subr.mxu0 %v16812_v39  ;;  %13535 = vmatmul.mubr.f32.vlgmr.msra.gmra.mrb[64].mxu0 %v4498_v25  ;;  %v5807_v13 = vpop.permute.xlu1 %5806  ;;  %v5630_v25 = vld [vmem:[#allocation7 + $0xb0] sm:$0xff] }
 0x60f   :  { %v14345_v15 = vpop.eup %14344  ;;  %13543 = vmatpush3.xpose.msra.mxu0 %v3092_v16  ;;  %13530 = vmatmul.mubr.f32.vlgmr.msra.gmra.mrb[66].mxu1 %v4497_v50  ;;  %v5733_v48 = vpop.permute.xlu0 %5732 }
 0x610   :  { %v14347_v4 = vpop.eup %14346  ;;  %13538 = vmatpush3.xpose.msra.mxu1 %v3091_v46  ;;  %13539 = vmatprep.mubr.msk.f32.mxu1 %vm14898_vm1, %v16812_v39  ;;  %v4500_v45 = vmul.f32 %v14345_v15, %v15721_v18  ;;  %v5633_v46 = vld [vmem:[#allocation7 + $0x110] sm:$0xff] }
 0x611   :  { %13544 = vmatprep.mubr.msk.f32.mxu0 %vm14898_vm1, %v16812_v39  ;;  %13547 = vmatprep.subr.mxu1 %v16812_v39  ;;  %v4499_v8 = vmul.f32 %v14347_v4, %v15723_v53  ;;  %v5632_v15 = vld [vmem:[#allocation7 + $0xf0] sm:$0xff] }
 0x612   :  { %13552 = vmatprep.subr.mxu0 %v16812_v39  ;;  %13545 = vmatmul.mubr.f32.vlgmr.msra.gmra.mrb[66].mxu0 %v4500_v45  ;;  %v5881_v63 = vpop.permute.xlu1 %5880 }
 0x613   :  { %v14349_v1 = vpop.eup %14348  ;;  %13553 = vmatpush3.xpose.msra.mxu0 %v3094_v41  ;;  %13540 = vmatmul.mubr.f32.vlgmr.msra.gmra.mrb[68].mxu1 %v4499_v8  ;;  %v5955_v40 = vpop.permute.xlu0 %5954  ;;  %v5634_v41 = vld [vmem:[#allocation7 + $0x130] sm:$0xff] }
 0x614   :  { %v14351_v11 = vpop.eup %14350  ;;  %13548 = vmatpush3.xpose.msra.mxu1 %v3093_v44  ;;  %13549 = vmatprep.mubr.msk.f32.mxu1 %vm14898_vm1, %v16812_v39  ;;  %v4502_v18 = vmul.f32 %v14349_v1, %v15727_v49  ;;  %v5627_v49 = vld [vmem:[#allocation7 + $0x50] sm:$0xff] }
 0x615   :  { %13554 = vmatprep.mubr.msk.f32.mxu0 %vm14898_vm1, %v16812_v39  ;;  %13557 = vmatprep.subr.mxu1 %v16812_v39  ;;  %v4501_v53 = vmul.f32 %v14351_v11, %v15730_v58  ;;  %v5636_v8 = vld [vmem:[#allocation7 + $0x170] sm:$0xff] }
 0x616   :  { %13562 = vmatprep.subr.mxu0 %v16812_v39  ;;  %13555 = vmatmul.mubr.f32.vlgmr.msra.gmra.mrb[68].mxu0 %v4502_v18  ;;  %v6029_v24 = vpop.permute.xlu1 %6028  ;;  %v5639_v11 = vld [vmem:[#allocation7 + $0x1d0] sm:$0xff] }
 0x617   :  { %13563 = vmatpush3.msra.mxu0 %v5625_v9  ;;  %13550 = vmatmul.mubr.f32.vlgmr.msra.gmra.mrb[70].mxu1 %v4501_v53  ;;  %v6103_v3 = vpop.permute.xlu0 %6102  ;;  %v5638_v18 = vld [vmem:[#allocation7 + $0x1b0] sm:$0xff] }
 0x618   :  { %v14353_v36 = vpop.eup %14352  ;;  %13558 = vmatpush3.xpose.msra.mxu1 %v3095_v59  ;;  %13559 = vmatprep.mubr.msk.f32.mxu1 %vm14898_vm1, %v16812_v39  ;;  %v5640_v59 = vld [vmem:[#allocation7 + $0x1f0] sm:$0xff] }
 0x619   :  { %13564 = vmatprep.mubr.msk.f32.mxu0 %vm14898_vm1, %v16812_v39  ;;  %13567 = vmatprep.subr.mxu1 %v16812_v39  ;;  %v4503_v58 = vmul.f32 %v14353_v36, %v15734_v17  ;;  %v5628_v17 = vld [vmem:[#allocation7 + $0x70] sm:$0xff] }
 0x61a   :  { %13572 = vmatprep.subr.mxu0 %v16812_v39  ;;  %13565 = vmatmul.mubr.msk.f32.vlgmr.msra.gmra.mrb[70].mxu0 %vm549_vm2, %v5659_v55  ;;  %v5631_v55 = vld [vmem:[#allocation7 + $0xd0] sm:$0xff]  ;;  %v6177_v16 = vpop.permute.xlu1 %6176 }
 0x61b   :  { %13573 = vmatpush3.msra.mxu0 %v5627_v49  ;;  %13560 = vmatmul.mubr.f32.vlgmr.msra.gmra.mrb[72].mxu1 %v4503_v58  ;;  %v6251_v50 = vpop.permute.xlu0 %6250 }
 0x61c   :  { %13568 = vmatpush3.msra.mxu1 %v5626_v27  ;;  %13569 = vmatprep.mubr.msk.f32.mxu1 %vm14898_vm1, %v16812_v39 }
 0x61d   :  { %13574 = vmatprep.mubr.msk.f32.mxu0 %vm14898_vm1, %v16812_v39  ;;  %13577 = vmatprep.subr.mxu1 %v16812_v39 }
 0x61e   :  { %13575 = vmatmul.mubr.msk.f32.vlgmr.msra.gmra.mrb[72].mxu0 %vm549_vm2, %v5807_v13  ;;  %13582 = vmatprep.subr.mxu0 %v16812_v39  ;;  %v6325_v4 = vpop.permute.xlu1 %6324  ;;  %v5635_v13 = vld [vmem:[#allocation7 + $0x150] sm:$0xff] }
 0x61f   :  { %13570 = vmatmul.mubr.msk.f32.vlgmr.msra.gmra.mrb[74].mxu1 %vm549_vm2, %v5733_v48  ;;  %13583 = vmatpush3.msra.mxu0 %v5629_v34  ;;  %v6399_v45 = vpop.permute.xlu0 %6398  ;;  %v5637_v48 = vld [vmem:[#allocation7 + $0x190] sm:$0xff] }
 0x620   :  { %13578 = vmatpush3.msra.mxu1 %v5628_v17  ;;  %13579 = vmatprep.mubr.msk.f32.mxu1 %vm14898_vm1, %v16812_v39 }
 0x621   :  { %13584 = vmatprep.mubr.msk.f32.mxu0 %vm14898_vm1, %v16812_v39  ;;  %13587 = vmatprep.subr.mxu1 %v16812_v39 }
 0x622   :  { %13585 = vmatmul.mubr.msk.f32.vlgmr.msra.gmra.mrb[74].mxu0 %vm549_vm2, %v5955_v40  ;;  %13592 = vmatprep.subr.mxu0 %v16812_v39  ;;  %v6473_v44 = vpop.permute.xlu1 %6472 }
 0x623   :  { %13580 = vmatmul.mubr.msk.f32.vlgmr.msra.gmra.mrb[76].mxu1 %vm549_vm2, %v5881_v63  ;;  %13593 = vmatpush3.msra.mxu0 %v5631_v55  ;;  %v6547_v1 = vpop.permute.xlu0 %6546 }
 0x624   :  { %13588 = vmatpush3.msra.mxu1 %v5630_v25  ;;  %13589 = vmatprep.mubr.msk.f32.mxu1 %vm14898_vm1, %v16812_v39 }
 0x625   :  { %13594 = vmatprep.mubr.msk.f32.mxu0 %vm14898_vm1, %v16812_v39  ;;  %13597 = vmatprep.subr.mxu1 %v16812_v39 }
 0x626   :  { %13595 = vmatmul.mubr.msk.f32.vlgmr.msra.gmra.mrb[76].mxu0 %vm549_vm2, %v6103_v3  ;;  %13602 = vmatprep.subr.mxu0 %v16812_v39  ;;  %v6621_v9 = vpop.permute.xlu1 %6620 }
 0x627   :  { %13590 = vmatmul.mubr.msk.f32.vlgmr.msra.gmra.mrb[78].mxu1 %vm549_vm2, %v6029_v24  ;;  %13603 = vmatpush3.msra.mxu0 %v5633_v46  ;;  %v6695_v53 = vpop.permute.xlu0 %6694 }
 0x628   :  { %13598 = vmatpush3.msra.mxu1 %v5632_v15  ;;  %13599 = vmatprep.mubr.msk.f32.mxu1 %vm14898_vm1, %v16812_v39 }
 0x629   :  { %13604 = vmatprep.mubr.msk.f32.mxu0 %vm14898_vm1, %v16812_v39  ;;  %13607 = vmatprep.subr.mxu1 %v16812_v39 }
 0x62a   :  { %13605 = vmatmul.mubr.msk.f32.vlgmr.msra.gmra.mrb[78].mxu0 %vm549_vm2, %v6251_v50  ;;  %13612 = vmatprep.subr.mxu0 %v16812_v39  ;;  %v6769_v63 = vpop.permute.xlu1 %6768 }
 0x62b   :  { %13600 = vmatmul.mubr.msk.f32.vlgmr.msra.gmra.mrb[80].mxu1 %vm549_vm2, %v6177_v16  ;;  %13613 = vmatpush3.msra.mxu0 %v5635_v13 }
 0x62c   :  { %13608 = vmatpush3.msra.mxu1 %v5634_v41  ;;  %13609 = vmatprep.mubr.msk.f32.mxu1 %vm14898_vm1, %v16812_v39 }
 0x62d   :  { %13614 = vmatprep.mubr.msk.f32.mxu0 %vm14898_vm1, %v16812_v39  ;;  %13617 = vmatprep.subr.mxu1 %v16812_v39 }
 0x62e   :  { %13615 = vmatmul.mubr.msk.f32.vlgmr.msra.gmra.mrb[80].mxu0 %vm549_vm2, %v6399_v45  ;;  %13622 = vmatprep.subr.mxu0 %v16812_v39 }
 0x62f   :  { %13610 = vmatmul.mubr.msk.f32.vlgmr.msra.gmra.mrb[82].mxu1 %vm549_vm2, %v6325_v4  ;;  %13623 = vmatpush3.msra.mxu0 %v5637_v48 }
 0x630   :  { %13618 = vmatpush3.msra.mxu1 %v5636_v8  ;;  %13619 = vmatprep.mubr.msk.f32.mxu1 %vm14898_vm1, %v16812_v39 }
 0x631   :  { %13624 = vmatprep.mubr.msk.f32.mxu0 %vm14898_vm1, %v16812_v39  ;;  %13627 = vmatprep.subr.mxu1 %v16812_v39 }
 0x632   :  { %13625 = vmatmul.mubr.msk.f32.vlgmr.msra.gmra.mrb[82].mxu0 %vm549_vm2, %v6547_v1  ;;  %13632 = vmatprep.subr.mxu0 %v16812_v39 }
 0x633   :  { %13620 = vmatmul.mubr.msk.f32.vlgmr.msra.gmra.mrb[84].mxu1 %vm549_vm2, %v6473_v44  ;;  %13633 = vmatpush3.msra.mxu0 %v5639_v11 }
 0x634   :  { %13628 = vmatpush3.msra.mxu1 %v5638_v18  ;;  %13629 = vmatprep.mubr.msk.f32.mxu1 %vm14898_vm1, %v16812_v39 }
 0x635   :  { %13634 = vmatprep.mubr.msk.f32.mxu0 %vm14898_vm1, %v16812_v39  ;;  %13637 = vmatprep.subr.mxu1 %v16812_v39 }
 0x636   :  { %13635 = vmatmul.mubr.msk.f32.vlgmr.msra.gmra.mrb[84].mxu0 %vm549_vm2, %v6695_v53  ;;  %13642 = vmatprep.subr.mxu0 %v16812_v39 }
 0x637   :  { %13630 = vmatmul.mubr.msk.f32.vlgmr.msra.gmra.mrb[86].mxu1 %vm549_vm2, %v6621_v9  ;;  %13644 = vmatprep.mubr.msk.f32.mxu0 %vm14898_vm1, %v16812_v39 }
 0x638   :  { %13638 = vmatpush3.msra.mxu1 %v5640_v59  ;;  %13639 = vmatprep.mubr.msk.f32.mxu1 %vm14898_vm1, %v16812_v39 }
 0x639   :  { %13647 = vmatprep.subr.mxu1 %v16812_v39 }
 0x63b   :  { %13640 = vmatmul.mubr.msk.f32.vlgmr.msra.gmra.mrb[88].mxu1 %vm549_vm2, %v6769_v63 }
 0x63c   :  { %13649 = vmatprep.mubr.msk.f32.mxu1 %vm14898_vm1, %v16812_v39 }
 0x6c6   :  { %v15879_v40 = vpop.f32.mrb[58].mxu1 }
 0x6c7   :  { %v13491_v36 = vpop.f32.mrb[59].mxu1 }
 0x6cd   :  { %v15881_v49 = vpop.f32.mrb[54].mxu0 }
 0x6ce   :  { %v13486_v58 = vpop.f32.mrb[55].mxu0 }
 0x6d1   :  { %v15883_v27 = vpop.f32.mrb[56].mxu0 }
 0x6d2   :  { %v13496_v24 = vpop.f32.mrb[57].mxu0 }
 0x6d5   :  { %v15885_v34 = vpop.f32.mrb[58].mxu0 }
 0x6d6   :  { %v15887_v3 = vpop.f32.mrb[60].mxu1  ;;  %v13506_v17 = vpop.f32.mrb[59].mxu0 }
 0x6d7   :  { %v13501_v55 = vpop.f32.mrb[61].mxu1 }
 0x6d9   :  { %v15889_v25 = vpop.f32.mrb[60].mxu0 }
 0x6da   :  { %v15891_v16 = vpop.f32.mrb[62].mxu1  ;;  %v13516_v50 = vpop.f32.mrb[61].mxu0 }
 0x6db   :  { %v13511_v46 = vpop.f32.mrb[63].mxu1 }
 0x6dd   :  { %v15893_v15 = vpop.f32.mrb[62].mxu0 }
 0x6de   :  { %v15895_v4 = vpop.f32.mrb[64].mxu1  ;;  %v13526_v13 = vpop.f32.mrb[63].mxu0 }
 0x6df   :  { %v13521_v45 = vpop.f32.mrb[65].mxu1 }
 0x6e1   :  { %v15897_v41 = vpop.f32.mrb[64].mxu0 }
 0x6e2   :  { %v15899_v48 = vpop.f32.mrb[66].mxu1  ;;  %v13536_v8 = vpop.f32.mrb[65].mxu0 }
 0x6e3   :  { %v13531_v44 = vpop.f32.mrb[67].mxu1 }
 0x6e5   :  { %v15901_v1 = vpop.f32.mrb[66].mxu0 }
 0x6e6   :  { %v15903_v11 = vpop.f32.mrb[68].mxu1  ;;  %v13546_v18 = vpop.f32.mrb[67].mxu0 }
 0x6e7   :  { %v13541_v9 = vpop.f32.mrb[69].mxu1 }
 0x6e9   :  { %v15905_v53 = vpop.f32.mrb[68].mxu0 }
 0x6ea   :  { %v15907_v59 = vpop.f32.mrb[70].mxu1  ;;  %v13556_v63 = vpop.f32.mrb[69].mxu0 }
 0x6eb   :  { %v13551_v36 = vpop.f32.mrb[71].mxu1 }
 0x6ec   :  { %v14594_v36 = vld [vmem:[#allocation11 + $0x8] sm:$0xff] }
 0x6ed   :  { %v5728_v58 = vpop.f32.mrb[70].mxu0 }
 0x6ee   :  { %v15909_v24 = vpop.f32.mrb[72].mxu1  ;;  %v6842_v17 = vmul.f32 0.35355338, %v5728_v58  ;;  %v13566_v55 = vpop.f32.mrb[71].mxu0 }
 0x6ef   :  { %v13561_v50 = vpop.f32.mrb[73].mxu1 }
 0x6f0   :  { %v15912_v46 = vadd.f32 %v15584_v26, %v6842_v17 }
 0x6f1   :  { %v5876_v13 = vpop.f32.mrb[72].mxu0 }
 0x6f2   :  { %v5802_v45 = vpop.f32.mrb[74].mxu1  ;;  %v6844_v8 = vmul.f32 0.35355338, %v5876_v13  ;;  %v13576_v44 = vpop.f32.mrb[73].mxu0  ;;  %6874 = vmax.xlane.f32.xlu0 %v15912_v46 }
 0x6f3   :  { %v6843_v18 = vmul.f32 0.35355338, %v5802_v45  ;;  %v13571_v9 = vpop.f32.mrb[75].mxu1 }
 0x6f4   :  { %v15916_v63 = vadd.f32 %v15590_v32, %v6844_v8 }
 0x6f5   :  { %v15918_v30 = vadd.f32 %v14594_v36, %v6843_v18  ;;  %v6024_v58 = vpop.f32.mrb[74].mxu0 }
 0x6f6   :  { %v5950_v55 = vpop.f32.mrb[76].mxu1  ;;  %v6846_v50 = vmul.f32 0.35355338, %v6024_v58  ;;  %6878 = vmax.xlane.f32.xlu0 %v15916_v63  ;;  %v13586_v26 = vpop.f32.mrb[75].mxu0 }
 0x6f7   :  { %v6845_v17 = vmul.f32 0.35355338, %v5950_v55  ;;  %6876 = vmax.xlane.f32.xlu1 %v15918_v30  ;;  %v13581_v13 = vpop.f32.mrb[77].mxu1 }
 0x6f8   :  { %v15923_v44 = vadd.f32 %v15596_v0, %v6846_v50 }
 0x6f9   :  { %v15926_v45 = vadd.f32 %v15601_v6, %v6845_v17  ;;  %v6172_v32 = vpop.f32.mrb[76].mxu0 }
 0x6fa   :  { %v6098_v8 = vpop.f32.mrb[78].mxu1  ;;  %v6848_v18 = vmul.f32 0.35355338, %v6172_v32  ;;  %v13596_v9 = vpop.f32.mrb[77].mxu0 }
 0x6fb   :  { %v6847_v36 = vmul.f32 0.35355338, %v6098_v8  ;;  %6882 = vmax.xlane.f32.xlu1 %v15923_v44  ;;  %6880 = vmax.xlane.f32.xlu0 %v15926_v45  ;;  %v13591_v58 = vpop.f32.mrb[79].mxu1 }
 0x6fc   :  { %v15931_v55 = vadd.f32 %v15608_v10, %v6848_v18 }
 0x6fd   :  { %v15934_v26 = vadd.f32 %v15613_v2, %v6847_v36  ;;  %v6320_v0 = vpop.f32.mrb[78].mxu0 }
 0x6fe   :  { %v6246_v50 = vpop.f32.mrb[80].mxu1  ;;  %v6850_v6 = vmul.f32 0.35355338, %v6320_v0  ;;  %v13606_v17 = vpop.f32.mrb[79].mxu0 }
 0x6ff   :  { %v6849_v13 = vmul.f32 0.35355338, %v6246_v50  ;;  %6886 = vmax.xlane.f32.xlu1 %v15931_v55  ;;  %6884 = vmax.xlane.f32.xlu0 %v15934_v26  ;;  %v13601_v32 = vpop.f32.mrb[81].mxu1 }
 0x700   :  { %v15939_v8 = vadd.f32 %v15620_v33, %v6850_v6 }
 0x701   :  { %v15942_v9 = vadd.f32 %v15625_v62, %v6849_v13  ;;  %v6468_v10 = vpop.f32.mrb[80].mxu0 }
 0x702   :  { %v6394_v18 = vpop.f32.mrb[82].mxu1  ;;  %v6852_v2 = vmul.f32 0.35355338, %v6468_v10  ;;  %v13616_v36 = vpop.f32.mrb[81].mxu0 }
 0x703   :  { %v6851_v58 = vmul.f32 0.35355338, %v6394_v18  ;;  %6890 = vmax.xlane.f32.xlu1 %v15939_v8  ;;  %6888 = vmax.xlane.f32.xlu0 %v15942_v9  ;;  %v13611_v0 = vpop.f32.mrb[83].mxu1 }
 0x704   :  { %v15947_v50 = vadd.f32 %v15632_v21, %v6852_v2 }
 0x705   :  { %v15950_v17 = vadd.f32 %v15637_v31, %v6851_v58  ;;  %v6616_v33 = vpop.f32.mrb[82].mxu0 }
 0x706   :  { %v6542_v6 = vpop.f32.mrb[84].mxu1  ;;  %v6854_v62 = vmul.f32 0.35355338, %v6616_v33  ;;  %v13626_v13 = vpop.f32.mrb[83].mxu0 }
 0x707   :  { %v6853_v32 = vmul.f32 0.35355338, %v6542_v6  ;;  %6894 = vmax.xlane.f32.xlu1 %v15947_v50  ;;  %6892 = vmax.xlane.f32.xlu0 %v15950_v17  ;;  %v13621_v10 = vpop.f32.mrb[85].mxu1 }
 0x708   :  { %v15955_v18 = vadd.f32 %v15644_v7, %v6854_v62 }
 0x709   :  { %v15958_v36 = vadd.f32 %v15649_v14, %v6853_v32  ;;  %v6764_v21 = vpop.f32.mrb[84].mxu0  ;;  %v14595_v32 = vld [vmem:[#allocation11 + $0x78] sm:$0xff] }
 0x70a   :  { %v6690_v2 = vpop.f32.mrb[86].mxu1  ;;  %v6856_v31 = vmul.f32 0.35355338, %v6764_v21  ;;  %v13636_v58 = vpop.f32.mrb[85].mxu0 }
 0x70b   :  { %v6855_v0 = vmul.f32 0.35355338, %v6690_v2  ;;  %6898 = vmax.xlane.f32.xlu1 %v15955_v18  ;;  %6896 = vmax.xlane.f32.xlu0 %v15958_v36  ;;  %v13631_v33 = vpop.f32.mrb[87].mxu1 }
 0x70c   :  { %v15963_v6 = vadd.f32 %v15656_v35, %v6856_v31 }
 0x70d   :  { %v15966_v13 = vadd.f32 %v15661_v54, %v6855_v0 }
 0x70e   :  { %v6838_v7 = vpop.f32.mrb[88].mxu1 }
 0x70f   :  { %v6857_v62 = vmul.f32 0.35355338, %v6838_v7  ;;  %6902 = vmax.xlane.f32.xlu1 %v15963_v6  ;;  %6900 = vmax.xlane.f32.xlu0 %v15966_v13  ;;  %v13641_v14 = vpop.f32.mrb[89].mxu1 }
 0x711   :  { %v15970_v10 = vadd.f32 %v14595_v32, %v6857_v62 }
 0x713   :  { %6904 = vmax.xlane.f32.xlu0 %v15970_v10 }
 0x77f   :  { %v6875_v21 = vpop.xlane.xlu0 %6874 }
 0x780   :  { %vm6906_vm9 = vcmp.eq.f32.partialorder %v6875_v21, -inf }
 0x781   :  { %v6922_v2 = vsel %vm6906_vm9, 0.0, %v6875_v21 }
 0x782   :  { %v6938_v35 = vsub.f32 %v15912_v46, %v6922_v2 }
 0x783   :  { %v6879_v31 = vpop.xlane.xlu0 %6878 }
 0x784   :  { %v6954_v54 = vmul.f32 1.442695, %v6938_v35  ;;  %vm6908_vm10 = vcmp.eq.f32.partialorder %v6879_v31, -inf  ;;  %v6877_v58 = vpop.xlane.xlu1 %6876 }
 0x785   :  { %v6924_v0 = vsel %vm6908_vm10, 0.0, %v6879_v31  ;;  %vm6907_vm11 = vcmp.eq.f32.partialorder %v6877_v58, -inf }
 0x786   :  { %14354 = vpow2.f32 %v6954_v54  ;;  %v6940_v33 = vsub.f32 %v15916_v63, %v6924_v0  ;;  %v6923_v7 = vsel %vm6907_vm11, 0.0, %v6877_v58 }
 0x787   :  { %v6939_v62 = vsub.f32 %v15918_v30, %v6923_v7 }
 0x788   :  { %v6958_v14 = vmul.f32 1.442695, %v6940_v33  ;;  %v6883_v32 = vpop.xlane.xlu1 %6882  ;;  %v6881_v23 = vpop.xlane.xlu0 %6880 }
 0x789   :  { %v6956_v42 = vmul.f32 1.442695, %v6939_v62  ;;  %vm6910_vm12 = vcmp.eq.f32.partialorder %v6883_v32, -inf  ;;  %vm6909_vm13 = vcmp.eq.f32.partialorder %v6881_v23, -inf }
 0x78a   :  { %14356 = vpow2.f32 %v6958_v14  ;;  %v6926_v46 = vsel %vm6910_vm12, 0.0, %v6883_v32  ;;  %v6925_v21 = vsel %vm6909_vm13, 0.0, %v6881_v23 }
 0x78b   :  { %14358 = vpow2.f32 %v6956_v42  ;;  %v6942_v2 = vsub.f32 %v15923_v44, %v6926_v46  ;;  %v6941_v35 = vsub.f32 %v15926_v45, %v6925_v21 }
 0x78c   :  { %v6887_v31 = vpop.xlane.xlu1 %6886  ;;  %v6885_v54 = vpop.xlane.xlu0 %6884 }
 0x78d   :  { %v6962_v63 = vmul.f32 1.442695, %v6942_v2  ;;  %v6960_v58 = vmul.f32 1.442695, %v6941_v35  ;;  %vm6912_vm14 = vcmp.eq.f32.partialorder %v6887_v31, -inf  ;;  %vm6911_vm15 = vcmp.eq.f32.partialorder %v6885_v54, -inf }
 0x78e   :  { %v6928_v30 = vsel %vm6912_vm14, 0.0, %v6887_v31  ;;  %v6927_v0 = vsel %vm6911_vm15, 0.0, %v6885_v54 }
 0x78f   :  { %14360 = vpow2.f32 %v6962_v63  ;;  %v6944_v33 = vsub.f32 %v15931_v55, %v6928_v30  ;;  %v6943_v7 = vsub.f32 %v15934_v26, %v6927_v0 }
 0x790   :  { %v15980_v62 = vpop.eup %14354  ;;  %14362 = vpow2.f32 %v6960_v58  ;;  %v6891_v42 = vpop.xlane.xlu1 %6890 }
 0x791   :  { %v6889_v23 = vpop.xlane.xlu0 %6888  ;;  %v6966_v44 = vmul.f32 1.442695, %v6944_v33  ;;  %v6964_v45 = vmul.f32 1.442695, %v6943_v7  ;;  %vm6914_vm3 = vcmp.eq.f32.partialorder %v6891_v42, -inf  ;;  %6986 = vadd.xlane.f32.xlu1 %v15980_v62 }
 0x792   :  { %vm6913_vm4 = vcmp.eq.f32.partialorder %v6889_v23, -inf  ;;  %v6930_v14 = vsel %vm6914_vm3, 0.0, %v6891_v42 }
 0x793   :  { %v6929_v32 = vsel %vm6913_vm4, 0.0, %v6889_v23  ;;  %14364 = vpow2.f32 %v6966_v44  ;;  %v6946_v46 = vsub.f32 %v15939_v8, %v6930_v14 }
 0x794   :  { %v6945_v55 = vsub.f32 %v15942_v9, %v6929_v32  ;;  %v15985_v21 = vpop.eup %14356  ;;  %14366 = vpow2.f32 %v6964_v45  ;;  %v6895_v26 = vpop.xlane.xlu1 %6894 }
 0x795   :  { %v6893_v2 = vpop.xlane.xlu0 %6892  ;;  %v15987_v35 = vpop.eup %14358  ;;  %v6970_v31 = vmul.f32 1.442695, %v6946_v46  ;;  %vm6916_vm5 = vcmp.eq.f32.partialorder %v6895_v26, -inf  ;;  %6990 = vadd.xlane.f32.xlu1 %v15985_v21 }
 0x796   :  { %v6968_v54 = vmul.f32 1.442695, %v6945_v55  ;;  %vm6915_vm6 = vcmp.eq.f32.partialorder %v6893_v2, -inf  ;;  %v6932_v63 = vsel %vm6916_vm5, 0.0, %v6895_v26  ;;  %6988 = vadd.xlane.f32.xlu0 %v15987_v35 }
 0x797   :  { %v6931_v58 = vsel %vm6915_vm6, 0.0, %v6893_v2  ;;  %14368 = vpow2.f32 %v6970_v31  ;;  %v6948_v8 = vsub.f32 %v15947_v50, %v6932_v63 }
 0x798   :  { %v6947_v9 = vsub.f32 %v15950_v17, %v6931_v58  ;;  %14370 = vpow2.f32 %v6968_v54  ;;  %v6899_v30 = vpop.xlane.xlu1 %6898 }
 0x799   :  { %v6897_v0 = vpop.xlane.xlu0 %6896  ;;  %v15993_v33 = vpop.eup %14360  ;;  %v6974_v7 = vmul.f32 1.442695, %v6948_v8  ;;  %vm6918_vm7 = vcmp.eq.f32.partialorder %v6899_v30, -inf }
 0x79a   :  { %v6972_v42 = vmul.f32 1.442695, %v6947_v9  ;;  %vm6917_vm8 = vcmp.eq.f32.partialorder %v6897_v0, -inf  ;;  %v15995_v23 = vpop.eup %14362  ;;  %v6934_v44 = vsel %vm6918_vm7, 0.0, %v6899_v30  ;;  %6994 = vadd.xlane.f32.xlu1 %v15993_v33 }
 0x79b   :  { %v6933_v45 = vsel %vm6917_vm8, 0.0, %v6897_v0  ;;  %14372 = vpow2.f32 %v6974_v7  ;;  %v6950_v50 = vsub.f32 %v15955_v18, %v6934_v44  ;;  %6992 = vadd.xlane.f32.xlu0 %v15995_v23 }
 0x79c   :  { %v6949_v17 = vsub.f32 %v15958_v36, %v6933_v45  ;;  %14374 = vpow2.f32 %v6972_v42  ;;  %v6903_v14 = vpop.xlane.xlu1 %6902 }
 0x79d   :  { %v6901_v32 = vpop.xlane.xlu0 %6900  ;;  %v16001_v46 = vpop.eup %14364  ;;  %v6978_v55 = vmul.f32 1.442695, %v6950_v50  ;;  %vm6920_vm9 = vcmp.eq.f32.partialorder %v6903_v14, -inf }
 0x79e   :  { %v6976_v26 = vmul.f32 1.442695, %v6949_v17  ;;  %vm6919_vm10 = vcmp.eq.f32.partialorder %v6901_v32, -inf  ;;  %v16003_v2 = vpop.eup %14366  ;;  %v6936_v31 = vsel %vm6920_vm9, 0.0, %v6903_v14  ;;  %6998 = vadd.xlane.f32.xlu1 %v16001_v46  ;;  %v5643_v14 = vld [vmem:[#allocation8 + $0x30] sm:$0xff] }
 0x79f   :  { %v6935_v54 = vsel %vm6919_vm10, 0.0, %v6901_v32  ;;  %14376 = vpow2.f32 %v6978_v55  ;;  %v6952_v18 = vsub.f32 %v15963_v6, %v6936_v31  ;;  %6996 = vadd.xlane.f32.xlu0 %v16003_v2  ;;  %13648 = vmatpush3.xpose.msra.mxu1 %v5643_v14 }
 0x7a0   :  { %v6951_v36 = vsub.f32 %v15966_v13, %v6935_v54  ;;  %14378 = vpow2.f32 %v6976_v26  ;;  %13657 = vmatprep.subr.mxu1 %v16812_v39 }
 0x7a1   :  { %v6905_v63 = vpop.xlane.xlu0 %6904  ;;  %v16009_v58 = vpop.eup %14368  ;;  %v6982_v8 = vmul.f32 1.442695, %v6952_v18 }
 0x7a2   :  { %v6980_v9 = vmul.f32 1.442695, %v6951_v36  ;;  %vm6921_vm11 = vcmp.eq.f32.partialorder %v6905_v63, -inf  ;;  %v16011_v30 = vpop.eup %14370  ;;  %7002 = vadd.xlane.f32.xlu1 %v16009_v58 }
 0x7a3   :  { %v6937_v0 = vsel %vm6921_vm11, 0.0, %v6905_v63  ;;  %14380 = vpow2.f32 %v6982_v8  ;;  %7000 = vadd.xlane.f32.xlu0 %v16011_v30  ;;  %v5646_v8 = vld [vmem:[#allocation8 + $0x90] sm:$0xff] }
 0x7a4   :  { %v6953_v7 = vsub.f32 %v15970_v10, %v6937_v0  ;;  %14382 = vpow2.f32 %v6980_v9  ;;  %v5642_v10 = vld [vmem:[#allocation8 + $0x10] sm:$0xff] }
 0x7a5   :  { %v16016_v6 = vpop.eup %14372  ;;  %13643 = vmatpush3.xpose.msra.mxu0 %v5642_v10  ;;  %v5645_v0 = vld [vmem:[#allocation8 + $0x70] sm:$0xff] }
 0x7a6   :  { %v6984_v13 = vmul.f32 1.442695, %v6953_v7  ;;  %v16018_v42 = vpop.eup %14374  ;;  %7006 = vadd.xlane.f32.xlu1 %v16016_v6  ;;  %13652 = vmatprep.subr.mxu0 %v16812_v39 }
 0x7a7   :  { %7004 = vadd.xlane.f32.xlu0 %v16018_v42 }
 0x7a8   :  { %14384 = vpow2.f32 %v6984_v13 }
 0x7a9   :  { %v16022_v44 = vpop.eup %14376 }
 0x7aa   :  { %v16024_v45 = vpop.eup %14378  ;;  %7010 = vadd.xlane.f32.xlu1 %v16022_v44 }
 0x7ab   :  { %7008 = vadd.xlane.f32.xlu0 %v16024_v45 }
 0x7ad   :  { %v16028_v50 = vpop.eup %14380 }
 0x7ae   :  { %v16030_v17 = vpop.eup %14382  ;;  %7014 = vadd.xlane.f32.xlu1 %v16028_v50 }
 0x7af   :  { %7012 = vadd.xlane.f32.xlu0 %v16030_v17 }
 0x7b2   :  { %v16035_v32 = vpop.eup %14384 }
 0x7b3   :  { %7016 = vadd.xlane.f32.xlu0 %v16035_v32 }
 0x7bf   :  { %8220 = vrot.lane.b32.xlu1 %v15154_v51, %s14901_s0 }
 0x7c3   :  { %8368 = vrot.lane.b32.xlu1 %v15166_v60, %s14901_s0 }
 0x7c7   :  { %8442 = vrot.lane.b32.xlu1 %v15178_v5, %s14901_s0 }
 0x7c9   :  { %8294 = vrot.lane.b32.xlu0 %v15161_v57, %s14901_s0 }
 0x7cb   :  { %8590 = vrot.lane.b32.xlu1 %v15199_v19, %s14901_s0 }
 0x7cd   :  { %8516 = vrot.lane.b32.xlu0 %v15189_v12, %s14901_s0 }
 0x7cf   :  { %8738 = vrot.lane.b32.xlu1 %v15228_v37, %s14901_s0 }
 0x7d1   :  { %8664 = vrot.lane.b32.xlu0 %v15212_v28, %s14901_s0 }
 0x7d3   :  { %8886 = vrot.lane.b32.xlu1 %v15255_v47, %s14901_s0 }
 0x7d5   :  { %8812 = vrot.lane.b32.xlu0 %v15244_v43, %s14901_s0 }
 0x7d7   :  { %9034 = vrot.lane.b32.xlu1 %v15264_v52, %s14901_s0 }
 0x7d9   :  { %8960 = vrot.lane.b32.xlu0 %v15201_v20, %s14901_s0 }
 0x7db   :  { %9182 = vrot.lane.b32.xlu1 %v15272_v56, %s14901_s0 }
 0x7dd   :  { %9108 = vrot.lane.b32.xlu0 %v15214_v29, %s14901_s0 }
 0x7df   :  { %9330 = vrot.lane.b32.xlu1 %v15280_v61, %s14901_s0  ;;  %v5644_v61 = vld [vmem:[#allocation8 + $0x50] sm:$0xff] }
 0x7e1   :  { %9256 = vrot.lane.b32.xlu0 %v15230_v38, %s14901_s0 }
 0x81e   :  { %v6987_v51 = vpop.xlane.xlu1 %6986 }
 0x81f   :  { %v7018_v57 = vmax.f32 %v6987_v51, 1e-30 }
 0x821   :  { %14386 = vrcp.f32 %v7018_v57  ;;  %v5648_v57 = vld [vmem:[#allocation8 + $0xd0] sm:$0xff] }
 0x822   :  { %v6991_v60 = vpop.xlane.xlu1 %6990 }
 0x823   :  { %v7020_v5 = vmax.f32 %v6991_v60, 1e-30  ;;  %v6989_v12 = vpop.xlane.xlu0 %6988 }
 0x824   :  { %v7019_v19 = vmax.f32 %v6989_v12, 1e-30 }
 0x825   :  { %14388 = vrcp.f32 %v7020_v5  ;;  %v5647_v5 = vld [vmem:[#allocation8 + $0xb0] sm:$0xff] }
 0x826   :  { %14390 = vrcp.f32 %v7019_v19 }
 0x827   :  { %v6995_v28 = vpop.xlane.xlu1 %6994 }
 0x828   :  { %v7022_v37 = vmax.f32 %v6995_v28, 1e-30  ;;  %v6993_v20 = vpop.xlane.xlu0 %6992 }
 0x829   :  { %v7021_v43 = vmax.f32 %v6993_v20, 1e-30 }
 0x82a   :  { %14392 = vrcp.f32 %v7022_v37 }
 0x82b   :  { %v14387_v47 = vpop.eup %14386  ;;  %14394 = vrcp.f32 %v7021_v43  ;;  %v6999_v29 = vpop.xlane.xlu1 %6998 }
 0x82c   :  { %v7024_v52 = vmax.f32 %v6999_v29, 1e-30  ;;  %v6997_v56 = vpop.xlane.xlu0 %6996  ;;  %v7050_v38 = vmul.f32 %v14387_v47, %v15980_v62  ;;  %v5650_v47 = vld [vmem:[#allocation8 + $0x110] sm:$0xff] }
 0x82d   :  { %v7023_v55 = vmax.f32 %v6997_v56, 1e-30  ;;  %v5649_v29 = vld [vmem:[#allocation8 + $0xf0] sm:$0xff] }
 0x82e   :  { %14396 = vrcp.f32 %v7024_v52  ;;  %13645 = vmatmul.mubr.f32.vlgmr.msra.gmra.mrb[86].mxu0 %v7050_v38 }
 0x82f   :  { %v14389_v26 = vpop.eup %14388  ;;  %14398 = vrcp.f32 %v7023_v55  ;;  %v7003_v31 = vpop.xlane.xlu1 %7002  ;;  %13653 = vmatpush3.xpose.msra.mxu0 %v5644_v61  ;;  %13654 = vmatprep.mubr.msk.f32.mxu0 %vm14898_vm1, %v16812_v39 }
 0x830   :  { %v14391_v54 = vpop.eup %14390  ;;  %v7026_v18 = vmax.f32 %v7003_v31, 1e-30  ;;  %v7001_v36 = vpop.xlane.xlu0 %7000  ;;  %v7052_v63 = vmul.f32 %v14389_v26, %v15985_v21  ;;  %13662 = vmatprep.subr.mxu0 %v16812_v39 }
 0x831   :  { %v7025_v62 = vmax.f32 %v7001_v36, 1e-30  ;;  %v7051_v9 = vmul.f32 %v14391_v54, %v15987_v35  ;;  %v5651_v54 = vld [vmem:[#allocation8 + $0x130] sm:$0xff] }
 0x832   :  { %14400 = vrcp.f32 %v7026_v18  ;;  %13655 = vmatmul.mubr.f32.vlgmr.msra.gmra.mrb[88].mxu0 %v7052_v63 }
 0x833   :  { %14402 = vrcp.f32 %v7025_v62  ;;  %v7007_v7 = vpop.xlane.xlu1 %7006  ;;  %13650 = vmatmul.mubr.f32.vlgmr.msra.gmra.mrb[90].mxu1 %v7051_v9  ;;  %13663 = vmatpush3.xpose.msra.mxu0 %v5646_v8  ;;  %v5654_v9 = vld [vmem:[#allocation8 + $0x190] sm:$0xff] }
 0x834   :  { %v14393_v13 = vpop.eup %14392  ;;  %v7028_v10 = vmax.f32 %v7007_v7, 1e-30  ;;  %13658 = vmatpush3.xpose.msra.mxu1 %v5645_v0  ;;  %v7005_v14 = vpop.xlane.xlu0 %7004  ;;  %13659 = vmatprep.mubr.msk.f32.mxu1 %vm14898_vm1, %v16812_v39  ;;  %v5653_v0 = vld [vmem:[#allocation8 + $0x170] sm:$0xff] }
 0x835   :  { %v14395_v21 = vpop.eup %14394  ;;  %v7027_v51 = vmax.f32 %v7005_v14, 1e-30  ;;  %13664 = vmatprep.mubr.msk.f32.mxu0 %vm14898_vm1, %v16812_v39  ;;  %13667 = vmatprep.subr.mxu1 %v16812_v39  ;;  %v7054_v35 = vmul.f32 %v14393_v13, %v15993_v33  ;;  %v5656_v14 = vld [vmem:[#allocation8 + $0x1d0] sm:$0xff] }
 0x836   :  { %14404 = vrcp.f32 %v7028_v10  ;;  %13672 = vmatprep.subr.mxu0 %v16812_v39  ;;  %v7053_v60 = vmul.f32 %v14395_v21, %v15995_v23 }
 0x837   :  { %14406 = vrcp.f32 %v7027_v51  ;;  %13665 = vmatmul.mubr.f32.vlgmr.msra.gmra.mrb[90].mxu0 %v7054_v35  ;;  %v7011_v12 = vpop.xlane.xlu1 %7010  ;;  %v5655_v51 = vld [vmem:[#allocation8 + $0x1b0] sm:$0xff] }
 0x838   :  { %v14397_v19 = vpop.eup %14396  ;;  %v7030_v28 = vmax.f32 %v7011_v12, 1e-30  ;;  %13660 = vmatmul.mubr.f32.vlgmr.msra.gmra.mrb[92].mxu1 %v7053_v60  ;;  %v7009_v37 = vpop.xlane.xlu0 %7008  ;;  %13673 = vmatpush3.xpose.msra.mxu0 %v5648_v57  ;;  %v8187_v60 = vld [vmem:[#allocation7 + $0x18] sm:$0xff] }
 0x839   :  { %v14399_v20 = vpop.eup %14398  ;;  %13668 = vmatpush3.xpose.msra.mxu1 %v5647_v5  ;;  %v7029_v43 = vmax.f32 %v7009_v37, 1e-30  ;;  %13669 = vmatprep.mubr.msk.f32.mxu1 %vm14898_vm1, %v16812_v39  ;;  %v7056_v33 = vmul.f32 %v14397_v19, %v16001_v46  ;;  %v5657_v5 = vld [vmem:[#allocation8 + $0x1f0] sm:$0xff]  ;;  %v8188_v37 = vld [vmem:[#allocation7 + $0x38] sm:$0xff] }
 0x83a   :  { %14408 = vrcp.f32 %v7030_v28  ;;  %13674 = vmatprep.mubr.msk.f32.mxu0 %vm14898_vm1, %v16812_v39  ;;  %13677 = vmatprep.subr.mxu1 %v16812_v39  ;;  %v7055_v23 = vmul.f32 %v14399_v20, %v16003_v2  ;;  %v5652_v2 = vld [vmem:[#allocation8 + $0x150] sm:$0xff] }
 0x83b   :  { %14410 = vrcp.f32 %v7029_v43  ;;  %13675 = vmatmul.mubr.f32.vlgmr.msra.gmra.mrb[92].mxu0 %v7056_v33  ;;  %13682 = vmatprep.subr.mxu0 %v16812_v39  ;;  %v7015_v52 = vpop.xlane.xlu1 %7014  ;;  %v8191_v43 = vld [vmem:[#allocation7 + $0x98] sm:$0xff] }
 0x83c   :  { %v14401_v56 = vpop.eup %14400  ;;  %v7032_v38 = vmax.f32 %v7015_v52, 1e-30  ;;  %13670 = vmatmul.mubr.f32.vlgmr.msra.gmra.mrb[94].mxu1 %v7055_v23  ;;  %v7013_v61 = vpop.xlane.xlu0 %7012  ;;  %13683 = vmatpush3.xpose.msra.mxu0 %v5650_v47  ;;  %v8193_v47 = vld [vmem:[#allocation7 + $0xd8] sm:$0xff] }
 0x83d   :  { %v14403_v46 = vpop.eup %14402  ;;  %13678 = vmatpush3.xpose.msra.mxu1 %v5649_v29  ;;  %v7031_v55 = vmax.f32 %v7013_v61, 1e-30  ;;  %13679 = vmatprep.mubr.msk.f32.mxu1 %vm14898_vm1, %v16812_v39  ;;  %v7058_v26 = vmul.f32 %v14401_v56, %v16009_v58  ;;  %v8192_v23 = vld [vmem:[#allocation7 + $0xb8] sm:$0xff] }
 0x83e   :  { %14412 = vrcp.f32 %v7032_v38  ;;  %13684 = vmatprep.mubr.msk.f32.mxu0 %vm14898_vm1, %v16812_v39  ;;  %13687 = vmatprep.subr.mxu1 %v16812_v39  ;;  %v7057_v31 = vmul.f32 %v14403_v46, %v16011_v30  ;;  %v8195_v56 = vld [vmem:[#allocation7 + $0x118] sm:$0xff] }
 0x83f   :  { %14414 = vrcp.f32 %v7031_v55  ;;  %13685 = vmatmul.mubr.f32.vlgmr.msra.gmra.mrb[94].mxu0 %v7058_v26  ;;  %13692 = vmatprep.subr.mxu0 %v16812_v39  ;;  %v8221_v18 = vpop.permute.xlu1 %8220  ;;  %v8194_v38 = vld [vmem:[#allocation7 + $0xf8] sm:$0xff] }
 0x840   :  { %v14405_v36 = vpop.eup %14404  ;;  %13680 = vmatmul.mubr.f32.vlgmr.msra.gmra.mrb[96].mxu1 %v7057_v31  ;;  %v7017_v63 = vpop.xlane.xlu0 %7016  ;;  %13693 = vmatpush3.xpose.msra.mxu0 %v5652_v2  ;;  %v8197_v46 = vld [vmem:[#allocation7 + $0x158] sm:$0xff] }
 0x841   :  { %v14407_v58 = vpop.eup %14406  ;;  %13688 = vmatpush3.xpose.msra.mxu1 %v5651_v54  ;;  %v7033_v8 = vmax.f32 %v7017_v63, 1e-30  ;;  %13689 = vmatprep.mubr.msk.f32.mxu1 %vm14898_vm1, %v16812_v39  ;;  %v7060_v62 = vmul.f32 %v14405_v36, %v16016_v6  ;;  %v8196_v26 = vld [vmem:[#allocation7 + $0x138] sm:$0xff] }
 0x842   :  { %13694 = vmatprep.mubr.msk.f32.mxu0 %vm14898_vm1, %v16812_v39  ;;  %13697 = vmatprep.subr.mxu1 %v16812_v39  ;;  %v7059_v30 = vmul.f32 %v14407_v58, %v16018_v42  ;;  %v8199_v2 = vld [vmem:[#allocation7 + $0x198] sm:$0xff] }
 0x843   :  { %14416 = vrcp.f32 %v7033_v8  ;;  %13695 = vmatmul.mubr.f32.vlgmr.msra.gmra.mrb[96].mxu0 %v7060_v62  ;;  %13702 = vmatprep.subr.mxu0 %v16812_v39  ;;  %v8369_v10 = vpop.permute.xlu1 %8368  ;;  %v8198_v31 = vld [vmem:[#allocation7 + $0x178] sm:$0xff] }
 0x844   :  { %v14409_v7 = vpop.eup %14408  ;;  %13690 = vmatmul.mubr.f32.vlgmr.msra.gmra.mrb[98].mxu1 %v7059_v30  ;;  %13703 = vmatpush3.xpose.msra.mxu0 %v5654_v9  ;;  %v8295_v21 = vpop.permute.xlu0 %8294  ;;  %v8201_v36 = vld [vmem:[#allocation7 + $0x1d8] sm:$0xff] }
 0x845   :  { %v14411_v13 = vpop.eup %14410  ;;  %13698 = vmatpush3.xpose.msra.mxu1 %v5653_v0  ;;  %13699 = vmatprep.mubr.msk.f32.mxu1 %vm14898_vm1, %v16812_v39  ;;  %v7062_v6 = vmul.f32 %v14409_v7, %v16022_v44  ;;  %v8200_v63 = vld [vmem:[#allocation7 + $0x1b8] sm:$0xff] }
 0x846   :  { %13704 = vmatprep.mubr.msk.f32.mxu0 %vm14898_vm1, %v16812_v39  ;;  %13707 = vmatprep.subr.mxu1 %v16812_v39  ;;  %v7061_v42 = vmul.f32 %v14411_v13, %v16024_v45  ;;  %v8202_v62 = vld [vmem:[#allocation7 + $0x1f8] sm:$0xff] }
 0x847   :  { %13705 = vmatmul.mubr.f32.vlgmr.msra.gmra.mrb[98].mxu0 %v7062_v6  ;;  %13712 = vmatprep.subr.mxu0 %v16812_v39  ;;  %v8443_v12 = vpop.permute.xlu1 %8442 }
 0x848   :  { %v14413_v35 = vpop.eup %14412  ;;  %13700 = vmatmul.mubr.f32.vlgmr.msra.gmra.mrb[100].mxu1 %v7061_v42  ;;  %13713 = vmatpush3.xpose.msra.mxu0 %v5656_v14  ;;  %v8517_v19 = vpop.permute.xlu0 %8516 }
 0x849   :  { %v14415_v57 = vpop.eup %14414  ;;  %13708 = vmatpush3.xpose.msra.mxu1 %v5655_v51  ;;  %13709 = vmatprep.mubr.msk.f32.mxu1 %vm14898_vm1, %v16812_v39  ;;  %v7064_v44 = vmul.f32 %v14413_v35, %v16028_v50  ;;  %v8189_v50 = vld [vmem:[#allocation7 + $0x58] sm:$0xff] }
 0x84a   :  { %13714 = vmatprep.mubr.msk.f32.mxu0 %vm14898_vm1, %v16812_v39  ;;  %13717 = vmatprep.subr.mxu1 %v16812_v39  ;;  %v7063_v45 = vmul.f32 %v14415_v57, %v16030_v17 }
 0x84b   :  { %13715 = vmatmul.mubr.f32.vlgmr.msra.gmra.mrb[100].mxu0 %v7064_v44  ;;  %13722 = vmatprep.subr.mxu0 %v16812_v39  ;;  %v8591_v20 = vpop.permute.xlu1 %8590 }
 0x84c   :  { %13710 = vmatmul.mubr.f32.vlgmr.msra.gmra.mrb[102].mxu1 %v7063_v45  ;;  %13723 = vmatpush3.msra.mxu0 %v8187_v60  ;;  %v8665_v33 = vpop.permute.xlu0 %8664 }
 0x84d   :  { %v14417_v28 = vpop.eup %14416  ;;  %13718 = vmatpush3.xpose.msra.mxu1 %v5657_v5  ;;  %13719 = vmatprep.mubr.msk.f32.mxu1 %vm14898_vm1, %v16812_v39 }
 0x84e   :  { %13724 = vmatprep.mubr.msk.f32.mxu0 %vm14898_vm1, %v16812_v39  ;;  %13727 = vmatprep.subr.mxu1 %v16812_v39  ;;  %v7065_v17 = vmul.f32 %v14417_v28, %v16035_v32  ;;  %v8190_v32 = vld [vmem:[#allocation7 + $0x78] sm:$0xff] }
 0x84f   :  { %13725 = vmatmul.mubr.msk.f32.vlgmr.msra.gmra.mrb[102].mxu0 %vm549_vm2, %v8221_v18  ;;  %13732 = vmatprep.subr.mxu0 %v16812_v39  ;;  %v8739_v29 = vpop.permute.xlu1 %8738 }
 0x850   :  { %13720 = vmatmul.mubr.f32.vlgmr.msra.gmra.mrb[104].mxu1 %v7065_v17  ;;  %13733 = vmatpush3.msra.mxu0 %v8189_v50  ;;  %v8813_v52 = vpop.permute.xlu0 %8812 }
 0x851   :  { %13728 = vmatpush3.msra.mxu1 %v8188_v37  ;;  %13729 = vmatprep.mubr.msk.f32.mxu1 %vm14898_vm1, %v16812_v39 }
 0x852   :  { %13734 = vmatprep.mubr.msk.f32.mxu0 %vm14898_vm1, %v16812_v39  ;;  %13737 = vmatprep.subr.mxu1 %v16812_v39 }
 0x853   :  { %13735 = vmatmul.mubr.msk.f32.vlgmr.msra.gmra.mrb[104].mxu0 %vm549_vm2, %v8369_v10  ;;  %13742 = vmatprep.subr.mxu0 %v16812_v39  ;;  %v8887_v61 = vpop.permute.xlu1 %8886 }
 0x854   :  { %13730 = vmatmul.mubr.msk.f32.vlgmr.msra.gmra.mrb[106].mxu1 %vm549_vm2, %v8295_v21  ;;  %13743 = vmatpush3.msra.mxu0 %v8191_v43  ;;  %v8961_v55 = vpop.permute.xlu0 %8960 }
 0x855   :  { %13738 = vmatpush3.msra.mxu1 %v8190_v32  ;;  %13739 = vmatprep.mubr.msk.f32.mxu1 %vm14898_vm1, %v16812_v39 }
 0x856   :  { %13744 = vmatprep.mubr.msk.f32.mxu0 %vm14898_vm1, %v16812_v39  ;;  %13747 = vmatprep.subr.mxu1 %v16812_v39 }
 0x857   :  { %13745 = vmatmul.mubr.msk.f32.vlgmr.msra.gmra.mrb[106].mxu0 %vm549_vm2, %v8517_v19  ;;  %13752 = vmatprep.subr.mxu0 %v16812_v39  ;;  %v9035_v54 = vpop.permute.xlu1 %9034 }
 0x858   :  { %13740 = vmatmul.mubr.msk.f32.vlgmr.msra.gmra.mrb[108].mxu1 %vm549_vm2, %v8443_v12  ;;  %13753 = vmatpush3.msra.mxu0 %v8193_v47  ;;  %v9109_v18 = vpop.permute.xlu0 %9108 }
 0x859   :  { %13748 = vmatpush3.msra.mxu1 %v8192_v23  ;;  %13749 = vmatprep.mubr.msk.f32.mxu1 %vm14898_vm1, %v16812_v39 }
 0x85a   :  { %13754 = vmatprep.mubr.msk.f32.mxu0 %vm14898_vm1, %v16812_v39  ;;  %13757 = vmatprep.subr.mxu1 %v16812_v39 }
 0x85b   :  { %13755 = vmatmul.mubr.msk.f32.vlgmr.msra.gmra.mrb[108].mxu0 %vm549_vm2, %v8665_v33  ;;  %13762 = vmatprep.subr.mxu0 %v16812_v39  ;;  %v9183_v58 = vpop.permute.xlu1 %9182 }
 0x85c   :  { %13750 = vmatmul.mubr.msk.f32.vlgmr.msra.gmra.mrb[110].mxu1 %vm549_vm2, %v8591_v20  ;;  %13763 = vmatpush3.msra.mxu0 %v8195_v56  ;;  %v9257_v8 = vpop.permute.xlu0 %9256 }
 0x85d   :  { %13758 = vmatpush3.msra.mxu1 %v8194_v38  ;;  %13759 = vmatprep.mubr.msk.f32.mxu1 %vm14898_vm1, %v16812_v39 }
 0x85e   :  { %13764 = vmatprep.mubr.msk.f32.mxu0 %vm14898_vm1, %v16812_v39  ;;  %13767 = vmatprep.subr.mxu1 %v16812_v39 }
 0x85f   :  { %13765 = vmatmul.mubr.msk.f32.vlgmr.msra.gmra.mrb[110].mxu0 %vm549_vm2, %v8813_v52  ;;  %13772 = vmatprep.subr.mxu0 %v16812_v39  ;;  %v9331_v9 = vpop.permute.xlu1 %9330 }
 0x860   :  { %13760 = vmatmul.mubr.msk.f32.vlgmr.msra.gmra.mrb[112].mxu1 %vm549_vm2, %v8739_v29  ;;  %13773 = vmatpush3.msra.mxu0 %v8197_v46 }
 0x861   :  { %13768 = vmatpush3.msra.mxu1 %v8196_v26  ;;  %13769 = vmatprep.mubr.msk.f32.mxu1 %vm14898_vm1, %v16812_v39  ;;  %v14596_v26 = vld [vmem:[#allocation11] sm:$0xff] }
 0x862   :  { %13774 = vmatprep.mubr.msk.f32.mxu0 %vm14898_vm1, %v16812_v39  ;;  %13777 = vmatprep.subr.mxu1 %v16812_v39 }
 0x863   :  { %13775 = vmatmul.mubr.msk.f32.vlgmr.msra.gmra.mrb[112].mxu0 %vm549_vm2, %v8961_v55  ;;  %13782 = vmatprep.subr.mxu0 %v16812_v39 }
 0x864   :  { %13770 = vmatmul.mubr.msk.f32.vlgmr.msra.gmra.mrb[114].mxu1 %vm549_vm2, %v8887_v61  ;;  %13783 = vmatpush3.msra.mxu0 %v8199_v2 }
 0x865   :  { %13778 = vmatpush3.msra.mxu1 %v8198_v31  ;;  %13779 = vmatprep.mubr.msk.f32.mxu1 %vm14898_vm1, %v16812_v39 }
 0x866   :  { %13784 = vmatprep.mubr.msk.f32.mxu0 %vm14898_vm1, %v16812_v39  ;;  %13787 = vmatprep.subr.mxu1 %v16812_v39 }
 0x867   :  { %13785 = vmatmul.mubr.msk.f32.vlgmr.msra.gmra.mrb[114].mxu0 %vm549_vm2, %v9109_v18  ;;  %13792 = vmatprep.subr.mxu0 %v16812_v39 }
 0x868   :  { %13780 = vmatmul.mubr.msk.f32.vlgmr.msra.gmra.mrb[116].mxu1 %vm549_vm2, %v9035_v54  ;;  %13793 = vmatpush3.msra.mxu0 %v8201_v36 }
 0x869   :  { %13788 = vmatpush3.msra.mxu1 %v8200_v63  ;;  %13789 = vmatprep.mubr.msk.f32.mxu1 %vm14898_vm1, %v16812_v39 }
 0x86a   :  { %13794 = vmatprep.mubr.msk.f32.mxu0 %vm14898_vm1, %v16812_v39  ;;  %13797 = vmatprep.subr.mxu1 %v16812_v39 }
 0x86b   :  { %13795 = vmatmul.mubr.msk.f32.vlgmr.msra.gmra.mrb[116].mxu0 %vm549_vm2, %v9257_v8  ;;  %13802 = vmatprep.subr.mxu0 %v16812_v39  ;;  %v14597_v8 = vld [vmem:[#allocation11 + $0x10] sm:$0xff] }
 0x86c   :  { %13790 = vmatmul.mubr.msk.f32.vlgmr.msra.gmra.mrb[118].mxu1 %vm549_vm2, %v9183_v58  ;;  %13804 = vmatprep.mubr.msk.f32.mxu0 %vm14898_vm1, %v16812_v39 }
 0x86d   :  { %13798 = vmatpush3.msra.mxu1 %v8202_v62  ;;  %13799 = vmatprep.mubr.msk.f32.mxu1 %vm14898_vm1, %v16812_v39 }
 0x86e   :  { %13807 = vmatprep.subr.mxu1 %v16812_v39 }
 0x870   :  { %13800 = vmatmul.mubr.msk.f32.vlgmr.msra.gmra.mrb[120].mxu1 %vm549_vm2, %v9331_v9  ;;  %v14598_v9 = vld [vmem:[#allocation11 + $0x8] sm:$0xff] }
 0x871   :  { %13809 = vmatprep.mubr.msk.f32.mxu1 %vm14898_vm1, %v16812_v39 }
 0x901   :  { %v16181_v30 = vpop.f32.mrb[86].mxu0 }
 0x902   :  { %v13646_v0 = vpop.f32.mrb[87].mxu0 }
 0x905   :  { %v16183_v7 = vpop.f32.mrb[88].mxu0 }
 0x906   :  { %v16185_v13 = vpop.f32.mrb[90].mxu1  ;;  %v13656_v10 = vpop.f32.mrb[89].mxu0 }
 0x907   :  { %v13651_v6 = vpop.f32.mrb[91].mxu1 }
 0x90a   :  { %v16187_v14 = vpop.f32.mrb[90].mxu0 }
 0x90b   :  { %v16189_v21 = vpop.f32.mrb[92].mxu1  ;;  %v13666_v42 = vpop.f32.mrb[91].mxu0 }
 0x90c   :  { %v13661_v51 = vpop.f32.mrb[93].mxu1 }
 0x90e   :  { %v16191_v35 = vpop.f32.mrb[92].mxu0 }
 0x90f   :  { %v16193_v57 = vpop.f32.mrb[94].mxu1  ;;  %v13676_v44 = vpop.f32.mrb[93].mxu0 }
 0x910   :  { %v13671_v60 = vpop.f32.mrb[95].mxu1 }
 0x912   :  { %v16195_v45 = vpop.f32.mrb[94].mxu0 }
 0x913   :  { %v16197_v5 = vpop.f32.mrb[96].mxu1  ;;  %v13686_v12 = vpop.f32.mrb[95].mxu0 }
 0x914   :  { %v13681_v19 = vpop.f32.mrb[97].mxu1  ;;  %v14599_v12 = vld [vmem:[#allocation11 + $0x20] sm:$0xff] }
 0x916   :  { %v16199_v28 = vpop.f32.mrb[96].mxu0 }
 0x917   :  { %v16201_v50 = vpop.f32.mrb[98].mxu1  ;;  %v13696_v17 = vpop.f32.mrb[97].mxu0 }
 0x918   :  { %v13691_v37 = vpop.f32.mrb[99].mxu1  ;;  %v14600_v17 = vld [vmem:[#allocation11 + $0x18] sm:$0xff] }
 0x91a   :  { %v16203_v20 = vpop.f32.mrb[98].mxu0 }
 0x91b   :  { %v16205_v43 = vpop.f32.mrb[100].mxu1  ;;  %v13706_v33 = vpop.f32.mrb[99].mxu0 }
 0x91c   :  { %v13701_v32 = vpop.f32.mrb[101].mxu1 }
 0x91e   :  { %v16207_v47 = vpop.f32.mrb[100].mxu0 }
 0x91f   :  { %v16209_v23 = vpop.f32.mrb[102].mxu1  ;;  %v13716_v29 = vpop.f32.mrb[101].mxu0 }
 0x920   :  { %v13711_v52 = vpop.f32.mrb[103].mxu1 }
 0x922   :  { %v8290_v56 = vpop.f32.mrb[102].mxu0 }
 0x923   :  { %v16211_v38 = vpop.f32.mrb[104].mxu1  ;;  %v9404_v61 = vmul.f32 0.35355338, %v8290_v56  ;;  %v13726_v46 = vpop.f32.mrb[103].mxu0 }
 0x924   :  { %v13721_v55 = vpop.f32.mrb[105].mxu1  ;;  %v14601_v46 = vld [vmem:[#allocation11 + $0x30] sm:$0xff] }
 0x925   :  { %v16213_v2 = vadd.f32 %v14596_v26, %v9404_v61  ;;  %v14602_v26 = vld [vmem:[#allocation11 + $0x28] sm:$0xff] }
 0x926   :  { %v8438_v31 = vpop.f32.mrb[104].mxu0 }
 0x927   :  { %v8364_v54 = vpop.f32.mrb[106].mxu1  ;;  %v9406_v18 = vmul.f32 0.35355338, %v8438_v31  ;;  %v13736_v36 = vpop.f32.mrb[105].mxu0  ;;  %9436 = vmax.xlane.f32.xlu0 %v16213_v2 }
 0x928   :  { %v9405_v63 = vmul.f32 0.35355338, %v8364_v54  ;;  %v13731_v58 = vpop.f32.mrb[107].mxu1 }
 0x929   :  { %v16216_v62 = vadd.f32 %v14597_v8, %v9406_v18 }
 0x92a   :  { %v16218_v0 = vadd.f32 %v14598_v9, %v9405_v63  ;;  %v8586_v10 = vpop.f32.mrb[106].mxu0  ;;  %v14603_v9 = vld [vmem:[#allocation11 + $0x40] sm:$0xff] }
 0x92b   :  { %v8512_v6 = vpop.f32.mrb[108].mxu1  ;;  %v9408_v42 = vmul.f32 0.35355338, %v8586_v10  ;;  %9440 = vmax.xlane.f32.xlu0 %v16216_v62  ;;  %v13746_v51 = vpop.f32.mrb[107].mxu0 }
 0x92c   :  { %v9407_v44 = vmul.f32 0.35355338, %v8512_v6  ;;  %9438 = vmax.xlane.f32.xlu1 %v16218_v0  ;;  %v13741_v60 = vpop.f32.mrb[109].mxu1  ;;  %v14604_v6 = vld [vmem:[#allocation11 + $0x38] sm:$0xff] }
 0x92d   :  { %v16222_v19 = vadd.f32 %v14599_v12, %v9408_v42 }
 0x92e   :  { %v16224_v37 = vadd.f32 %v14600_v17, %v9407_v44  ;;  %v8734_v33 = vpop.f32.mrb[108].mxu0 }
 0x92f   :  { %v8660_v32 = vpop.f32.mrb[110].mxu1  ;;  %v9410_v29 = vmul.f32 0.35355338, %v8734_v33  ;;  %v13756_v52 = vpop.f32.mrb[109].mxu0 }
 0x930   :  { %v9409_v56 = vmul.f32 0.35355338, %v8660_v32  ;;  %9444 = vmax.xlane.f32.xlu1 %v16222_v19  ;;  %9442 = vmax.xlane.f32.xlu0 %v16224_v37  ;;  %v13751_v61 = vpop.f32.mrb[111].mxu1  ;;  %v14605_v32 = vld [vmem:[#allocation11 + $0x50] sm:$0xff]  ;;  %v14606_v52 = vld [vmem:[#allocation11 + $0x48] sm:$0xff] }
 0x931   :  { %v16228_v55 = vadd.f32 %v14601_v46, %v9410_v29 }
 0x932   :  { %v16230_v31 = vadd.f32 %v14602_v26, %v9409_v56  ;;  %v8882_v54 = vpop.f32.mrb[110].mxu0 }
 0x933   :  { %v8808_v18 = vpop.f32.mrb[112].mxu1  ;;  %v9412_v36 = vmul.f32 0.35355338, %v8882_v54  ;;  %v13766_v63 = vpop.f32.mrb[111].mxu0 }
 0x934   :  { %v9411_v58 = vmul.f32 0.35355338, %v8808_v18  ;;  %9448 = vmax.xlane.f32.xlu1 %v16228_v55  ;;  %9446 = vmax.xlane.f32.xlu0 %v16230_v31  ;;  %v13761_v8 = vpop.f32.mrb[113].mxu1  ;;  %v14607_v63 = vld [vmem:[#allocation11 + $0x60] sm:$0xff] }
 0x935   :  { %v16234_v10 = vadd.f32 %v14603_v9, %v9412_v36  ;;  %v14608_v8 = vld [vmem:[#allocation11 + $0x58] sm:$0xff] }
 0x936   :  { %v16236_v42 = vadd.f32 %v14604_v6, %v9411_v58  ;;  %v9030_v51 = vpop.f32.mrb[112].mxu0 }
 0x937   :  { %v8956_v44 = vpop.f32.mrb[114].mxu1  ;;  %v9414_v60 = vmul.f32 0.35355338, %v9030_v51  ;;  %v13776_v12 = vpop.f32.mrb[113].mxu0 }
 0x938   :  { %v9413_v17 = vmul.f32 0.35355338, %v8956_v44  ;;  %9452 = vmax.xlane.f32.xlu1 %v16234_v10  ;;  %9450 = vmax.xlane.f32.xlu0 %v16236_v42  ;;  %v13771_v33 = vpop.f32.mrb[115].mxu1 }
 0x939   :  { %v16240_v29 = vadd.f32 %v14605_v32, %v9414_v60  ;;  %v14609_v33 = vld [vmem:[#allocation11 + $0x70] sm:$0xff] }
 0x93a   :  { %v16242_v56 = vadd.f32 %v14606_v52, %v9413_v17  ;;  %v9178_v61 = vpop.f32.mrb[114].mxu0  ;;  %v14610_v52 = vld [vmem:[#allocation11 + $0x68] sm:$0xff] }
 0x93b   :  { %v9104_v46 = vpop.f32.mrb[116].mxu1  ;;  %v9416_v26 = vmul.f32 0.35355338, %v9178_v61  ;;  %v13786_v54 = vpop.f32.mrb[115].mxu0 }
 0x93c   :  { %v9415_v18 = vmul.f32 0.35355338, %v9104_v46  ;;  %9456 = vmax.xlane.f32.xlu1 %v16240_v29  ;;  %9454 = vmax.xlane.f32.xlu0 %v16242_v56  ;;  %v13781_v36 = vpop.f32.mrb[117].mxu1 }
 0x93d   :  { %v16246_v58 = vadd.f32 %v14607_v63, %v9416_v26 }
 0x93e   :  { %v16248_v9 = vadd.f32 %v14608_v8, %v9415_v18  ;;  %v9326_v6 = vpop.f32.mrb[116].mxu0  ;;  %v14611_v18 = vld [vmem:[#allocation11 + $0x78] sm:$0xff] }
 0x93f   :  { %v9252_v51 = vpop.f32.mrb[118].mxu1  ;;  %v9418_v44 = vmul.f32 0.35355338, %v9326_v6  ;;  %v13796_v60 = vpop.f32.mrb[117].mxu0 }
 0x940   :  { %v9417_v12 = vmul.f32 0.35355338, %v9252_v51  ;;  %9460 = vmax.xlane.f32.xlu1 %v16246_v58  ;;  %9458 = vmax.xlane.f32.xlu0 %v16248_v9  ;;  %v13791_v17 = vpop.f32.mrb[119].mxu1 }
 0x941   :  { %v16252_v32 = vadd.f32 %v14609_v33, %v9418_v44 }
 0x942   :  { %v16254_v61 = vadd.f32 %v14610_v52, %v9417_v12 }
 0x943   :  { %v9400_v46 = vpop.f32.mrb[120].mxu1 }
 0x944   :  { %v9419_v26 = vmul.f32 0.35355338, %v9400_v46  ;;  %9464 = vmax.xlane.f32.xlu1 %v16252_v32  ;;  %9462 = vmax.xlane.f32.xlu0 %v16254_v61  ;;  %v13801_v54 = vpop.f32.mrb[121].mxu1 }
 0x946   :  { %v16258_v36 = vadd.f32 %v14611_v18, %v9419_v26 }
 0x948   :  { %9466 = vmax.xlane.f32.xlu0 %v16258_v36 }
 0x9b4   :  { %v9437_v63 = vpop.xlane.xlu0 %9436 }
 0x9b5   :  { %vm9468_vm12 = vcmp.eq.f32.partialorder %v9437_v63, -inf }
 0x9b6   :  { %v9484_v8 = vsel %vm9468_vm12, 0.0, %v9437_v63 }
 0x9b7   :  { %v9500_v6 = vsub.f32 %v16213_v2, %v9484_v8 }
 0x9b8   :  { %v9441_v51 = vpop.xlane.xlu0 %9440 }
 0x9b9   :  { %v9516_v44 = vmul.f32 1.442695, %v9500_v6  ;;  %vm9470_vm13 = vcmp.eq.f32.partialorder %v9441_v51, -inf  ;;  %v9439_v60 = vpop.xlane.xlu1 %9438 }
 0x9ba   :  { %v9486_v12 = vsel %vm9470_vm13, 0.0, %v9441_v51  ;;  %vm9469_vm14 = vcmp.eq.f32.partialorder %v9439_v60, -inf }
 0x9bb   :  { %14418 = vpow2.f32 %v9516_v44  ;;  %v9502_v17 = vsub.f32 %v16216_v62, %v9486_v12  ;;  %v9485_v33 = vsel %vm9469_vm14, 0.0, %v9439_v60 }
 0x9bc   :  { %v9501_v52 = vsub.f32 %v16218_v0, %v9485_v33 }
 0x9bd   :  { %v9520_v46 = vmul.f32 1.442695, %v9502_v17  ;;  %v9445_v26 = vpop.xlane.xlu1 %9444  ;;  %v9443_v54 = vpop.xlane.xlu0 %9442 }
 0x9be   :  { %v9518_v18 = vmul.f32 1.442695, %v9501_v52  ;;  %vm9472_vm15 = vcmp.eq.f32.partialorder %v9445_v26, -inf  ;;  %vm9471_vm3 = vcmp.eq.f32.partialorder %v9443_v54, -inf }
 0x9bf   :  { %14420 = vpow2.f32 %v9520_v46  ;;  %v9488_v2 = vsel %vm9472_vm15, 0.0, %v9445_v26  ;;  %v9487_v63 = vsel %vm9471_vm3, 0.0, %v9443_v54  ;;  %vm10956_vm15 = vcmask 130048  }
 0x9c0   :  { %14422 = vpow2.f32 %v9518_v18  ;;  %v9504_v8 = vsub.f32 %v16222_v19, %v9488_v2  ;;  %v9503_v6 = vsub.f32 %v16224_v37, %v9487_v63  ;;  %vm10973_vm3 = vcmask 195584  }
 0x9c1   :  { %v9449_v51 = vpop.xlane.xlu1 %9448  ;;  %v9447_v44 = vpop.xlane.xlu0 %9446 }
 0x9c2   :  { %v9524_v62 = vmul.f32 1.442695, %v9504_v8  ;;  %v9522_v60 = vmul.f32 1.442695, %v9503_v6  ;;  %vm9474_vm4 = vcmp.eq.f32.partialorder %v9449_v51, -inf  ;;  %vm9473_vm5 = vcmp.eq.f32.partialorder %v9447_v44, -inf }
 0x9c3   :  { %v9490_v0 = vsel %vm9474_vm4, 0.0, %v9449_v51  ;;  %v9489_v12 = vsel %vm9473_vm5, 0.0, %v9447_v44 }
 0x9c4   :  { %14424 = vpow2.f32 %v9524_v62  ;;  %v9506_v17 = vsub.f32 %v16228_v55, %v9490_v0  ;;  %v9505_v33 = vsub.f32 %v16230_v31, %v9489_v12 }
 0x9c5   :  { %v16268_v52 = vpop.eup %14418  ;;  %14426 = vpow2.f32 %v9522_v60  ;;  %v9453_v46 = vpop.xlane.xlu1 %9452 }
 0x9c6   :  { %v9451_v19 = vpop.xlane.xlu0 %9450  ;;  %v9528_v26 = vmul.f32 1.442695, %v9506_v17  ;;  %v9526_v37 = vmul.f32 1.442695, %v9505_v33  ;;  %vm9476_vm6 = vcmp.eq.f32.partialorder %v9453_v46, -inf  ;;  %9548 = vadd.xlane.f32.xlu1 %v16268_v52 }
 0x9c7   :  { %vm9475_vm7 = vcmp.eq.f32.partialorder %v9451_v19, -inf  ;;  %v9492_v54 = vsel %vm9476_vm6, 0.0, %v9453_v46 }
 0x9c8   :  { %v9491_v18 = vsel %vm9475_vm7, 0.0, %v9451_v19  ;;  %14428 = vpow2.f32 %v9528_v26  ;;  %v9508_v2 = vsub.f32 %v16234_v10, %v9492_v54 }
 0x9c9   :  { %v9507_v55 = vsub.f32 %v16236_v42, %v9491_v18  ;;  %v16273_v63 = vpop.eup %14420  ;;  %14430 = vpow2.f32 %v9526_v37  ;;  %v9457_v31 = vpop.xlane.xlu1 %9456 }
 0x9ca   :  { %v9455_v8 = vpop.xlane.xlu0 %9454  ;;  %v16275_v6 = vpop.eup %14422  ;;  %v9532_v51 = vmul.f32 1.442695, %v9508_v2  ;;  %vm9478_vm8 = vcmp.eq.f32.partialorder %v9457_v31, -inf  ;;  %9552 = vadd.xlane.f32.xlu1 %v16273_v63 }
 0x9cb   :  { %v9530_v44 = vmul.f32 1.442695, %v9507_v55  ;;  %vm9477_vm9 = vcmp.eq.f32.partialorder %v9455_v8, -inf  ;;  %v9494_v62 = vsel %vm9478_vm8, 0.0, %v9457_v31  ;;  %9550 = vadd.xlane.f32.xlu0 %v16275_v6 }
 0x9cc   :  { %v9493_v60 = vsel %vm9477_vm9, 0.0, %v9455_v8  ;;  %14432 = vpow2.f32 %v9532_v51  ;;  %v9510_v10 = vsub.f32 %v16240_v29, %v9494_v62 }
 0x9cd   :  { %v9509_v42 = vsub.f32 %v16242_v56, %v9493_v60  ;;  %14434 = vpow2.f32 %v9530_v44  ;;  %v9461_v0 = vpop.xlane.xlu1 %9460 }
 0x9ce   :  { %v9459_v12 = vpop.xlane.xlu0 %9458  ;;  %v16281_v17 = vpop.eup %14424  ;;  %v9536_v33 = vmul.f32 1.442695, %v9510_v10  ;;  %vm9480_vm10 = vcmp.eq.f32.partialorder %v9461_v0, -inf }
 0x9cf   :  { %v9534_v46 = vmul.f32 1.442695, %v9509_v42  ;;  %vm9479_vm11 = vcmp.eq.f32.partialorder %v9459_v12, -inf  ;;  %v16283_v19 = vpop.eup %14426  ;;  %v9496_v26 = vsel %vm9480_vm10, 0.0, %v9461_v0  ;;  %9556 = vadd.xlane.f32.xlu1 %v16281_v17 }
 0x9d0   :  { %v9495_v37 = vsel %vm9479_vm11, 0.0, %v9459_v12  ;;  %14436 = vpow2.f32 %v9536_v33  ;;  %v9512_v29 = vsub.f32 %v16246_v58, %v9496_v26  ;;  %9554 = vadd.xlane.f32.xlu0 %v16283_v19 }
 0x9d1   :  { %v9511_v56 = vsub.f32 %v16248_v9, %v9495_v37  ;;  %14438 = vpow2.f32 %v9534_v46  ;;  %v9465_v54 = vpop.xlane.xlu1 %9464 }
 0x9d2   :  { %v9463_v18 = vpop.xlane.xlu0 %9462  ;;  %v16289_v2 = vpop.eup %14428  ;;  %v9540_v55 = vmul.f32 1.442695, %v9512_v29  ;;  %vm9482_vm12 = vcmp.eq.f32.partialorder %v9465_v54, -inf }
 0x9d3   :  { %v9538_v31 = vmul.f32 1.442695, %v9511_v56  ;;  %vm9481_vm13 = vcmp.eq.f32.partialorder %v9463_v18, -inf  ;;  %v16291_v8 = vpop.eup %14430  ;;  %v9498_v51 = vsel %vm9482_vm12, 0.0, %v9465_v54  ;;  %9560 = vadd.xlane.f32.xlu1 %v16289_v2  ;;  %v8205_v54 = vld [vmem:[#allocation8 + $0x38] sm:$0xff] }
 0x9d4   :  { %v9497_v44 = vsel %vm9481_vm13, 0.0, %v9463_v18  ;;  %14440 = vpow2.f32 %v9540_v55  ;;  %v9514_v58 = vsub.f32 %v16252_v32, %v9498_v51  ;;  %9558 = vadd.xlane.f32.xlu0 %v16291_v8  ;;  %13808 = vmatpush3.xpose.msra.mxu1 %v8205_v54  ;;  %v8208_v54 = vld [vmem:[#allocation8 + $0x98] sm:$0xff] }
 0x9d5   :  { %v9513_v9 = vsub.f32 %v16254_v61, %v9497_v44  ;;  %14442 = vpow2.f32 %v9538_v31  ;;  %13817 = vmatprep.subr.mxu1 %v16812_v39 }
 0x9d6   :  { %v9467_v62 = vpop.xlane.xlu0 %9466  ;;  %v16297_v60 = vpop.eup %14432  ;;  %v9544_v10 = vmul.f32 1.442695, %v9514_v58 }
 0x9d7   :  { %v9542_v42 = vmul.f32 1.442695, %v9513_v9  ;;  %vm9483_vm14 = vcmp.eq.f32.partialorder %v9467_v62, -inf  ;;  %v16299_v0 = vpop.eup %14434  ;;  %9564 = vadd.xlane.f32.xlu1 %v16297_v60  ;;  %v8206_v9 = vld [vmem:[#allocation8 + $0x58] sm:$0xff] }
 0x9d8   :  { %v9499_v12 = vsel %vm9483_vm14, 0.0, %v9467_v62  ;;  %14444 = vpow2.f32 %v9544_v10  ;;  %9562 = vadd.xlane.f32.xlu0 %v16299_v0 }
 0x9d9   :  { %v9515_v33 = vsub.f32 %v16258_v36, %v9499_v12  ;;  %14446 = vpow2.f32 %v9542_v42  ;;  %v8204_v36 = vld [vmem:[#allocation8 + $0x18] sm:$0xff] }
 0x9da   :  { %v16304_v32 = vpop.eup %14436  ;;  %13803 = vmatpush3.xpose.msra.mxu0 %v8204_v36 }
 0x9db   :  { %v9546_v61 = vmul.f32 1.442695, %v9515_v33  ;;  %v16306_v46 = vpop.eup %14438  ;;  %9568 = vadd.xlane.f32.xlu1 %v16304_v32  ;;  %13812 = vmatprep.subr.mxu0 %v16812_v39 }
 0x9dc   :  { %9566 = vadd.xlane.f32.xlu0 %v16306_v46 }
 0x9dd   :  { %14448 = vpow2.f32 %v9546_v61 }
 0x9de   :  { %v16310_v26 = vpop.eup %14440 }
 0x9df   :  { %v16312_v37 = vpop.eup %14442  ;;  %9572 = vadd.xlane.f32.xlu1 %v16310_v26 }
 0x9e0   :  { %9570 = vadd.xlane.f32.xlu0 %v16312_v37 }
 0x9e2   :  { %v16316_v29 = vpop.eup %14444 }
 0x9e3   :  { %v16318_v56 = vpop.eup %14446  ;;  %9576 = vadd.xlane.f32.xlu1 %v16316_v29 }
 0x9e4   :  { %9574 = vadd.xlane.f32.xlu0 %v16318_v56 }
 0x9e7   :  { %v16323_v18 = vpop.eup %14448 }
 0x9e8   :  { %9578 = vadd.xlane.f32.xlu0 %v16323_v18 }
 0x9f4   :  { %10764 = vrot.lane.b32.xlu1 %v15881_v49, %s14887_s26 }
 0x9f8   :  { %10828 = vrot.lane.b32.xlu1 %v16181_v30, %s14902_s24 }
 0x9fc   :  { %10830 = vrot.lane.b32.xlu1 %v16185_v13, %s14902_s24 }
 0x9fe   :  { %10766 = vrot.lane.b32.xlu0 %v15879_v40, %s14887_s26 }
 0xa00   :  { %10770 = vrot.lane.b32.xlu1 %v15887_v3, %s14887_s26 }
 0xa02   :  { %10768 = vrot.lane.b32.xlu0 %v15883_v27, %s14887_s26 }
 0xa04   :  { %10834 = vrot.lane.b32.xlu1 %v16189_v21, %s14902_s24 }
 0xa06   :  { %10832 = vrot.lane.b32.xlu0 %v16183_v7, %s14902_s24 }
 0xa08   :  { %10774 = vrot.lane.b32.xlu1 %v15891_v16, %s14887_s26 }
 0xa0a   :  { %10772 = vrot.lane.b32.xlu0 %v15885_v34, %s14887_s26 }
 0xa53   :  { %v9549_v49 = vpop.xlane.xlu1 %9548 }
 0xa54   :  { %v9580_v40 = vmax.f32 %v9549_v49, 1e-30 }
 0xa56   :  { %14450 = vrcp.f32 %v9580_v40  ;;  %v8207_v40 = vld [vmem:[#allocation8 + $0x78] sm:$0xff] }
 0xa57   :  { %v9553_v30 = vpop.xlane.xlu1 %9552 }
 0xa58   :  { %v9582_v3 = vmax.f32 %v9553_v30, 1e-30  ;;  %v9551_v13 = vpop.xlane.xlu0 %9550 }
 0xa59   :  { %v9581_v55 = vmax.f32 %v9551_v13, 1e-30 }
 0xa5a   :  { %14452 = vrcp.f32 %v9582_v3 }
 0xa5b   :  { %14454 = vrcp.f32 %v9581_v55 }
 0xa5c   :  { %v9557_v27 = vpop.xlane.xlu1 %9556 }
 0xa5d   :  { %v9584_v21 = vmax.f32 %v9557_v27, 1e-30  ;;  %v9555_v31 = vpop.xlane.xlu0 %9554 }
 0xa5e   :  { %v9583_v51 = vmax.f32 %v9555_v31, 1e-30 }
 0xa5f   :  { %14456 = vrcp.f32 %v9584_v21  ;;  %v8210_v21 = vld [vmem:[#allocation8 + $0xd8] sm:$0xff] }
 0xa60   :  { %v14451_v7 = vpop.eup %14450  ;;  %14458 = vrcp.f32 %v9583_v51  ;;  %v9561_v16 = vpop.xlane.xlu1 %9560  ;;  %v8209_v51 = vld [vmem:[#allocation8 + $0xb8] sm:$0xff] }
 0xa61   :  { %v9586_v44 = vmax.f32 %v9561_v16, 1e-30  ;;  %v9559_v58 = vpop.xlane.xlu0 %9558  ;;  %v9612_v34 = vmul.f32 %v14451_v7, %v16268_v52 }
 0xa62   :  { %v9585_v62 = vmax.f32 %v9559_v58, 1e-30 }
 0xa63   :  { %14460 = vrcp.f32 %v9586_v44  ;;  %13805 = vmatmul.mubr.f32.vlgmr.msra.gmra.mrb[118].mxu0 %v9612_v34 }
 0xa64   :  { %v14453_v10 = vpop.eup %14452  ;;  %14462 = vrcp.f32 %v9585_v62  ;;  %v9565_v42 = vpop.xlane.xlu1 %9564  ;;  %13813 = vmatpush3.xpose.msra.mxu0 %v8206_v9  ;;  %13814 = vmatprep.mubr.msk.f32.mxu0 %vm14898_vm1, %v16812_v39 }
 0xa65   :  { %v14455_v12 = vpop.eup %14454  ;;  %v9588_v33 = vmax.f32 %v9565_v42, 1e-30  ;;  %v9563_v61 = vpop.xlane.xlu0 %9562  ;;  %v9614_v36 = vmul.f32 %v14453_v10, %v16273_v63  ;;  %13822 = vmatprep.subr.mxu0 %v16812_v39  ;;  %v8211_v10 = vld [vmem:[#allocation8 + $0xf8] sm:$0xff] }
 0xa66   :  { %v9587_v52 = vmax.f32 %v9563_v61, 1e-30  ;;  %v9613_v49 = vmul.f32 %v14455_v12, %v16275_v6 }
 0xa67   :  { %14464 = vrcp.f32 %v9588_v33  ;;  %13815 = vmatmul.mubr.f32.vlgmr.msra.gmra.mrb[120].mxu0 %v9614_v36 }
 0xa68   :  { %14466 = vrcp.f32 %v9587_v52  ;;  %v9569_v30 = vpop.xlane.xlu1 %9568  ;;  %13810 = vmatmul.mubr.f32.vlgmr.msra.gmra.mrb[122].mxu1 %v9613_v49  ;;  %13823 = vmatpush3.xpose.msra.mxu0 %v8208_v54  ;;  %v8213_v49 = vld [vmem:[#allocation8 + $0x138] sm:$0xff] }
 0xa69   :  { %v14457_v3 = vpop.eup %14456  ;;  %v9590_v13 = vmax.f32 %v9569_v30, 1e-30  ;;  %v9567_v55 = vpop.xlane.xlu0 %9566  ;;  %13818 = vmatpush3.xpose.msra.mxu1 %v8207_v40  ;;  %13819 = vmatprep.mubr.msk.f32.mxu1 %vm14898_vm1, %v16812_v39 }
 0xa6a   :  { %v14459_v63 = vpop.eup %14458  ;;  %v9589_v27 = vmax.f32 %v9567_v55, 1e-30  ;;  %13824 = vmatprep.mubr.msk.f32.mxu0 %vm14898_vm1, %v16812_v39  ;;  %v9616_v6 = vmul.f32 %v14457_v3, %v16281_v17  ;;  %13832 = vmatprep.subr.mxu0 %v16812_v39  ;;  %v8216_v55 = vld [vmem:[#allocation8 + $0x198] sm:$0xff] }
 0xa6b   :  { %14468 = vrcp.f32 %v9590_v13  ;;  %v9615_v31 = vmul.f32 %v14459_v63, %v16283_v19  ;;  %13827 = vmatprep.subr.mxu1 %v16812_v39  ;;  %v8212_v19 = vld [vmem:[#allocation8 + $0x118] sm:$0xff] }
 0xa6c   :  { %14470 = vrcp.f32 %v9589_v27  ;;  %13825 = vmatmul.mubr.f32.vlgmr.msra.gmra.mrb[122].mxu0 %v9616_v6  ;;  %v9573_v7 = vpop.xlane.xlu1 %9572  ;;  %v8215_v63 = vld [vmem:[#allocation8 + $0x178] sm:$0xff] }
 0xa6d   :  { %v14461_v16 = vpop.eup %14460  ;;  %v9592_v44 = vmax.f32 %v9573_v7, 1e-30  ;;  %13820 = vmatmul.mubr.f32.vlgmr.msra.gmra.mrb[124].mxu1 %v9615_v31  ;;  %v9571_v58 = vpop.xlane.xlu0 %9570  ;;  %13833 = vmatpush3.xpose.msra.mxu0 %v8210_v21  ;;  %v8218_v21 = vld [vmem:[#allocation8 + $0x1d8] sm:$0xff] }
 0xa6e   :  { %v14463_v34 = vpop.eup %14462  ;;  %v9591_v9 = vmax.f32 %v9571_v58, 1e-30  ;;  %13828 = vmatpush3.xpose.msra.mxu1 %v8209_v51  ;;  %13829 = vmatprep.mubr.msk.f32.mxu1 %vm14898_vm1, %v16812_v39  ;;  %v9618_v17 = vmul.f32 %v14461_v16, %v16289_v2  ;;  %v8217_v31 = vld [vmem:[#allocation8 + $0x1b8] sm:$0xff] }
 0xa6f   :  { %14472 = vrcp.f32 %v9592_v44  ;;  %13834 = vmatprep.mubr.msk.f32.mxu0 %vm14898_vm1, %v16812_v39  ;;  %13842 = vmatprep.subr.mxu0 %v16812_v39  ;;  %v9617_v62 = vmul.f32 %v14463_v34, %v16291_v8  ;;  %v8214_v8 = vld [vmem:[#allocation8 + $0x158] sm:$0xff]  ;;  %v10991_v34 = vld [vmem:[#allocation16 + $0x8] sm:$0xff] }
 0xa70   :  { %14474 = vrcp.f32 %v9591_v9  ;;  %13835 = vmatmul.mubr.f32.vlgmr.msra.gmra.mrb[124].mxu0 %v9618_v17  ;;  %v9577_v42 = vpop.xlane.xlu1 %9576  ;;  %13837 = vmatprep.subr.mxu1 %v16812_v39  ;;  %v10993_v17 = vld [vmem:[#allocation16 + $0x18] sm:$0xff] }
 0xa71   :  { %v14465_v12 = vpop.eup %14464  ;;  %v9594_v33 = vmax.f32 %v9577_v42, 1e-30  ;;  %13830 = vmatmul.mubr.f32.vlgmr.msra.gmra.mrb[126].mxu1 %v9617_v62  ;;  %v9575_v61 = vpop.xlane.xlu0 %9574  ;;  %13843 = vmatpush3.xpose.msra.mxu0 %v8212_v19 }
 0xa72   :  { %v14467_v2 = vpop.eup %14466  ;;  %v9593_v36 = vmax.f32 %v9575_v61, 1e-30  ;;  %13838 = vmatpush3.xpose.msra.mxu1 %v8211_v10  ;;  %13839 = vmatprep.mubr.msk.f32.mxu1 %vm14898_vm1, %v16812_v39  ;;  %v9620_v54 = vmul.f32 %v14465_v12, %v16297_v60 }
 0xa73   :  { %14476 = vrcp.f32 %v9594_v33  ;;  %13844 = vmatprep.mubr.msk.f32.mxu0 %vm14898_vm1, %v16812_v39  ;;  %13852 = vmatprep.subr.mxu0 %v16812_v39  ;;  %v9619_v52 = vmul.f32 %v14467_v2, %v16299_v0 }
 0xa74   :  { %14478 = vrcp.f32 %v9593_v36  ;;  %13845 = vmatmul.mubr.f32.vlgmr.msra.gmra.mrb[126].mxu0 %v9620_v54  ;;  %13847 = vmatprep.subr.mxu1 %v16812_v39 }
 0xa75   :  { %v14469_v40 = vpop.eup %14468  ;;  %13840 = vmatmul.mubr.f32.vlgmr.msra.gmra.mrb[128].mxu1 %v9619_v52  ;;  %v9579_v30 = vpop.xlane.xlu0 %9578  ;;  %13853 = vmatpush3.xpose.msra.mxu0 %v8214_v8 }
 0xa76   :  { %v14471_v3 = vpop.eup %14470  ;;  %v9595_v60 = vmax.f32 %v9579_v30, 1e-30  ;;  %13848 = vmatpush3.xpose.msra.mxu1 %v8213_v49  ;;  %13849 = vmatprep.mubr.msk.f32.mxu1 %vm14898_vm1, %v16812_v39  ;;  %v9622_v13 = vmul.f32 %v14469_v40, %v16304_v32 }
 0xa77   :  { %13854 = vmatprep.mubr.msk.f32.mxu0 %vm14898_vm1, %v16812_v39  ;;  %13862 = vmatprep.subr.mxu0 %v16812_v39  ;;  %v9621_v0 = vmul.f32 %v14471_v3, %v16306_v46 }
 0xa78   :  { %14480 = vrcp.f32 %v9595_v60  ;;  %13855 = vmatmul.mubr.f32.vlgmr.msra.gmra.mrb[128].mxu0 %v9622_v13  ;;  %13857 = vmatprep.subr.mxu1 %v16812_v39 }
 0xa79   :  { %v14473_v27 = vpop.eup %14472  ;;  %13850 = vmatmul.mubr.f32.vlgmr.msra.gmra.mrb[130].mxu1 %v9621_v0  ;;  %13863 = vmatpush3.xpose.msra.mxu0 %v8216_v55 }
 0xa7a   :  { %v14475_v6 = vpop.eup %14474  ;;  %13858 = vmatpush3.xpose.msra.mxu1 %v8215_v63  ;;  %13859 = vmatprep.mubr.msk.f32.mxu1 %vm14898_vm1, %v16812_v39  ;;  %v9624_v32 = vmul.f32 %v14473_v27, %v16310_v26 }
 0xa7b   :  { %13864 = vmatprep.mubr.msk.f32.mxu0 %vm14898_vm1, %v16812_v39  ;;  %13872 = vmatprep.subr.mxu0 %v16812_v39  ;;  %v9623_v46 = vmul.f32 %v14475_v6, %v16312_v37  ;;  %v8219_v37 = vld [vmem:[#allocation8 + $0x1f8] sm:$0xff] }
 0xa7c   :  { %13865 = vmatmul.mubr.f32.vlgmr.msra.gmra.mrb[130].mxu0 %v9624_v32  ;;  %13867 = vmatprep.subr.mxu1 %v16812_v39 }
 0xa7d   :  { %v14477_v51 = vpop.eup %14476  ;;  %13860 = vmatmul.mubr.f32.vlgmr.msra.gmra.mrb[132].mxu1 %v9623_v46  ;;  %13873 = vmatpush3.xpose.msra.mxu0 %v8218_v21 }
 0xa7e   :  { %v14479_v7 = vpop.eup %14478  ;;  %13868 = vmatpush3.xpose.msra.mxu1 %v8217_v31  ;;  %13869 = vmatprep.mubr.msk.f32.mxu1 %vm14898_vm1, %v16812_v39  ;;  %v9626_v26 = vmul.f32 %v14477_v51, %v16316_v29  ;;  %v10990_v29 = vld [vmem:[#allocation16] sm:$0xff] }
 0xa7f   :  { %13874 = vmatprep.mubr.msk.f32.mxu0 %vm14898_vm1, %v16812_v39  ;;  %v9625_v16 = vmul.f32 %v14479_v7, %v16318_v56  ;;  %13877 = vmatprep.subr.mxu1 %v16812_v39  ;;  %v14098_v9 = vpack.c.bf16 %v10991_v34, %v10990_v29  ;;  %v10992_v56 = vld [vmem:[#allocation16 + $0x10] sm:$0xff]  ;;  %v16813_v7 = vld [vmem:[#allocation27_spill] sm:$0xff] }
 0xa80   :  { %13875 = vmatmul.mubr.f32.vlgmr.msra.gmra.mrb[132].mxu0 %v9626_v26  ;;  %v14102_v19 = vpack.c.bf16 %v10993_v17, %v10992_v56  ;;  %v16814_v56 = vld [vmem:[#allocation28_spill] sm:$0xff] }
 0xa81   :  { %13870 = vmatmul.mubr.f32.vlgmr.msra.gmra.mrb[134].mxu1 %v9625_v16  ;;  %14099 = vmatprep.subr.bf16.mxu0 %v14098_v9 }
 0xa82   :  { %v14481_v44 = vpop.eup %14480  ;;  %13878 = vmatpush3.xpose.msra.mxu1 %v8219_v37  ;;  %13879 = vmatprep.mubr.msk.f32.mxu1 %vm14898_vm1, %v16812_v39 }
 0xa83   :  { %v9627_v58 = vmul.f32 %v14481_v44, %v16323_v18  ;;  %14101 = vmatpush3.bf16.msra.mxu0 %v14098_v9 }
 0xa84   :  { %14103 = vmatprep.subr.bf16.mxu0 %v14102_v19 }
 0xa85   :  { %13880 = vmatmul.mubr.f32.vlgmr.msra.gmra.mrb[136].mxu1 %v9627_v58 }
 0xa86   :  { %13922 = vmatprep.mubr.msk.f32.mxu1 %vm14898_vm1, %v16812_v39 }
 0xa87   :  { %14105 = vmatpush3.bf16.msra.mxu0 %v14102_v19 }
 0xb36   :  { %v9694_v62 = vpop.f32.mrb[118].mxu0 }
 0xb37   :  { %v13806_v10 = vpop.f32.mrb[119].mxu0  ;;  %10892 = vrot.lane.b32.xlu0 %v9694_v62, %s14903_s27 }
 0xb3a   :  { %v9834_v18 = vpop.f32.mrb[120].mxu0 }
 0xb3b   :  { %v9764_v42 = vpop.f32.mrb[122].mxu1  ;;  %v13816_v12 = vpop.f32.mrb[121].mxu0  ;;  %10836 = vrot.lane.b32.xlu0 %v16187_v14, %s14902_s24 }
 0xb3c   :  { %10894 = vrot.lane.b32.xlu1 %v9764_v42, %s14903_s27  ;;  %v13811_v33 = vpop.f32.mrb[123].mxu1  ;;  %v16815_v42 = vld [vmem:[#allocation29_spill] sm:$0xff] }
 0xb3f   :  { %v9974_v61 = vpop.f32.mrb[122].mxu0  ;;  %10776 = vrot.lane.b32.xlu0 %v15889_v25, %s14887_s26 }
 0xb40   :  { %v9904_v2 = vpop.f32.mrb[124].mxu1  ;;  %v13826_v36 = vpop.f32.mrb[123].mxu0  ;;  %10838 = vrot.lane.b32.xlu1 %v16193_v57, %s14902_s24 }
 0xb41   :  { %v13821_v54 = vpop.f32.mrb[125].mxu1 }
 0xb43   :  { %v10114_v8 = vpop.f32.mrb[124].mxu0  ;;  %10840 = vrot.lane.b32.xlu0 %v16191_v35, %s14902_s24 }
 0xb44   :  { %v10044_v52 = vpop.f32.mrb[126].mxu1  ;;  %v13836_v49 = vpop.f32.mrb[125].mxu0  ;;  %10778 = vrot.lane.b32.xlu1 %v15895_v4, %s14887_s26 }
 0xb45   :  { %v13831_v14 = vpop.f32.mrb[127].mxu1 }
 0xb46   :  { %v16816_v14 = vld [vmem:[#allocation30_spill] sm:$0xff] }
 0xb47   :  { %v10254_v40 = vpop.f32.mrb[126].mxu0  ;;  %10896 = vrot.lane.b32.xlu0 %v9834_v18, %s14903_s27 }
 0xb48   :  { %v10184_v25 = vpop.f32.mrb[128].mxu1  ;;  %v13846_v30 = vpop.f32.mrb[127].mxu0  ;;  %10842 = vrot.lane.b32.xlu1 %v16197_v5, %s14902_s24 }
 0xb49   :  { %v13841_v57 = vpop.f32.mrb[129].mxu1 }
 0xb4b   :  { %v10394_v3 = vpop.f32.mrb[128].mxu0  ;;  %10780 = vrot.lane.b32.xlu0 %v15893_v15, %s14887_s26 }
 0xb4c   :  { %v10324_v35 = vpop.f32.mrb[130].mxu1  ;;  %v13856_v60 = vpop.f32.mrb[129].mxu0  ;;  %10898 = vrot.lane.b32.xlu1 %v9904_v2, %s14903_s27 }
 0xb4d   :  { %v13851_v13 = vpop.f32.mrb[131].mxu1 }
 0xb4f   :  { %v10534_v4 = vpop.f32.mrb[130].mxu0  ;;  %10844 = vrot.lane.b32.xlu0 %v16195_v45, %s14902_s24 }
 0xb50   :  { %v10464_v55 = vpop.f32.mrb[132].mxu1  ;;  %v13866_v0 = vpop.f32.mrb[131].mxu0  ;;  %10782 = vrot.lane.b32.xlu1 %v15899_v48, %s14887_s26  ;;  %v11195_v48 = vld [vmem:[#allocation10 + $0x8] sm:$0xff] }
 0xb51   :  { %v13861_v5 = vpop.f32.mrb[133].mxu1 }
 0xb52   :  { %v16818_v5 = vld [vmem:[#allocation34_spill] sm:$0xff] }
 0xb53   :  { %v10674_v63 = vpop.f32.mrb[132].mxu0  ;;  %10784 = vrot.lane.b32.xlu0 %v15897_v41, %s14887_s26  ;;  %v11194_v41 = vld [vmem:[#allocation10] sm:$0xff] }
 0xb54   :  { %v10604_v15 = vpop.f32.mrb[134].mxu1  ;;  %v13876_v27 = vpop.f32.mrb[133].mxu0  ;;  %10846 = vrot.lane.b32.xlu1 %v16201_v50, %s14902_s24 }
 0xb55   :  { %v13871_v6 = vpop.f32.mrb[135].mxu1 }
 0xb57   :  { %10900 = vrot.lane.b32.xlu0 %v9974_v61, %s14903_s27 }
 0xb58   :  { %v10744_v32 = vpop.f32.mrb[136].mxu1  ;;  %10786 = vrot.lane.b32.xlu1 %v15903_v11, %s14887_s26  ;;  %v14107_v11 = vpack.c.bf16 %v11195_v48, %v11194_v41 }
 0xb59   :  { %v13881_v45 = vpop.f32.mrb[137].mxu1 }
 0xb5a   :  { %v16819_v45 = vld [vmem:[#allocation32_spill] sm:$0xff] }
 0xb5b   :  { %10848 = vrot.lane.b32.xlu0 %v16199_v28, %s14902_s24 }
 0xb5c   :  { %10902 = vrot.lane.b32.xlu1 %v10044_v52, %s14903_s27 }
 0xb5f   :  { %10904 = vrot.lane.b32.xlu0 %v10114_v8, %s14903_s27 }
 0xb60   :  { %10850 = vrot.lane.b32.xlu1 %v16205_v43, %s14902_s24 }
 0xb63   :  { %10788 = vrot.lane.b32.xlu0 %v15901_v1, %s14887_s26  ;;  %v14904_v1 = vmov 0.0|0.0  }
 0xb64   :  { %10906 = vrot.lane.b32.xlu1 %v10184_v25, %s14903_s27  ;;  %14106 = vmatprep.subr.bf16.mxu1 %v14904_v1 }
 0xb65   :  { %14130 = vmatprep.subr.bf16.mxu0 %v14904_v1  ;;  %14108 = vmatpush3.bf16.msra.mxu1 %v14107_v11 }
 0xb66   :  { %14109 = vmatprep.subr.bf16.mxu1 %v14904_v1 }
 0xb67   :  { %10908 = vrot.lane.b32.xlu0 %v10254_v40, %s14903_s27 }
 0xb68   :  { %10790 = vrot.lane.b32.xlu1 %v15907_v59, %s14887_s26 }
 0xb6b   :  { %10852 = vrot.lane.b32.xlu0 %v16203_v20, %s14902_s24 }
 0xb6c   :  { %10910 = vrot.lane.b32.xlu1 %v10324_v35, %s14903_s27  ;;  %v16817_v35 = vld [vmem:[#allocation31_spill] sm:$0xff] }
 0xb6f   :  { %10912 = vrot.lane.b32.xlu0 %v10394_v3, %s14903_s27 }
 0xb70   :  { %10854 = vrot.lane.b32.xlu1 %v16209_v23, %s14902_s24 }
 0xb73   :  { %10792 = vrot.lane.b32.xlu0 %v15905_v53, %s14887_s26  ;;  %v10765_v53 = vpop.permute.xlu1 %10764 }
 0xb74   :  { %10914 = vrot.lane.b32.xlu1 %v10464_v55, %s14903_s27  ;;  %v10940_v21 = vsel %vm549_vm2, %v15549_v22, %v10765_v53 }
 0xb77   :  { %10916 = vrot.lane.b32.xlu0 %v10534_v4, %s14903_s27  ;;  %v10829_v59 = vpop.permute.xlu1 %10828 }
 0xb78   :  { %10794 = vrot.lane.b32.xlu1 %v15909_v24, %s14887_s26  ;;  %v10767_v24 = vpop.permute.xlu0 %10766  ;;  %v10957_v46 = vsel %vm10956_vm15, %v10940_v21, %v10829_v59 }
 0xb79   :  { %v10941_v26 = vsel %vm549_vm2, %v16813_v7, %v10767_v24  ;;  %v16820_v24 = vld [vmem:[#allocation36_spill] sm:$0xff]  ;;  %v16822_v7 = vld [vmem:[#allocation38_spill] sm:$0xff] }
 0xb7b   :  { %10856 = vrot.lane.b32.xlu0 %v16207_v47, %s14902_s24  ;;  %v10831_v28 = vpop.permute.xlu1 %10830 }
 0xb7c   :  { %10918 = vrot.lane.b32.xlu1 %v10604_v15, %s14903_s27  ;;  %v10769_v50 = vpop.permute.xlu0 %10768  ;;  %v10958_v37 = vsel %vm10956_vm15, %v10941_v26, %v10831_v28 }
 0xb7d   :  { %v10942_v17 = vsel %vm549_vm2, %v16814_v56, %v10769_v50 }
 0xb7f   :  { %10920 = vrot.lane.b32.xlu0 %v10674_v63, %s14903_s27  ;;  %v10771_v20 = vpop.permute.xlu1 %10770 }
 0xb80   :  { %10858 = vrot.lane.b32.xlu1 %v16211_v38, %s14902_s24  ;;  %v10833_v43 = vpop.permute.xlu0 %10832  ;;  %v10943_v12 = vsel %vm549_vm2, %v16815_v42, %v10771_v20 }
 0xb81   :  { %v10959_v19 = vsel %vm10956_vm15, %v10942_v17, %v10833_v43 }
 0xb83   :  { %v10835_v47 = vpop.permute.xlu1 %10834 }
 0xb84   :  { %10922 = vrot.lane.b32.xlu1 %v10744_v32, %s14903_s27  ;;  %v10773_v23 = vpop.permute.xlu0 %10772  ;;  %v10960_v61 = vsel %vm10956_vm15, %v10943_v12, %v10835_v47 }
 0xb85   :  { %v10944_v40 = vsel %vm549_vm2, %v16816_v14, %v10773_v23  ;;  %v16821_v23 = vld [vmem:[#allocation33_spill] sm:$0xff] }
 0xb87   :  { %v10775_v38 = vpop.permute.xlu1 %10774 }
 0xb88   :  { %v10945_v60 = vsel %vm549_vm2, %v16817_v35, %v10775_v38 }
 0xba9   :  { %v10893_v31 = vpop.permute.xlu0 %10892 }
 0xbaa   :  { %v10974_v51 = vsel %vm10973_vm3, %v10957_v46, %v10893_v31 }
 0xbab   :  { %13890 = vmatprep.mubr.msk.f32.mxu0 %vm307_vm0, %v10974_v51 }
 0xbad   :  { %v10837_v16 = vpop.permute.xlu0 %10836 }
 0xbae   :  { %v10895_v44 = vpop.permute.xlu1 %10894  ;;  %v10961_v25 = vsel %vm10956_vm15, %v10944_v40, %v10837_v16 }
 0xbaf   :  { %v10975_v58 = vsel %vm10973_vm3, %v10958_v37, %v10895_v44 }
 0xbb0   :  { %13891 = vmatmul.mubr.msk.f32.vlgmr.msra.gmra.mrb[134].mxu0 %vm307_vm0, %v10975_v58 }
 0xbb1   :  { %v10777_v22 = vpop.permute.xlu0 %10776 }
 0xbb2   :  { %v10839_v29 = vpop.permute.xlu1 %10838  ;;  %v10946_v63 = vsel %vm549_vm2, %v16818_v5, %v10777_v22  ;;  %v16823_v22 = vld [vmem:[#allocation35_spill] sm:$0xff] }
 0xbb3   :  { %v10962_v4 = vsel %vm10956_vm15, %v10945_v60, %v10839_v29  ;;  %v11210_v5 = vld [vmem:[#allocation10 + $0x80] sm:$0xff] }
 0xbb5   :  { %v10841_v34 = vpop.permute.xlu0 %10840 }
 0xbb6   :  { %v10779_v9 = vpop.permute.xlu1 %10778  ;;  %v10963_v15 = vsel %vm10956_vm15, %v10946_v63, %v10841_v34  ;;  %v11211_v63 = vld [vmem:[#allocation10 + $0x88] sm:$0xff] }
 0xbb7   :  { %v10947_v41 = vsel %vm549_vm2, %v16819_v45, %v10779_v9  ;;  %v11198_v45 = vld [vmem:[#allocation10 + $0x20] sm:$0xff] }
 0xbb9   :  { %v10897_v62 = vpop.permute.xlu0 %10896 }
 0xbba   :  { %v10976_v10 = vsel %vm10973_vm3, %v10959_v19, %v10897_v62  ;;  %v10843_v18 = vpop.permute.xlu1 %10842  ;;  %v16824_v19 = vld [vmem:[#allocation40_spill] sm:$0xff] }
 0xbbb   :  { %13893 = vmatprep.mubr.msk.f32.mxu0 %vm307_vm0, %v10976_v10  ;;  %v10964_v11 = vsel %vm10956_vm15, %v10947_v41, %v10843_v18  ;;  %v11199_v41 = vld [vmem:[#allocation10 + $0x28] sm:$0xff] }
 0xbbd   :  { %v10781_v33 = vpop.permute.xlu0 %10780 }
 0xbbe   :  { %v10899_v2 = vpop.permute.xlu1 %10898  ;;  %v10948_v28 = vsel %vm549_vm2, %v16820_v24, %v10781_v33  ;;  %v16825_v33 = vld [vmem:[#allocation37_spill] sm:$0xff] }
 0xbbf   :  { %v10977_v36 = vsel %vm10973_vm3, %v10960_v61, %v10899_v2 }
 0xbc0   :  { %13894 = vmatmul.mubr.msk.f32.gmra.mrb[136].mxu0 %vm307_vm0, %v10977_v36 }
 0xbc1   :  { %v10845_v54 = vpop.permute.xlu0 %10844 }
 0xbc2   :  { %v10783_v8 = vpop.permute.xlu1 %10782  ;;  %v10965_v50 = vsel %vm10956_vm15, %v10948_v28, %v10845_v54  ;;  %v11200_v28 = vld [vmem:[#allocation10 + $0x30] sm:$0xff] }
 0xbc3   :  { %v10949_v21 = vsel %vm549_vm2, %v16821_v23, %v10783_v8 }
 0xbc5   :  { %v10785_v52 = vpop.permute.xlu0 %10784 }
 0xbc6   :  { %v10847_v49 = vpop.permute.xlu1 %10846  ;;  %v10950_v26 = vsel %vm549_vm2, %v16822_v7, %v10785_v52  ;;  %v16826_v52 = vld [vmem:[#allocation41_spill] sm:$0xff]  ;;  %v11207_v7 = vld [vmem:[#allocation10 + $0x68] sm:$0xff] }
 0xbc7   :  { %v10966_v31 = vsel %vm10956_vm15, %v10949_v21, %v10847_v49 }
 0xbc9   :  { %v10901_v30 = vpop.permute.xlu0 %10900 }
 0xbca   :  { %v10978_v57 = vsel %vm10973_vm3, %v10961_v25, %v10901_v30  ;;  %v10787_v3 = vpop.permute.xlu1 %10786 }
 0xbcb   :  { %13896 = vmatprep.mubr.msk.f32.mxu0 %vm307_vm0, %v10978_v57  ;;  %v10951_v29 = vsel %vm549_vm2, %v16823_v22, %v10787_v3  ;;  %v16827_v57 = vld [vmem:[#allocation39_spill] sm:$0xff]  ;;  %v11209_v22 = vld [vmem:[#allocation10 + $0x78] sm:$0xff] }
 0xbcd   :  { %v10849_v13 = vpop.permute.xlu0 %10848 }
 0xbce   :  { %v10903_v55 = vpop.permute.xlu1 %10902  ;;  %v10967_v16 = vsel %vm10956_vm15, %v10950_v26, %v10849_v13 }
 0xbcf   :  { %v10979_v0 = vsel %vm10973_vm3, %v10962_v4, %v10903_v55  ;;  %v11196_v4 = vld [vmem:[#allocation10 + $0x10] sm:$0xff]  ;;  %v11197_v55 = vld [vmem:[#allocation10 + $0x18] sm:$0xff] }
 0xbd0   :  { %13897 = vmatmul.mubr.msk.f32.gmra.mrb[138].mxu0 %vm307_vm0, %v10979_v0  ;;  %v14110_v0 = vpack.c.bf16 %v11197_v55, %v11196_v4 }
 0xbd1   :  { %v10905_v27 = vpop.permute.xlu0 %10904 }
 0xbd2   :  { %v10980_v6 = vsel %vm10973_vm3, %v10963_v15, %v10905_v27  ;;  %v10851_v32 = vpop.permute.xlu1 %10850  ;;  %14111 = vmatpush3.bf16.msra.mxu1 %v14110_v0  ;;  %v14131_v15 = vpack.c.bf16 %v11211_v63, %v11210_v5  ;;  %v11212_v27 = vld [vmem:[#allocation10 + $0x90] sm:$0xff] }
 0xbd3   :  { %13899 = vmatprep.mubr.msk.f32.mxu0 %vm307_vm0, %v10980_v6  ;;  %v10968_v9 = vsel %vm10956_vm15, %v10951_v29, %v10851_v32  ;;  %14112 = vmatprep.subr.bf16.mxu1 %v14904_v1  ;;  %v11213_v6 = vld [vmem:[#allocation10 + $0x98] sm:$0xff] }
 0xbd4   :  { %14132 = vmatpush3.bf16.msra.mxu0 %v14131_v15  ;;  %v14134_v32 = vpack.c.bf16 %v11213_v6, %v11212_v27  ;;  %v11232_v15 = vld [vmem:[#allocation10 + $0x130] sm:$0xff]  ;;  %v11233_v6 = vld [vmem:[#allocation10 + $0x138] sm:$0xff] }
 0xbd5   :  { %v10789_v48 = vpop.permute.xlu0 %10788  ;;  %14133 = vmatprep.subr.bf16.mxu0 %v14904_v1 }
 0xbd6   :  { %v10907_v53 = vpop.permute.xlu1 %10906  ;;  %v10952_v62 = vsel %vm549_vm2, %v16824_v19, %v10789_v48  ;;  %v16553_v48 = vld [vmem:[#allocation17] ss:$0 sm:$0xff]  ;;  %v11216_v19 = vld [vmem:[#allocation10 + $0xb0] sm:$0xff] }
 0xbd7   :  { %v10981_v59 = vsel %vm10973_vm3, %v10964_v11, %v10907_v53 }
 0xbd8   :  { %13900 = vmatmul.mubr.msk.f32.gmra.mrb[140].mxu0 %vm307_vm0, %v10981_v59  ;;  %v14113_v59 = vpack.c.bf16 %v11199_v41, %v11198_v45  ;;  %v11229_v45 = vld [vmem:[#allocation10 + $0x118] sm:$0xff]  ;;  %v14164_v41 = vpack.c.bf16 %v11233_v6, %v11232_v15 }
 0xbd9   :  { %v10909_v20 = vpop.permute.xlu0 %10908  ;;  %14135 = vmatpush3.bf16.msra.mxu0 %v14134_v32  ;;  %v11228_v32 = vld [vmem:[#allocation10 + $0x110] sm:$0xff] }
 0xbda   :  { %v10982_v43 = vsel %vm10973_vm3, %v10965_v50, %v10909_v20  ;;  %v10791_v47 = vpop.permute.xlu1 %10790  ;;  %14142 = vmatprep.subr.bf16.mxu0 %v14904_v1  ;;  %v11201_v50 = vld [vmem:[#allocation10 + $0x38] sm:$0xff] }
 0xbdb   :  { %13902 = vmatprep.mubr.msk.f32.mxu0 %vm307_vm0, %v10982_v43  ;;  %v10953_v61 = vsel %vm549_vm2, %v16825_v33, %v10791_v47  ;;  %v14116_v20 = vpack.c.bf16 %v11201_v50, %v11200_v28  ;;  %v11202_v43 = vld [vmem:[#allocation10 + $0x40] sm:$0xff]  ;;  %v11203_v47 = vld [vmem:[#allocation10 + $0x48] sm:$0xff] }
 0xbdc   :  { %v14119_v23 = vpack.c.bf16 %v11203_v47, %v11202_v43  ;;  %v11219_v33 = vld [vmem:[#allocation10 + $0xc8] sm:$0xff] }
 0xbdd   :  { %v10853_v46 = vpop.permute.xlu0 %10852  ;;  %v11235_v28 = vld [vmem:[#allocation10 + $0x148] sm:$0xff] }
 0xbde   :  { %v10911_v38 = vpop.permute.xlu1 %10910  ;;  %v10969_v10 = vsel %vm10956_vm15, %v10952_v62, %v10853_v46  ;;  %v11204_v46 = vld [vmem:[#allocation10 + $0x50] sm:$0xff]  ;;  %v11217_v62 = vld [vmem:[#allocation10 + $0xb8] sm:$0xff] }
 0xbdf   :  { %v10983_v51 = vsel %vm10973_vm3, %v10966_v31, %v10911_v38  ;;  %v11205_v31 = vld [vmem:[#allocation10 + $0x58] sm:$0xff] }
 0xbe0   :  { %13903 = vmatmul.mubr.msk.f32.gmra.mrb[142].mxu0 %vm307_vm0, %v10983_v51  ;;  %v14122_v38 = vpack.c.bf16 %v11205_v31, %v11204_v46  ;;  %v11206_v51 = vld [vmem:[#allocation10 + $0x60] sm:$0xff]  ;;  %v11241_v31 = vld [vmem:[#allocation10 + $0x178] sm:$0xff] }
 0xbe1   :  { %v10913_v37 = vpop.permute.xlu0 %10912 }
 0xbe2   :  { %v10984_v44 = vsel %vm10973_vm3, %v10967_v16, %v10913_v37  ;;  %v10855_v58 = vpop.permute.xlu1 %10854  ;;  %v14125_v37 = vpack.c.bf16 %v11207_v7, %v11206_v51  ;;  %v11237_v51 = vld [vmem:[#allocation10 + $0x158] sm:$0xff] }
 0xbe3   :  { %13905 = vmatprep.mubr.msk.f32.mxu0 %vm307_vm0, %v10984_v44  ;;  %v10970_v36 = vsel %vm10956_vm15, %v10953_v61, %v10855_v58  ;;  %v11208_v58 = vld [vmem:[#allocation10 + $0x70] sm:$0xff] }
 0xbe4   :  { %v14128_v29 = vpack.c.bf16 %v11209_v22, %v11208_v58  ;;  %v11243_v58 = vld [vmem:[#allocation10 + $0x188] sm:$0xff] }
 0xbe5   :  { %v10793_v34 = vpop.permute.xlu0 %10792 }
 0xbe6   :  { %v10915_v56 = vpop.permute.xlu1 %10914  ;;  %v10954_v49 = vsel %vm549_vm2, %v16826_v52, %v10793_v34  ;;  %v11214_v34 = vld [vmem:[#allocation10 + $0xa0] sm:$0xff]  ;;  %v11224_v52 = vld [vmem:[#allocation10 + $0xf0] sm:$0xff] }
 0xbe7   :  { %v10985_v17 = vsel %vm10973_vm3, %v10968_v9, %v10915_v56  ;;  %v11215_v9 = vld [vmem:[#allocation10 + $0xa8] sm:$0xff] }
 0xbe8   :  { %13906 = vmatmul.mubr.msk.f32.gmra.mrb[144].mxu0 %vm307_vm0, %v10985_v17  ;;  %v14137_v56 = vpack.c.bf16 %v11215_v9, %v11214_v34 }
 0xbe9   :  { %v10917_v18 = vpop.permute.xlu0 %10916 }
 0xbea   :  { %v10986_v42 = vsel %vm10973_vm3, %v10969_v10, %v10917_v18  ;;  %v10795_v12 = vpop.permute.xlu1 %10794  ;;  %v14140_v10 = vpack.c.bf16 %v11217_v62, %v11216_v19  ;;  %v11222_v18 = vld [vmem:[#allocation10 + $0xe0] sm:$0xff]  ;;  %v11249_v62 = vld [vmem:[#allocation10 + $0x1b8] sm:$0xff] }
 0xbeb   :  { %13908 = vmatprep.mubr.msk.f32.mxu0 %vm307_vm0, %v10986_v42  ;;  %v10955_v3 = vsel %vm549_vm2, %v16827_v57, %v10795_v12  ;;  %v11223_v42 = vld [vmem:[#allocation10 + $0xe8] sm:$0xff]  ;;  %v11218_v12 = vld [vmem:[#allocation10 + $0xc0] sm:$0xff] }
 0xbed   :  { %v10857_v2 = vpop.permute.xlu0 %10856 }
 0xbee   :  { %v10919_v54 = vpop.permute.xlu1 %10918  ;;  %v10971_v14 = vsel %vm10956_vm15, %v10954_v49, %v10857_v2 }
 0xbef   :  { %v10987_v8 = vsel %vm10973_vm3, %v10970_v36, %v10919_v54  ;;  %v14149_v54 = vpack.c.bf16 %v11223_v42, %v11222_v18  ;;  %v11245_v18 = vld [vmem:[#allocation10 + $0x198] sm:$0xff] }
 0xbf0   :  { %13909 = vmatmul.mubr.msk.f32.gmra.mrb[146].mxu0 %vm307_vm0, %v10987_v8  ;;  %v14143_v8 = vpack.c.bf16 %v11219_v33, %v11218_v12  ;;  %v11254_v33 = vld [vmem:[#allocation10 + $0x1e0] sm:$0xff] }
 0xbf1   :  { %v10921_v40 = vpop.permute.xlu0 %10920 }
 0xbf2   :  { %v10988_v25 = vsel %vm10973_vm3, %v10971_v14, %v10921_v40  ;;  %v10859_v30 = vpop.permute.xlu1 %10858  ;;  %v11225_v14 = vld [vmem:[#allocation10 + $0xf8] sm:$0xff]  ;;  %v11220_v40 = vld [vmem:[#allocation10 + $0xd0] sm:$0xff] }
 0xbf3   :  { %13911 = vmatprep.mubr.msk.f32.mxu0 %vm307_vm0, %v10988_v25  ;;  %v10972_v35 = vsel %vm10956_vm15, %v10955_v3, %v10859_v30  ;;  %v11221_v25 = vld [vmem:[#allocation10 + $0xd8] sm:$0xff]  ;;  %v14152_v30 = vpack.c.bf16 %v11225_v14, %v11224_v52  ;;  %v11230_v3 = vld [vmem:[#allocation10 + $0x120] sm:$0xff] }
 0xbf4   :  { %v14146_v57 = vpack.c.bf16 %v11221_v25, %v11220_v40  ;;  %v11256_v40 = vld [vmem:[#allocation10 + $0x1f0] sm:$0xff] }
 0xbf6   :  { %v10923_v60 = vpop.permute.xlu1 %10922 }
 0xbf7   :  { %v10989_v13 = vsel %vm10973_vm3, %v10972_v35, %v10923_v60  ;;  %v11231_v35 = vld [vmem:[#allocation10 + $0x128] sm:$0xff]  ;;  %v11226_v60 = vld [vmem:[#allocation10 + $0x100] sm:$0xff] }
 0xbf8   :  { %13912 = vmatmul.mubr.msk.f32.gmra.mrb[148].mxu0 %vm307_vm0, %v10989_v13  ;;  %v11227_v13 = vld [vmem:[#allocation10 + $0x108] sm:$0xff]  ;;  %v14161_v5 = vpack.c.bf16 %v11231_v35, %v11230_v3  ;;  %v11253_v3 = vld [vmem:[#allocation10 + $0x1d8] sm:$0xff] }
 0xbf9   :  { %13966 = vmatprep.mubr.msk.f32.mxu0 %vm14898_vm1, %v16812_v39  ;;  %v14155_v63 = vpack.c.bf16 %v11227_v13, %v11226_v60 }
 0xc83   :  { %v13892_v11 = vpop.f32.mrb[134].mxu0 }
 0xc84   :  { %v11115_v53 = vpop.f32.mrb[135].mxu0  ;;  %v11121_v21 = vadd.f32 %v13892_v11, %v16553_v48  ;;  %v14158_v11 = vpack.c.bf16 %v11229_v45, %v11228_v32 }
 0xc85   :  { %v11116_v24 = vadd.f32 %v16553_v48, %v11115_v53  ;;  %v11238_v53 = vld [vmem:[#allocation10 + $0x160] sm:$0xff] }
 0xc87   :  { %13923 = vmatmul.mubr.msk.f32.vlgmr.msra.gmra.mrb[138].mxu1 %vm307_vm0, %v11116_v24  ;;  %v11234_v24 = vld [vmem:[#allocation10 + $0x140] sm:$0xff] }
 0xc88   :  { %14114 = vmatpush3.bf16.msra.mxu1 %v14113_v59  ;;  %13933 = vmatprep.mubr.msk.f32.mxu1 %vm14898_vm1, %v16812_v39  ;;  %v11239_v59 = vld [vmem:[#allocation10 + $0x168] sm:$0xff] }
 0xc89   :  { %14115 = vmatprep.subr.bf16.mxu1 %v14904_v1  ;;  %v14173_v47 = vpack.c.bf16 %v11239_v59, %v11238_v53 }
 0xc8c   :  { %14117 = vmatpush3.bf16.msra.mxu1 %v14116_v20 }
 0xc8d   :  { %14118 = vmatprep.subr.bf16.mxu1 %v14904_v1 }
 0xc8f   :  { %13934 = vmatmul.mubr.msk.f32.vlgmr.msra.gmra.mrb[140].mxu1 %vm307_vm0, %v11121_v21  ;;  %v11240_v21 = vld [vmem:[#allocation10 + $0x170] sm:$0xff] }
 0xc90   :  { %14120 = vmatpush3.bf16.msra.mxu1 %v14119_v23  ;;  %13944 = vmatprep.mubr.msk.f32.mxu1 %vm14898_vm1, %v16812_v39  ;;  %v14167_v23 = vpack.c.bf16 %v11235_v28, %v11234_v24  ;;  %v14176_v7 = vpack.c.bf16 %v11241_v31, %v11240_v21 }
 0xc91   :  { %14121 = vmatprep.subr.bf16.mxu1 %v14904_v1 }
 0xc93   :  { %v13895_v26 = vpop.f32.mrb[136].mxu0 }
 0xc94   :  { %14123 = vmatpush3.bf16.msra.mxu1 %v14122_v38  ;;  %v11125_v16 = vpop.f32.mrb[137].mxu0  ;;  %v11131_v17 = vadd.f32 %v13895_v26, %v16553_v48  ;;  %v11236_v38 = vld [vmem:[#allocation10 + $0x150] sm:$0xff] }
 0xc95   :  { %v11126_v44 = vadd.f32 %v16553_v48, %v11125_v16  ;;  %14124 = vmatprep.subr.bf16.mxu1 %v14904_v1  ;;  %v14170_v26 = vpack.c.bf16 %v11237_v51, %v11236_v38  ;;  %v11246_v16 = vld [vmem:[#allocation10 + $0x1a0] sm:$0xff]  ;;  %v14614_v38 = vld [vmem:[#allocation11 + $0x10] sm:$0xff] }
 0xc97   :  { %13945 = vmatmul.mubr.msk.f32.vlgmr.msra.gmra.mrb[142].mxu1 %vm307_vm0, %v11126_v44  ;;  %v11242_v44 = vld [vmem:[#allocation10 + $0x180] sm:$0xff] }
 0xc98   :  { %14126 = vmatpush3.bf16.msra.mxu1 %v14125_v37  ;;  %13955 = vmatprep.mubr.msk.f32.mxu1 %vm14898_vm1, %v16812_v39  ;;  %v11247_v37 = vld [vmem:[#allocation10 + $0x1a8] sm:$0xff] }
 0xc99   :  { %14127 = vmatprep.subr.bf16.mxu1 %v14904_v1  ;;  %v14185_v9 = vpack.c.bf16 %v11247_v37, %v11246_v16 }
 0xc9c   :  { %14129 = vmatpush3.bf16.msra.mxu1 %v14128_v29 }
 0xc9d   :  { %14136 = vmatprep.subr.bf16.mxu1 %v14904_v1 }
 0xc9f   :  { %13956 = vmatmul.mubr.msk.f32.vlgmr.msra.gmra.mrb[144].mxu1 %vm307_vm0, %v11131_v17  ;;  %v11248_v17 = vld [vmem:[#allocation10 + $0x1b0] sm:$0xff] }
 0xca0   :  { %14138 = vmatpush3.bf16.msra.mxu1 %v14137_v56  ;;  %13977 = vmatprep.mubr.msk.f32.mxu1 %vm14898_vm1, %v16812_v39  ;;  %v14179_v56 = vpack.c.bf16 %v11243_v58, %v11242_v44  ;;  %v14188_v42 = vpack.c.bf16 %v11249_v62, %v11248_v17 }
 0xca1   :  { %14139 = vmatprep.subr.bf16.mxu1 %v14904_v1 }
 0xca3   :  { %v13898_v61 = vpop.f32.mrb[138].mxu0 }
 0xca4   :  { %v11141_v2 = vadd.f32 %v13898_v61, %v16553_v48  ;;  %14141 = vmatpush3.bf16.msra.mxu1 %v14140_v10  ;;  %v11135_v36 = vpop.f32.mrb[139].mxu0  ;;  %v11244_v10 = vld [vmem:[#allocation10 + $0x190] sm:$0xff]  ;;  %v11255_v61 = vld [vmem:[#allocation10 + $0x1e8] sm:$0xff] }
 0xca5   :  { %v11136_v49 = vadd.f32 %v16553_v48, %v11135_v36  ;;  %14148 = vmatprep.subr.bf16.mxu1 %v14904_v1  ;;  %v14182_v12 = vpack.c.bf16 %v11245_v18, %v11244_v10  ;;  %v11251_v36 = vld [vmem:[#allocation10 + $0x1c8] sm:$0xff] }
 0xca7   :  { %13978 = vmatmul.mubr.msk.f32.vlgmr.msra.gmra.mrb[146].mxu1 %vm307_vm0, %v11141_v2  ;;  %13967 = vmatmul.mubr.msk.f32.vlgmr.msra.gmra.mrb[150].mxu0 %vm307_vm0, %v11136_v49  ;;  %v11250_v2 = vld [vmem:[#allocation10 + $0x1c0] sm:$0xff]  ;;  %v14197_v49 = vpack.c.bf16 %v11255_v61, %v11254_v33 }
 0xca8   :  { %14150 = vmatpush3.bf16.msra.mxu1 %v14149_v54  ;;  %14144 = vmatpush3.bf16.msra.mxu0 %v14143_v8  ;;  %v14191_v14 = vpack.c.bf16 %v11251_v36, %v11250_v2  ;;  %v14616_v2 = vld [vmem:[#allocation11 + $0x28] sm:$0xff] }
 0xca9   :  { %14151 = vmatprep.subr.bf16.mxu1 %v14904_v1  ;;  %14145 = vmatprep.subr.bf16.mxu0 %v14904_v1 }
 0xcaa   :  { %13999 = vmatprep.mubr.msk.f32.mxu1 %vm14898_vm1, %v16812_v39  ;;  %13988 = vmatprep.mubr.msk.f32.mxu0 %vm14898_vm1, %v16812_v39 }
 0xcab   :  { %v13901_v4 = vpop.f32.mrb[140].mxu0 }
 0xcac   :  { %v11151_v55 = vadd.f32 %v13901_v4, %v16553_v48  ;;  %14153 = vmatpush3.bf16.msra.mxu1 %v14152_v30  ;;  %v11145_v0 = vpop.f32.mrb[141].mxu0  ;;  %14147 = vmatpush3.bf16.msra.mxu0 %v14146_v57  ;;  %v11257_v30 = vld [vmem:[#allocation10 + $0x1f8] sm:$0xff]  ;;  %v11252_v57 = vld [vmem:[#allocation10 + $0x1d0] sm:$0xff] }
 0xcad   :  { %v11146_v27 = vadd.f32 %v16553_v48, %v11145_v0  ;;  %14160 = vmatprep.subr.bf16.mxu1 %v14904_v1  ;;  %14154 = vmatprep.subr.bf16.mxu0 %v14904_v1  ;;  %v14200_v35 = vpack.c.bf16 %v11257_v30, %v11256_v40  ;;  %v14194_v60 = vpack.c.bf16 %v11253_v3, %v11252_v57 }
 0xcaf   :  { %14000 = vmatmul.mubr.msk.f32.vlgmr.msra.gmra.mrb[148].mxu1 %vm307_vm0, %v11151_v55  ;;  %13989 = vmatmul.mubr.msk.f32.vlgmr.msra.gmra.mrb[152].mxu0 %vm307_vm0, %v11146_v27 }
 0xcb0   :  { %14162 = vmatpush3.bf16.msra.mxu1 %v14161_v5  ;;  %14156 = vmatpush3.bf16.msra.mxu0 %v14155_v63 }
 0xcb1   :  { %14163 = vmatprep.subr.bf16.mxu1 %v14904_v1  ;;  %14157 = vmatprep.subr.bf16.mxu0 %v14904_v1 }
 0xcb2   :  { %14021 = vmatprep.mubr.msk.f32.mxu1 %vm14898_vm1, %v16812_v39  ;;  %14010 = vmatprep.mubr.msk.f32.mxu0 %vm14898_vm1, %v16812_v39 }
 0xcb3   :  { %v13904_v50 = vpop.f32.mrb[142].mxu0 }
 0xcb4   :  { %v11161_v20 = vadd.f32 %v13904_v50, %v16553_v48  ;;  %14165 = vmatpush3.bf16.msra.mxu1 %v14164_v41  ;;  %v11155_v43 = vpop.f32.mrb[143].mxu0  ;;  %14159 = vmatpush3.bf16.msra.mxu0 %v14158_v11  ;;  %v14612_v41 = vld [vmem:[#allocation11] sm:$0xff]  ;;  %v14613_v50 = vld [vmem:[#allocation11 + $0x8] sm:$0xff] }
 0xcb5   :  { %v11156_v46 = vadd.f32 %v16553_v48, %v11155_v43  ;;  %14172 = vmatprep.subr.bf16.mxu1 %v14904_v1  ;;  %14166 = vmatprep.subr.bf16.mxu0 %v14904_v1 }
 0xcb7   :  { %14022 = vmatmul.mubr.msk.f32.vlgmr.msra.gmra.mrb[150].mxu1 %vm307_vm0, %v11161_v20  ;;  %14011 = vmatmul.mubr.msk.f32.vlgmr.msra.gmra.mrb[154].mxu0 %vm307_vm0, %v11156_v46 }
 0xcb8   :  { %14174 = vmatpush3.bf16.msra.mxu1 %v14173_v47  ;;  %14168 = vmatpush3.bf16.msra.mxu0 %v14167_v23 }
 0xcb9   :  { %14175 = vmatprep.subr.bf16.mxu1 %v14904_v1  ;;  %14169 = vmatprep.subr.bf16.mxu0 %v14904_v1 }
 0xcba   :  { %14043 = vmatprep.mubr.msk.f32.mxu1 %vm14898_vm1, %v16812_v39  ;;  %14032 = vmatprep.mubr.msk.f32.mxu0 %vm14898_vm1, %v16812_v39 }
 0xcbb   :  { %v13907_v22 = vpop.f32.mrb[144].mxu0 }
 0xcbc   :  { %v11171_v29 = vadd.f32 %v13907_v22, %v16553_v48  ;;  %14177 = vmatpush3.bf16.msra.mxu1 %v14176_v7  ;;  %v11165_v34 = vpop.f32.mrb[145].mxu0  ;;  %14171 = vmatpush3.bf16.msra.mxu0 %v14170_v26 }
 0xcbd   :  { %v11166_v19 = vadd.f32 %v16553_v48, %v11165_v34  ;;  %14184 = vmatprep.subr.bf16.mxu1 %v14904_v1  ;;  %14178 = vmatprep.subr.bf16.mxu0 %v14904_v1  ;;  %v14615_v34 = vld [vmem:[#allocation11 + $0x18] sm:$0xff] }
 0xcbf   :  { %14044 = vmatmul.mubr.msk.f32.vlgmr.msra.gmra.mrb[152].mxu1 %vm307_vm0, %v11171_v29  ;;  %14033 = vmatmul.mubr.msk.f32.vlgmr.msra.gmra.mrb[156].mxu0 %vm307_vm0, %v11166_v19 }
 0xcc0   :  { %14186 = vmatpush3.bf16.msra.mxu1 %v14185_v9  ;;  %14180 = vmatpush3.bf16.msra.mxu0 %v14179_v56 }
 0xcc1   :  { %14187 = vmatprep.subr.bf16.mxu1 %v14904_v1  ;;  %14181 = vmatprep.subr.bf16.mxu0 %v14904_v1 }
 0xcc2   :  { %14065 = vmatprep.mubr.msk.f32.mxu1 %vm14898_vm1, %v16812_v39  ;;  %14054 = vmatprep.mubr.msk.f32.mxu0 %vm14898_vm1, %v16812_v39 }
 0xcc3   :  { %v13910_v54 = vpop.f32.mrb[146].mxu0 }
 0xcc4   :  { %v11181_v8 = vadd.f32 %v13910_v54, %v16553_v48  ;;  %14189 = vmatpush3.bf16.msra.mxu1 %v14188_v42  ;;  %v11175_v52 = vpop.f32.mrb[147].mxu0  ;;  %14183 = vmatpush3.bf16.msra.mxu0 %v14182_v12 }
 0xcc5   :  { %v11176_v25 = vadd.f32 %v16553_v48, %v11175_v52  ;;  %14196 = vmatprep.subr.bf16.mxu1 %v14904_v1  ;;  %14190 = vmatprep.subr.bf16.mxu0 %v14904_v1 }
 0xcc7   :  { %14066 = vmatmul.mubr.msk.f32.vlgmr.msra.gmra.mrb[154].mxu1 %vm307_vm0, %v11181_v8  ;;  %14055 = vmatmul.mubr.msk.f32.vlgmr.msra.gmra.mrb[158].mxu0 %vm307_vm0, %v11176_v25 }
 0xcc8   :  { %14198 = vmatpush3.bf16.msra.mxu1 %v14197_v49  ;;  %14192 = vmatpush3.bf16.msra.mxu0 %v14191_v14  ;;  %v14617_v14 = vld [vmem:[#allocation11 + $0x20] sm:$0xff] }
 0xcc9   :  { %14199 = vmatprep.subr.bf16.mxu1 %v14904_v1  ;;  %14193 = vmatprep.subr.bf16.mxu0 %v14904_v1 }
 0xcca   :  { %14087 = vmatprep.mubr.msk.f32.mxu1 %vm14898_vm1, %v16812_v39  ;;  %14076 = vmatprep.mubr.msk.f32.mxu0 %vm14898_vm1, %v16812_v39 }
 0xccb   :  { %v13913_v13 = vpop.f32.mrb[148].mxu0 }
 0xccc   :  { %v11191_v4 = vadd.f32 %v13913_v13, %v16553_v48  ;;  %14201 = vmatpush3.bf16.msra.mxu1 %v14200_v35  ;;  %v11185_v55 = vpop.f32.mrb[149].mxu0  ;;  %14195 = vmatpush3.bf16.msra.mxu0 %v14194_v60  ;;  %v14618_v13 = vld [vmem:[#allocation11 + $0x38] sm:$0xff] }
 0xccd   :  { %v11186_v0 = vadd.f32 %v16553_v48, %v11185_v55 }
 0xccf   :  { %14088 = vmatmul.mubr.msk.f32.vlgmr.msra.gmra.mrb[156].mxu1 %vm307_vm0, %v11191_v4  ;;  %14077 = vmatmul.mubr.msk.f32.vlgmr.msra.gmra.mrb[160].mxu0 %vm307_vm0, %v11186_v0 }
 0xd5a   :  { %v11327_v5 = vpop.f32.mrb[138].mxu1 }
 0xd5b   :  { %v12426_v1 = vmul.f32 0.17677669, %v11327_v5  ;;  %v13924_v63 = vpop.f32.mrb[139].mxu1 }
 0xd5c   :  { %v14619_v63 = vld [vmem:[#allocation11 + $0x30] sm:$0xff] }
 0xd5d   :  { %14482 = vtanh.f32 %v12426_v1 }
 0xd62   :  { %v11400_v15 = vpop.f32.mrb[140].mxu1 }
 0xd63   :  { %v12427_v27 = vmul.f32 0.17677669, %v11400_v15  ;;  %v13935_v6 = vpop.f32.mrb[141].mxu1 }
 0xd65   :  { %14484 = vtanh.f32 %v12427_v27 }
 0xd67   :  { %v14483_v39 = vpop.eup %14482 }
 0xd68   :  { %v12458_v32 = vmul.f32 10.0, %v14483_v39 }
 0xd6a   :  { %v11473_v45 = vpop.f32.mrb[142].mxu1  ;;  %v16641_v11 = vadd.f32 %v14612_v41, %v12458_v32 }
 0xd6b   :  { %v12428_v53 = vmul.f32 0.17677669, %v11473_v45  ;;  %v13946_v48 = vpop.f32.mrb[143].mxu1 }
 0xd6c   :  { %12490 = vmax.xlane.f32.xlu0 %v16641_v11 }
 0xd6d   :  { %14486 = vtanh.f32 %v12428_v53  ;;  %v14620_v53 = vld [vmem:[#allocation11 + $0x48] sm:$0xff] }
 0xd6f   :  { %v14485_v59 = vpop.eup %14484 }
 0xd70   :  { %v12459_v24 = vmul.f32 10.0, %v14485_v59 }
 0xd72   :  { %v11546_v28 = vpop.f32.mrb[144].mxu1  ;;  %v16644_v20 = vadd.f32 %v14613_v50, %v12459_v24 }
 0xd73   :  { %v12429_v43 = vmul.f32 0.17677669, %v11546_v28  ;;  %v13957_v47 = vpop.f32.mrb[145].mxu1 }
 0xd74   :  { %12492 = vmax.xlane.f32.xlu1 %v16644_v20 }
 0xd75   :  { %14488 = vtanh.f32 %v12429_v43  ;;  %v14621_v43 = vld [vmem:[#allocation11 + $0x40] sm:$0xff] }
 0xd77   :  { %v14487_v23 = vpop.eup %14486 }
 0xd78   :  { %v12460_v21 = vmul.f32 10.0, %v14487_v23 }
 0xd7a   :  { %v11692_v46 = vpop.f32.mrb[146].mxu1  ;;  %v11619_v31 = vpop.f32.mrb[150].mxu0  ;;  %v16647_v51 = vadd.f32 %v14614_v38, %v12460_v21 }
 0xd7b   :  { %v12431_v7 = vmul.f32 0.17677669, %v11692_v46  ;;  %v12430_v26 = vmul.f32 0.17677669, %v11619_v31  ;;  %v13979_v16 = vpop.f32.mrb[147].mxu1  ;;  %v13968_v37 = vpop.f32.mrb[151].mxu0 }
 0xd7c   :  { %12494 = vmax.xlane.f32.xlu0 %v16647_v51 }
 0xd7d   :  { %14490 = vtanh.f32 %v12431_v7 }
 0xd7e   :  { %14492 = vtanh.f32 %v12430_v26  ;;  %v14622_v26 = vld [vmem:[#allocation11 + $0x58] sm:$0xff] }
 0xd7f   :  { %v14489_v44 = vpop.eup %14488 }
 0xd80   :  { %v12461_v58 = vmul.f32 10.0, %v14489_v44 }
 0xd82   :  { %v11838_v22 = vpop.f32.mrb[148].mxu1  ;;  %v11765_v29 = vpop.f32.mrb[152].mxu0  ;;  %v16650_v9 = vadd.f32 %v14615_v34, %v12461_v58 }
 0xd83   :  { %v12433_v56 = vmul.f32 0.17677669, %v11838_v22  ;;  %v12432_v17 = vmul.f32 0.17677669, %v11765_v29  ;;  %v14001_v19 = vpop.f32.mrb[149].mxu1  ;;  %v13990_v62 = vpop.f32.mrb[153].mxu0 }
 0xd84   :  { %12496 = vmax.xlane.f32.xlu0 %v16650_v9  ;;  %v14623_v29 = vld [vmem:[#allocation11 + $0x50] sm:$0xff] }
 0xd85   :  { %14494 = vtanh.f32 %v12433_v56 }
 0xd86   :  { %14496 = vtanh.f32 %v12432_v17 }
 0xd87   :  { %v14491_v10 = vpop.eup %14490 }
 0xd88   :  { %v14493_v18 = vpop.eup %14492  ;;  %v12463_v42 = vmul.f32 10.0, %v14491_v10  ;;  %v14624_v10 = vld [vmem:[#allocation11 + $0x68] sm:$0xff] }
 0xd89   :  { %v12462_v12 = vmul.f32 10.0, %v14493_v18 }
 0xd8a   :  { %v11984_v33 = vpop.f32.mrb[150].mxu1  ;;  %v11911_v61 = vpop.f32.mrb[154].mxu0  ;;  %v16653_v36 = vadd.f32 %v14616_v2, %v12463_v42  ;;  %v14625_v42 = vld [vmem:[#allocation11 + $0x60] sm:$0xff] }
 0xd8b   :  { %v12435_v54 = vmul.f32 0.17677669, %v11984_v33  ;;  %v12434_v8 = vmul.f32 0.17677669, %v11911_v61  ;;  %v14023_v52 = vpop.f32.mrb[151].mxu1  ;;  %v14012_v49 = vpop.f32.mrb[155].mxu0  ;;  %v16655_v40 = vadd.f32 %v14617_v14, %v12462_v12 }
 0xd8c   :  { %12500 = vmax.xlane.f32.xlu0 %v16653_v36  ;;  %v14627_v49 = vld [vmem:[#allocation11 + $0x70] sm:$0xff] }
 0xd8d   :  { %14498 = vtanh.f32 %v12435_v54  ;;  %12498 = vmax.xlane.f32.xlu1 %v16655_v40 }
 0xd8e   :  { %14500 = vtanh.f32 %v12434_v8  ;;  %v14626_v8 = vld [vmem:[#allocation11 + $0x78] sm:$0xff] }
 0xd8f   :  { %v14495_v25 = vpop.eup %14494 }
 0xd90   :  { %v14497_v30 = vpop.eup %14496  ;;  %v12465_v57 = vmul.f32 10.0, %v14495_v25 }
 0xd91   :  { %v12464_v3 = vmul.f32 10.0, %v14497_v30 }
 0xd92   :  { %v12130_v35 = vpop.f32.mrb[152].mxu1  ;;  %v12057_v60 = vpop.f32.mrb[156].mxu0  ;;  %v16659_v4 = vadd.f32 %v14618_v13, %v12465_v57 }
 0xd93   :  { %v12437_v55 = vmul.f32 0.17677669, %v12130_v35  ;;  %v12436_v0 = vmul.f32 0.17677669, %v12057_v60  ;;  %v14045_v5 = vpop.f32.mrb[153].mxu1  ;;  %v14034_v1 = vpop.f32.mrb[157].mxu0  ;;  %v16661_v15 = vadd.f32 %v14619_v63, %v12464_v3 }
 0xd94   :  { %12504 = vmax.xlane.f32.xlu0 %v16659_v4 }
 0xd95   :  { %14502 = vtanh.f32 %v12437_v55  ;;  %12502 = vmax.xlane.f32.xlu1 %v16661_v15 }
 0xd96   :  { %14504 = vtanh.f32 %v12436_v0 }
 0xd97   :  { %v14499_v27 = vpop.eup %14498 }
 0xd98   :  { %v14501_v6 = vpop.eup %14500  ;;  %v12467_v39 = vmul.f32 10.0, %v14499_v27 }
 0xd99   :  { %v12466_v32 = vmul.f32 10.0, %v14501_v6 }
 0xd9a   :  { %v12276_v45 = vpop.f32.mrb[154].mxu1  ;;  %v12203_v41 = vpop.f32.mrb[158].mxu0  ;;  %v16665_v48 = vadd.f32 %v14620_v53, %v12467_v39 }
 0xd9b   :  { %v12439_v59 = vmul.f32 0.17677669, %v12276_v45  ;;  %v12438_v24 = vmul.f32 0.17677669, %v12203_v41  ;;  %v14067_v28 = vpop.f32.mrb[155].mxu1  ;;  %v14056_v50 = vpop.f32.mrb[159].mxu0  ;;  %v16667_v47 = vadd.f32 %v14621_v43, %v12466_v32 }
 0xd9c   :  { %12508 = vmax.xlane.f32.xlu0 %v16665_v48 }
 0xd9d   :  { %14506 = vtanh.f32 %v12439_v59  ;;  %12506 = vmax.xlane.f32.xlu1 %v16667_v47 }
 0xd9e   :  { %14508 = vtanh.f32 %v12438_v24 }
 0xd9f   :  { %v14503_v23 = vpop.eup %14502 }
 0xda0   :  { %v14505_v21 = vpop.eup %14504  ;;  %v12469_v46 = vmul.f32 10.0, %v14503_v23 }
 0xda1   :  { %v12468_v31 = vmul.f32 10.0, %v14505_v21 }
 0xda2   :  { %v12422_v38 = vpop.f32.mrb[156].mxu1  ;;  %v12349_v7 = vpop.f32.mrb[160].mxu0  ;;  %v16671_v16 = vadd.f32 %v14622_v26, %v12469_v46 }
 0xda3   :  { %v12441_v37 = vmul.f32 0.17677669, %v12422_v38  ;;  %v12440_v44 = vmul.f32 0.17677669, %v12349_v7  ;;  %v14089_v58 = vpop.f32.mrb[157].mxu1  ;;  %v14078_v22 = vpop.f32.mrb[161].mxu0  ;;  %v16673_v34 = vadd.f32 %v14623_v29, %v12468_v31 }
 0xda4   :  { %12512 = vmax.xlane.f32.xlu0 %v16671_v16 }
 0xda5   :  { %14510 = vtanh.f32 %v12441_v37  ;;  %12510 = vmax.xlane.f32.xlu1 %v16673_v34 }
 0xda6   :  { %14512 = vtanh.f32 %v12440_v44 }
 0xda7   :  { %v14507_v56 = vpop.eup %14506 }
 0xda8   :  { %v14509_v17 = vpop.eup %14508  ;;  %v12471_v19 = vmul.f32 10.0, %v14507_v56 }
 0xda9   :  { %v12470_v62 = vmul.f32 10.0, %v14509_v17 }
 0xdaa   :  { %v16677_v18 = vadd.f32 %v14624_v10, %v12471_v19 }
 0xdab   :  { %v16679_v12 = vadd.f32 %v14625_v42, %v12470_v62 }
 0xdac   :  { %12516 = vmax.xlane.f32.xlu0 %v16677_v18 }
 0xdad   :  { %12514 = vmax.xlane.f32.xlu1 %v16679_v12 }
 0xdaf   :  { %v14511_v33 = vpop.eup %14510 }
 0xdb0   :  { %v14513_v61 = vpop.eup %14512  ;;  %v12473_v2 = vmul.f32 10.0, %v14511_v33 }
 0xdb1   :  { %v12472_v54 = vmul.f32 10.0, %v14513_v61 }
 0xdb2   :  { %v16683_v52 = vadd.f32 %v14626_v8, %v12473_v2 }
 0xdb3   :  { %v16685_v14 = vadd.f32 %v14627_v49, %v12472_v54 }
 0xdb4   :  { %12520 = vmax.xlane.f32.xlu0 %v16683_v52 }
 0xdb5   :  { %12518 = vmax.xlane.f32.xlu1 %v16685_v14 }
 0xdf9   :  { %v12491_v25 = vpop.xlane.xlu0 %12490 }
 0xdfa   :  { %vm12522_vm0 = vcmp.eq.f32.partialorder %v12491_v25, -inf }
 0xdfb   :  { %v12538_v30 = vsel %vm12522_vm0, 0.0, %v12491_v25 }
 0xdfc   :  { %v12554_v57 = vsub.f32 %v16641_v11, %v12538_v30 }
 0xdfe   :  { %v12570_v3 = vmul.f32 1.442695, %v12554_v57 }
 0xe00   :  { %14514 = vpow2.f32 %v12570_v3 }
 0xe01   :  { %v12493_v35 = vpop.xlane.xlu1 %12492 }
 0xe02   :  { %vm12523_vm1 = vcmp.eq.f32.partialorder %v12493_v35, -inf }
 0xe03   :  { %v12539_v60 = vsel %vm12523_vm1, 0.0, %v12493_v35 }
 0xe04   :  { %v12555_v13 = vsub.f32 %v16644_v20, %v12539_v60 }
 0xe06   :  { %v12572_v55 = vmul.f32 1.442695, %v12555_v13 }
 0xe08   :  { %14516 = vpow2.f32 %v12572_v55 }
 0xe09   :  { %v12495_v5 = vpop.xlane.xlu0 %12494 }
 0xe0a   :  { %v16691_v0 = vpop.eup %14514  ;;  %vm12524_vm4 = vcmp.eq.f32.partialorder %v12495_v5, -inf }
 0xe0b   :  { %12602 = vadd.xlane.f32.xlu1 %v16691_v0  ;;  %v12540_v39 = vsel %vm12524_vm4, 0.0, %v12495_v5 }
 0xe0c   :  { %v12556_v59 = vsub.f32 %v16647_v51, %v12540_v39 }
 0xe11   :  { %v12497_v1 = vpop.xlane.xlu0 %12496 }
 0xe12   :  { %v16694_v63 = vpop.eup %14516  ;;  %vm12525_vm2 = vcmp.eq.f32.partialorder %v12497_v1, -inf }
 0xe13   :  { %v12541_v27 = vsel %vm12525_vm2, 0.0, %v12497_v1  ;;  %12604 = vadd.xlane.f32.xlu0 %v16694_v63 }
 0xe14   :  { %v12557_v11 = vsub.f32 %v16650_v9, %v12541_v27  ;;  %v12574_v9 = vmul.f32 1.442695, %v12556_v59 }
 0xe16   :  { %v12576_v6 = vmul.f32 1.442695, %v12557_v11 }
 0xe18   :  { %14518 = vpow2.f32 %v12576_v6 }
 0xe19   :  { %v12501_v20 = vpop.xlane.xlu0 %12500 }
 0xe1a   :  { %vm12527_vm5 = vcmp.eq.f32.partialorder %v12501_v20, -inf  ;;  %v12499_v32 = vpop.xlane.xlu1 %12498 }
 0xe1b   :  { %v12543_v45 = vsel %vm12527_vm5, 0.0, %v12501_v20  ;;  %vm12526_vm6 = vcmp.eq.f32.partialorder %v12499_v32, -inf }
 0xe1c   :  { %v12559_v41 = vsub.f32 %v16653_v36, %v12543_v45  ;;  %v12542_v53 = vsel %vm12526_vm6, 0.0, %v12499_v32 }
 0xe1d   :  { %v12558_v24 = vsub.f32 %v16655_v40, %v12542_v53 }
 0xe1e   :  { %v12580_v28 = vmul.f32 1.442695, %v12559_v41 }
 0xe1f   :  { %v12578_v50 = vmul.f32 1.442695, %v12558_v24 }
 0xe20   :  { %14520 = vpow2.f32 %v12580_v28 }
 0xe21   :  { %14522 = vpow2.f32 %v12578_v50  ;;  %v12505_v43 = vpop.xlane.xlu0 %12504 }
 0xe22   :  { %v16701_v23 = vpop.eup %14518  ;;  %vm12529_vm7 = vcmp.eq.f32.partialorder %v12505_v43, -inf  ;;  %v12503_v21 = vpop.xlane.xlu1 %12502  ;;  %14524 = vpow2.f32 %v12574_v9 }
 0xe23   :  { %v12545_v46 = vsel %vm12529_vm7, 0.0, %v12505_v43  ;;  %vm12528_vm8 = vcmp.eq.f32.partialorder %v12503_v21, -inf  ;;  %12608 = vadd.xlane.f32.xlu0 %v16701_v23 }
 0xe24   :  { %v12561_v36 = vsub.f32 %v16659_v4, %v12545_v46  ;;  %v12544_v31 = vsel %vm12528_vm8, 0.0, %v12503_v21 }
 0xe25   :  { %v12560_v51 = vsub.f32 %v16661_v15, %v12544_v31 }
 0xe26   :  { %v12584_v40 = vmul.f32 1.442695, %v12561_v36 }
 0xe27   :  { %v12582_v38 = vmul.f32 1.442695, %v12560_v51 }
 0xe28   :  { %14526 = vpow2.f32 %v12584_v40 }
 0xe29   :  { %14528 = vpow2.f32 %v12582_v38  ;;  %v12509_v7 = vpop.xlane.xlu0 %12508 }
 0xe2a   :  { %v16706_v26 = vpop.eup %14520  ;;  %vm12531_vm9 = vcmp.eq.f32.partialorder %v12509_v7, -inf  ;;  %v12507_v37 = vpop.xlane.xlu1 %12506 }
 0xe2b   :  { %v16708_v44 = vpop.eup %14522  ;;  %v12547_v58 = vsel %vm12531_vm9, 0.0, %v12509_v7  ;;  %vm12530_vm10 = vcmp.eq.f32.partialorder %v12507_v37, -inf  ;;  %12612 = vadd.xlane.f32.xlu0 %v16706_v26 }
 0xe2c   :  { %v12563_v4 = vsub.f32 %v16665_v48, %v12547_v58  ;;  %v12546_v22 = vsel %vm12530_vm10, 0.0, %v12507_v37  ;;  %12610 = vadd.xlane.f32.xlu1 %v16708_v44  ;;  %v16714_v56 = vpop.eup %14524 }
 0xe2d   :  { %v12562_v15 = vsub.f32 %v16667_v47, %v12546_v22 }
 0xe2e   :  { %v12588_v29 = vmul.f32 1.442695, %v12563_v4 }
 0xe2f   :  { %v12586_v17 = vmul.f32 1.442695, %v12562_v15 }
 0xe30   :  { %14530 = vpow2.f32 %v12588_v29  ;;  %12606 = vadd.xlane.f32.xlu1 %v16714_v56 }
 0xe31   :  { %14532 = vpow2.f32 %v12586_v17  ;;  %v12513_v19 = vpop.xlane.xlu0 %12512 }
 0xe32   :  { %v16717_v62 = vpop.eup %14526  ;;  %vm12533_vm11 = vcmp.eq.f32.partialorder %v12513_v19, -inf  ;;  %v12511_v10 = vpop.xlane.xlu1 %12510 }
 0xe33   :  { %v16719_v42 = vpop.eup %14528  ;;  %v12549_v48 = vsel %vm12533_vm11, 0.0, %v12513_v19  ;;  %vm12532_vm12 = vcmp.eq.f32.partialorder %v12511_v10, -inf  ;;  %12616 = vadd.xlane.f32.xlu0 %v16717_v62 }
 0xe34   :  { %v12565_v47 = vsub.f32 %v16671_v16, %v12549_v48  ;;  %v12548_v33 = vsel %vm12532_vm12, 0.0, %v12511_v10  ;;  %12614 = vadd.xlane.f32.xlu1 %v16719_v42 }
 0xe35   :  { %v12564_v61 = vsub.f32 %v16673_v34, %v12548_v33 }
 0xe36   :  { %v12592_v2 = vmul.f32 1.442695, %v12565_v47 }
 0xe37   :  { %v12590_v54 = vmul.f32 1.442695, %v12564_v61 }
 0xe38   :  { %14534 = vpow2.f32 %v12592_v2 }
 0xe39   :  { %14536 = vpow2.f32 %v12590_v54  ;;  %v12517_v8 = vpop.xlane.xlu0 %12516 }
 0xe3a   :  { %v16725_v49 = vpop.eup %14530  ;;  %vm12535_vm13 = vcmp.eq.f32.partialorder %v12517_v8, -inf  ;;  %v12515_v25 = vpop.xlane.xlu1 %12514 }
 0xe3b   :  { %v16727_v30 = vpop.eup %14532  ;;  %v12551_v57 = vsel %vm12535_vm13, 0.0, %v12517_v8  ;;  %vm12534_vm14 = vcmp.eq.f32.partialorder %v12515_v25, -inf  ;;  %12620 = vadd.xlane.f32.xlu0 %v16725_v49 }
 0xe3c   :  { %v12567_v16 = vsub.f32 %v16677_v18, %v12551_v57  ;;  %v12550_v3 = vsel %vm12534_vm14, 0.0, %v12515_v25  ;;  %12618 = vadd.xlane.f32.xlu1 %v16727_v30 }
 0xe3d   :  { %v12566_v34 = vsub.f32 %v16679_v12, %v12550_v3 }
 0xe3e   :  { %v12596_v35 = vmul.f32 1.442695, %v12567_v16 }
 0xe3f   :  { %v12594_v60 = vmul.f32 1.442695, %v12566_v34 }
 0xe40   :  { %14538 = vpow2.f32 %v12596_v35 }
 0xe41   :  { %14540 = vpow2.f32 %v12594_v60  ;;  %v12521_v13 = vpop.xlane.xlu0 %12520 }
 0xe42   :  { %v16733_v55 = vpop.eup %14534  ;;  %vm12537_vm15 = vcmp.eq.f32.partialorder %v12521_v13, -inf  ;;  %v12519_v5 = vpop.xlane.xlu1 %12518 }
 0xe43   :  { %v16735_v1 = vpop.eup %14536  ;;  %v12553_v27 = vsel %vm12537_vm15, 0.0, %v12521_v13  ;;  %vm12536_vm3 = vcmp.eq.f32.partialorder %v12519_v5, -inf  ;;  %12624 = vadd.xlane.f32.xlu0 %v16733_v55 }
 0xe44   :  { %v12569_v18 = vsub.f32 %v16683_v52, %v12553_v27  ;;  %v12552_v11 = vsel %vm12536_vm3, 0.0, %v12519_v5  ;;  %12622 = vadd.xlane.f32.xlu1 %v16735_v1 }
 0xe45   :  { %v12568_v12 = vsub.f32 %v16685_v14, %v12552_v11 }
 0xe46   :  { %v12600_v6 = vmul.f32 1.442695, %v12569_v18 }
 0xe47   :  { %v12598_v20 = vmul.f32 1.442695, %v12568_v12 }
 0xe48   :  { %14542 = vpow2.f32 %v12600_v6 }
 0xe49   :  { %14544 = vpow2.f32 %v12598_v20 }
 0xe4a   :  { %v16741_v39 = vpop.eup %14538 }
 0xe4b   :  { %v16743_v32 = vpop.eup %14540  ;;  %12628 = vadd.xlane.f32.xlu0 %v16741_v39 }
 0xe4c   :  { %12626 = vadd.xlane.f32.xlu1 %v16743_v32 }
 0xe52   :  { %v16747_v45 = vpop.eup %14542 }
 0xe53   :  { %v16749_v52 = vpop.eup %14544  ;;  %12632 = vadd.xlane.f32.xlu0 %v16747_v45 }
 0xe54   :  { %12630 = vadd.xlane.f32.xlu1 %v16749_v52 }
 0xe98   :  { %v12603_v14 = vpop.xlane.xlu1 %12602 }
 0xe99   :  { %v12634_v41 = vmax.f32 %v12603_v14, 1e-30 }
 0xe9b   :  { %14546 = vrcp.f32 %v12634_v41 }
 0xea0   :  { %v12605_v53 = vpop.xlane.xlu0 %12604 }
 0xea1   :  { %v12635_v59 = vmax.f32 %v12605_v53, 1e-30 }
 0xea3   :  { %14548 = vrcp.f32 %v12635_v59 }
 0xea5   :  { %v14547_v24 = vpop.eup %14546 }
 0xea6   :  { %v12651_v28 = vmul.f32 %v14547_v24, %v16691_v0 }
 0xea8   :  { %12682 = vst [vmem:[#allocation19] sm:$0xff] %v12651_v28 }
 0xead   :  { %v14549_v50 = vpop.eup %14548 }
 0xeae   :  { %v12653_v9 = vmul.f32 %v14549_v50, %v16694_v63 }
 0xeb0   :  { %12683 = vst [vmem:[#allocation19 + $0x8] sm:$0xff] %v12653_v9  ;;  %v12609_v43 = vpop.xlane.xlu0 %12608 }
 0xeb1   :  { %v12637_v21 = vmax.f32 %v12609_v43, 1e-30 }
 0xeb3   :  { %14550 = vrcp.f32 %v12637_v21 }
 0xeb8   :  { %v12613_v46 = vpop.xlane.xlu0 %12612 }
 0xeb9   :  { %v12639_v36 = vmax.f32 %v12613_v46, 1e-30  ;;  %v12611_v31 = vpop.xlane.xlu1 %12610 }
 0xeba   :  { %v12638_v51 = vmax.f32 %v12611_v31, 1e-30 }
 0xebb   :  { %14552 = vrcp.f32 %v12639_v36 }
 0xebc   :  { %14554 = vrcp.f32 %v12638_v51 }
 0xebd   :  { %v14551_v40 = vpop.eup %14550  ;;  %v12607_v38 = vpop.xlane.xlu1 %12606 }
 0xebe   :  { %v12657_v7 = vmul.f32 %v14551_v40, %v16701_v23  ;;  %v12636_v37 = vmax.f32 %v12607_v38, 1e-30 }
 0xec0   :  { %12685 = vst [vmem:[#allocation19 + $0x18] sm:$0xff] %v12657_v7  ;;  %14556 = vrcp.f32 %v12636_v37  ;;  %v12617_v0 = vpop.xlane.xlu0 %12616 }
 0xec1   :  { %v12641_v58 = vmax.f32 %v12617_v0, 1e-30  ;;  %v12615_v63 = vpop.xlane.xlu1 %12614 }
 0xec2   :  { %v12640_v4 = vmax.f32 %v12615_v63, 1e-30 }
 0xec3   :  { %14558 = vrcp.f32 %v12641_v58 }
 0xec4   :  { %14560 = vrcp.f32 %v12640_v4 }
 0xec5   :  { %v14553_v22 = vpop.eup %14552 }
 0xec6   :  { %v14555_v15 = vpop.eup %14554  ;;  %v12661_v29 = vmul.f32 %v14553_v22, %v16706_v26 }
 0xec7   :  { %v12659_v17 = vmul.f32 %v14555_v15, %v16708_v44 }
 0xec8   :  { %12687 = vst [vmem:[#allocation19 + $0x28] sm:$0xff] %v12661_v29  ;;  %v12621_v19 = vpop.xlane.xlu0 %12620 }
 0xec9   :  { %12686 = vst [vmem:[#allocation19 + $0x20] sm:$0xff] %v12659_v17  ;;  %v12643_v10 = vmax.f32 %v12621_v19, 1e-30  ;;  %v12619_v23 = vpop.xlane.xlu1 %12618 }
 0xeca   :  { %v14557_v48 = vpop.eup %14556  ;;  %v12642_v47 = vmax.f32 %v12619_v23, 1e-30 }
 0xecb   :  { %v12655_v33 = vmul.f32 %v14557_v48, %v16714_v56  ;;  %14562 = vrcp.f32 %v12643_v10 }
 0xecc   :  { %14564 = vrcp.f32 %v12642_v47 }
 0xecd   :  { %v14559_v61 = vpop.eup %14558  ;;  %12684 = vst [vmem:[#allocation19 + $0x10] sm:$0xff] %v12655_v33 }
 0xece   :  { %v14561_v2 = vpop.eup %14560  ;;  %v12665_v54 = vmul.f32 %v14559_v61, %v16717_v62 }
 0xecf   :  { %v12663_v26 = vmul.f32 %v14561_v2, %v16719_v42 }
 0xed0   :  { %12689 = vst [vmem:[#allocation19 + $0x38] sm:$0xff] %v12665_v54  ;;  %v12625_v44 = vpop.xlane.xlu0 %12624 }
 0xed1   :  { %12688 = vst [vmem:[#allocation19 + $0x30] sm:$0xff] %v12663_v26  ;;  %v12645_v8 = vmax.f32 %v12625_v44, 1e-30  ;;  %v12623_v25 = vpop.xlane.xlu1 %12622 }
 0xed2   :  { %v12644_v57 = vmax.f32 %v12623_v25, 1e-30 }
 0xed3   :  { %14566 = vrcp.f32 %v12645_v8 }
 0xed4   :  { %14568 = vrcp.f32 %v12644_v57 }
 0xed5   :  { %v14563_v16 = vpop.eup %14562 }
 0xed6   :  { %v14565_v3 = vpop.eup %14564  ;;  %v12669_v56 = vmul.f32 %v14563_v16, %v16725_v49 }
 0xed7   :  { %v12667_v34 = vmul.f32 %v14565_v3, %v16727_v30 }
 0xed8   :  { %12691 = vst [vmem:[#allocation19 + $0x48] sm:$0xff] %v12669_v56  ;;  %v12629_v35 = vpop.xlane.xlu0 %12628 }
 0xed9   :  { %12690 = vst [vmem:[#allocation19 + $0x40] sm:$0xff] %v12667_v34  ;;  %v12647_v62 = vmax.f32 %v12629_v35, 1e-30  ;;  %v12627_v60 = vpop.xlane.xlu1 %12626 }
 0xeda   :  { %v12646_v42 = vmax.f32 %v12627_v60, 1e-30 }
 0xedb   :  { %14570 = vrcp.f32 %v12647_v62 }
 0xedc   :  { %14572 = vrcp.f32 %v12646_v42 }
 0xedd   :  { %v14567_v13 = vpop.eup %14566 }
 0xede   :  { %v14569_v5 = vpop.eup %14568  ;;  %v12673_v27 = vmul.f32 %v14567_v13, %v16733_v55 }
 0xedf   :  { %v12671_v18 = vmul.f32 %v14569_v5, %v16735_v1 }
 0xee0   :  { %12693 = vst [vmem:[#allocation19 + $0x58] sm:$0xff] %v12673_v27  ;;  %v12633_v11 = vpop.xlane.xlu0 %12632 }
 0xee1   :  { %12692 = vst [vmem:[#allocation19 + $0x50] sm:$0xff] %v12671_v18  ;;  %v12649_v49 = vmax.f32 %v12633_v11, 1e-30  ;;  %v12631_v12 = vpop.xlane.xlu1 %12630 }
 0xee2   :  { %v12648_v30 = vmax.f32 %v12631_v12, 1e-30 }
 0xee3   :  { %14574 = vrcp.f32 %v12649_v49 }
 0xee4   :  { %14576 = vrcp.f32 %v12648_v30 }
 0xee5   :  { %v14571_v6 = vpop.eup %14570 }
 0xee6   :  { %v14573_v20 = vpop.eup %14572  ;;  %v12677_v14 = vmul.f32 %v14571_v6, %v16741_v39 }
 0xee7   :  { %v12675_v41 = vmul.f32 %v14573_v20, %v16743_v32 }
 0xee8   :  { %12695 = vst [vmem:[#allocation19 + $0x68] sm:$0xff] %v12677_v14 }
 0xee9   :  { %12694 = vst [vmem:[#allocation19 + $0x60] sm:$0xff] %v12675_v41 }
 0xeed   :  { %v14575_v55 = vpop.eup %14574 }
 0xeee   :  { %v14577_v1 = vpop.eup %14576  ;;  %v12681_v53 = vmul.f32 %v14575_v55, %v16747_v45 }
 0xeef   :  { %v12679_v59 = vmul.f32 %v14577_v1, %v16749_v52 }
 0xef0   :  { %12697 = vst [vmem:[#allocation19 + $0x78] sm:$0xff] %v12681_v53 }
 0xef1   :  { %12696 = vst [vmem:[#allocation19 + $0x70] sm:$0xff] %v12679_v59 }
 0xef2   :  { %14859 = shalt.err (!%p14856_p0)
}
 0xef3   :  { %s14860_s13 = scalar_lea.hbm %s16794_s10, 2048 }
 0xef4   :  { %p14861_p1 = scmp.ne.s32.totalorder %s16794_s10, %s14860_s13  ;;  %p14864_p2 = scmp.lt.u32.totalorder %s14860_s13, %s16794_s10 }
 0xef6   :  { %p14866_p3 = pnand %p14864_p2, %p14861_p1 }
 0xef8   :  { %14869 = shalt.err (!%p14866_p3)
}
 0xef9   :  { %12709 = dma.vmem_to_hbm [thread:$0]  %s12704_s30, 2048, %s16794_s10, [#allocation4], %s14886_s25, %s14886_s25, %s14887_s26  }
 0xefa   :  { %14882 = dma.done.wait [#allocation4], 2048  }
 0xefb   :  { %14883 = vsyncadd [#allocation4], 4294965248 }
 0xefc   :  { %12713 = vsyncpa [#allocation3], 1 }
 0xefd   :  { %12714 = vsyncpa [#allocation6], 1 }
 0xefe   :  { %12715 = vsyncpa [#allocation9], 1 }
 0xeff   :  { %12716 = vsyncpa [#allocation12], 1 }
 0xf00   :  { %12717 = vsyncpa [#allocation15], 1 }
 0xf01   :  { %12718 = vsyncpa [#allocation18], 1 }
 0xf02   :  { %12719 = vsyncpa [#allocation4], 1 }

</bundles_post_ra>
